<compile_context>
chip_gen: v7x
topology: tpu7x:2x2x1
jax: 0.10.0
libtpu: 0.0.40
codegen_flags: <defaults>
</compile_context>

<pallas_src>
import jax
import jax.numpy as jnp
from jax.experimental import pallas as pl
from jax.experimental.pallas import tpu as pltpu

_LANE = 128
_N_ALIGN = 32          # bf16 packed tile is (16,128); 32 keeps every reshape free


def _round_up(x, m):
    return (x + m - 1) // m * m


def _vmem_budget_bytes():
    # v5e/v6e: 128 MiB VMEM per TensorCore -> use ~100 MiB.
    # v7x: 64 MiB per TC -> ~48 MiB, leaving headroom for compiler scratch.
    try:
        cap = pltpu.get_tpu_info().vmem_capacity_bytes
    except Exception:
        cap = 64 * 1024 * 1024
    if cap >= 96 * 1024 * 1024:
        return 100 * 1024 * 1024
    return min(48 * 1024 * 1024, int(cap * 3 // 4))


def _make_kernel(kernel_sizes, seq_len, e_pad, f_pad, out_pad, tile_n):
    n_convs = len(kernel_sizes)
    k_max = max(kernel_sizes)
    l_max = seq_len - k_max + 1
    w_all = n_convs * f_pad

    def kernel(emb_ref, w_ref, cb_ref, fcw_ref, fcb_ref, out_ref):
        emb = emb_ref[...]                                  # (L, tile_n, E_pad) bf16
        w_stk = w_ref[...]                                  # (k_max*E_pad, w_all) bf16

        # One stacked im2col matmul covers every conv over the common
        # l_max = L - k_max + 1 output positions (missing taps are zero rows
        # in w_stk).  Slices/concat are lane-aligned since E_pad % 128 == 0.
        cols = jnp.concatenate([emb[k:k + l_max] for k in range(k_max)], axis=-1)
        cols = cols.reshape(l_max * tile_n, k_max * e_pad)
        y = jnp.dot(cols, w_stk, preferred_element_type=jnp.float32)
        pooled_main = jnp.max(y.reshape(l_max, tile_n, w_all), axis=0)

        # Fix-up: a conv with K < k_max has (k_max - K) extra valid positions
        # at the end of the sequence; tiny matmuls feed the running max.
        parts = []
        for ci, K in enumerate(kernel_sizes):
            part = pooled_main[:, ci * f_pad:(ci + 1) * f_pad]
            t = k_max - K
            if t > 0:
                ct = jnp.concatenate(
                    [emb[l_max + k:l_max + k + t] for k in range(K)], axis=-1)
                ct = ct.reshape(t * tile_n, K * e_pad)
                yt = jnp.dot(ct, w_stk[:K * e_pad, ci * f_pad:(ci + 1) * f_pad],
                             preferred_element_type=jnp.float32)
                part = jnp.maximum(
                    part, jnp.max(yt.reshape(t, tile_n, f_pad), axis=0))
            parts.append(part)
        pooled = jnp.concatenate(parts, axis=-1)            # (tile_n, w_all)

        # Conv bias + ReLU commute with the position max (bias is per-filter).
        pooled = jnp.maximum(pooled + cb_ref[...], 0.0)
        # fc on the MXU in bf16 with f32 accumulation; dropout = identity (eval).
        feat = jnp.dot(pooled.astype(jnp.bfloat16), fcw_ref[...],
                       preferred_element_type=jnp.float32)
        out_ref[...] = jnp.maximum(feat + fcb_ref[...], 0.0)

    return kernel


def cnn_feature_extractor(x, umask, params, *, tile_n=None):
    """x: (batch, num_utt, num_words) int32, umask: (batch, num_utt) float.

    Returns features of shape (num_utt, batch, output_size), matching the
    PyTorch module's forward (dropout = identity at inference).
    """
    emb_table = params['embedding']
    conv_ws, conv_bs = params['conv_w'], params['conv_b']
    fc_w, fc_b = params['fc_w'], params['fc_b']

    kernel_sizes = tuple(int(w.shape[0]) for w in conv_ws)
    n_convs = len(kernel_sizes)
    k_max = max(kernel_sizes)
    filters = int(conv_ws[0].shape[-1])
    out_dim = int(fc_w.shape[-1])
    batch, num_utt, num_words = x.shape
    E = int(emb_table.shape[1])

    if num_words < k_max:
        raise ValueError(
            f"num_words={num_words} must be >= max(kernel_sizes)={k_max}")

    e_pad = _round_up(E, _LANE)
    f_pad = _round_up(filters, _LANE)
    out_pad = _round_up(out_dim, _LANE)
    w_all = n_convs * f_pad
    l_max = num_words - k_max + 1
    N = num_utt * batch

    # --- glue: embedding gather in XLA, words-major (L, N, E_pad) bf16 ----------
    # TODO(synk): fuse the embedding gather into the kernel (scalar-prefetched
    # token ids + double-buffered DMA row-gather from an HBM-resident table) to
    # drop one full HBM round trip of the activations (biggest win on v5e);
    # kept in XLA because in-kernel gathers do not lower robustly.
    tab = jnp.pad(emb_table, ((0, 0), (0, e_pad - E))).astype(jnp.bfloat16)
    ids_lnw = jnp.transpose(x, (2, 1, 0)).reshape(num_words, -1)        # (L, N)
    emb = jnp.take(tab, ids_lnw, axis=0)                                # (L, N, E_pad)

    # --- tile_n: VMEM-budgeted, 32-aligned, >=2 grid steps when N allows --------
    vmem_limit = _vmem_budget_bytes()
    tail_bytes = sum((k_max - K) * (K * e_pad * 2 + f_pad * 4)
                     for K in kernel_sizes)
    per_row = (4 * num_words * e_pad              # bf16 emb block, double-buffered
               + l_max * k_max * e_pad * 2        # stacked im2col (bf16)
               + l_max * w_all * 4                # stacked conv activations (f32)
               + tail_bytes                       # tail fix-up temporaries
               + w_all * 6 + out_pad * 4          # pooled (f32 + bf16 copy) + feat
               + 2 * out_pad * 4                  # f32 output block, double-buffered
               + 256)                             # slack
    weight_bytes = 2 * (k_max * e_pad * w_all * 2 + w_all * 4
                        + w_all * out_pad * 2 + out_pad * 4)
    if tile_n is None:
        budget = int(0.6 * vmem_limit) - weight_bytes
        tile_vmem = max(_N_ALIGN,
                        min(2048, budget // per_row) // _N_ALIGN * _N_ALIGN)
        if N > _N_ALIGN:
            # Keep >=2 (ideally >=4) grid steps: v7x's two TensorCores only both
            # engage with >=2 "parallel" steps, and pipelining needs >1 step.
            min_steps = 4 if N >= 4 * _N_ALIGN else 2
            tile_occ = max(_N_ALIGN,
                           (-(-N // min_steps)) // _N_ALIGN * _N_ALIGN)
        else:
            tile_occ = _N_ALIGN
        tile_n = min(tile_vmem, tile_occ)
    tile_n = max(_N_ALIGN, int(tile_n) // _N_ALIGN * _N_ALIGN)
    tile_n = min(tile_n, _round_up(N, _N_ALIGN))

    n_pad = _round_up(N, tile_n)
    if n_pad != N:
        emb = jnp.pad(emb, ((0, 0), (0, n_pad - N), (0, 0)))
    grid = (n_pad // tile_n,)

    # --- pack weights: stacked bf16 conv slab, bf16 fc slab, lane-padded --------
    w_stacked = jnp.zeros((k_max * e_pad, w_all), jnp.float32)
    cb = jnp.zeros((1, w_all), jnp.float32)
    fcw = jnp.zeros((w_all, out_pad), jnp.float32)
    for ci, (K, w, b) in enumerate(zip(kernel_sizes, conv_ws, conv_bs)):
        for k in range(K):
            w_stacked = w_stacked.at[k * e_pad:k * e_pad + E,
                                     ci * f_pad:ci * f_pad + filters].set(w[k])
        cb = cb.at[:, ci * f_pad:ci * f_pad + filters].set(b.reshape(1, filters))
        fcw = fcw.at[ci * f_pad:ci * f_pad + filters, :out_dim].set(
            fc_w[ci * filters:(ci + 1) * filters, :])
    w_stacked = w_stacked.astype(jnp.bfloat16)
    fcw = fcw.astype(jnp.bfloat16)
    fcb = jnp.zeros((1, out_pad), jnp.float32).at[:, :out_dim].set(
        fc_b.reshape(1, out_dim).astype(jnp.float32))

    kernel = _make_kernel(kernel_sizes, num_words, e_pad, f_pad, out_pad, tile_n)
    out_shape = jax.ShapeDtypeStruct((n_pad, out_pad), jnp.float32)
    cparams = pltpu.CompilerParams(dimension_semantics=("parallel",),
                                   vmem_limit_bytes=int(vmem_limit))

    def build(weight_mode):
        kw = {} if weight_mode is None else {"pipeline_mode": weight_mode}
        in_specs = [
            pl.BlockSpec((num_words, tile_n, e_pad), lambda i: (0, i, 0)),
            pl.BlockSpec((k_max * e_pad, w_all), lambda i: (0, 0), **kw),
            pl.BlockSpec((1, w_all), lambda i: (0, 0), **kw),
            pl.BlockSpec((w_all, out_pad), lambda i: (0, 0), **kw),
            pl.BlockSpec((1, out_pad), lambda i: (0, 0), **kw),
        ]
        return pl.pallas_call(
            kernel, out_shape=out_shape, grid=grid, in_specs=in_specs,
            out_specs=pl.BlockSpec((tile_n, out_pad), lambda i: (i, 0)),
            compiler_params=cparams)

    operands = (emb, w_stacked, cb, fcw, fcb)
    try:
        # Grid-invariant weight blocks: single-buffer (halves their VMEM cost).
        feats = build(pl.Buffered(1))(*operands)
    except Exception:
        # Fallback if Buffered(1)/pipeline_mode is unsupported on this stack.
        feats = build(None)(*operands)

    # Epilogue: slice off padded rows/lanes, reshape, apply the utterance mask.
    feats = feats[:N, :out_dim].reshape(num_utt, batch, out_dim)
    mask = jnp.transpose(umask, (1, 0))[..., None].astype(feats.dtype)
    return feats * mask


def reference(x, umask, params):
    """Pure-JAX reference of the PyTorch forward (dropout = identity), using the
    same bf16 inputs / bf16 fc / f32 accumulation as the kernel."""
    batch, num_utt, L = x.shape
    xt = jnp.transpose(x, (1, 0, 2)).reshape(-1, L)
    emb = jnp.take(params['embedding'], xt, axis=0).astype(jnp.bfloat16)
    pooled = []
    for w, b in zip(params['conv_w'], params['conv_b']):
        K, _, F = w.shape
        l_out = L - K + 1
        wb = w.astype(jnp.bfloat16)
        acc = jnp.zeros((emb.shape[0], l_out, F), jnp.float32)
        for k in range(K):
            acc = acc + jnp.einsum('nle,ef->nlf', emb[:, k:k + l_out, :], wb[k],
                                   preferred_element_type=jnp.float32)
        acc = jax.nn.relu(acc + b[0])
        pooled.append(jnp.max(acc, axis=1))
    cat = jnp.concatenate(pooled, axis=-1).astype(jnp.bfloat16)
    feat = jax.nn.relu(
        jnp.dot(cat, params['fc_w'].astype(jnp.bfloat16),
                preferred_element_type=jnp.float32) + params['fc_b'][0])
    feat = feat.reshape(num_utt, batch, -1)
    mask = jnp.transpose(umask, (1, 0))[..., None].astype(jnp.float32)
    return feat * mask


def init_params(key, vocab_size, embedding_dim, output_size, filters, kernel_sizes):
    keys = jax.random.split(key, 2 + 2 * len(kernel_sizes) + 2)
    params = {}
    params['embedding'] = jax.random.normal(
        keys[0], (vocab_size, embedding_dim), jnp.float32)
    conv_w, conv_b = [], []
    for i, K in enumerate(kernel_sizes):
        # torch Conv1d weight is (F, E, K); kernel wants (K, E, F).
        scale = 1.0 / (embedding_dim * K) ** 0.5
        conv_w.append(scale * jax.random.normal(
            keys[1 + 2 * i], (K, embedding_dim, filters), jnp.float32))
        conv_b.append(scale * jax.random.normal(
            keys[2 + 2 * i], (1, filters), jnp.float32))
    params['conv_w'] = conv_w
    params['conv_b'] = conv_b
    d_in = len(kernel_sizes) * filters
    scale = 1.0 / d_in ** 0.5
    params['fc_w'] = scale * jax.random.normal(
        keys[-2], (d_in, output_size), jnp.float32)
    params['fc_b'] = scale * jax.random.normal(
        keys[-1], (1, output_size), jnp.float32)
    return params


if __name__ == "__main__":
    # Small deterministic problem; N = num_utt * batch = 42 -> 2 grid steps of 32
    # (exercises multi-step grid, N padding and the tail fix-up path).
    vocab_size, embedding_dim, output_size = 50, 32, 16
    filters, kernel_sizes = 8, (3, 4, 5)
    batch, num_utt, num_words = 3, 14, 12

    root = jax.random.PRNGKey(0)
    k_param, k_x, k_mask = jax.random.split(root, 3)
    params = init_params(k_param, vocab_size, embedding_dim, output_size,
                         filters, kernel_sizes)

    x = jax.random.randint(k_x, (batch, num_utt, num_words), 0, vocab_size,
                           dtype=jnp.int32)
    umask = jax.random.bernoulli(k_mask, 0.8, (batch, num_utt)).astype(jnp.float32)

    out = jax.block_until_ready(cnn_feature_extractor(x, umask, params))
    ref = reference(x, umask, params)
    assert out.shape == (num_utt, batch, output_size), out.shape
    # Kernel and reference share the bf16 compute path; residual deviation is
    # only f32 accumulation-order / single-ulp bf16 rounding.
    max_err = float(jnp.max(jnp.abs(out - ref)))
    assert jnp.allclose(out, ref, atol=1e-2, rtol=1e-2), max_err

    print("KERNEL_OK")
</pallas_src>

<mosaic_0001>
module attributes {stable_mosaic.version = 11 : i64} {
  func.func @kernel(%arg0: i32, %arg1: memref<12x32x128xbf16, #tpu.memory_space<vmem>>, %arg2: memref<640x384xbf16, #tpu.memory_space<vmem>>, %arg3: memref<1x384xf32, #tpu.memory_space<vmem>>, %arg4: memref<384x128xbf16, #tpu.memory_space<vmem>>, %arg5: memref<1x128xf32, #tpu.memory_space<vmem>>, %arg6: memref<32x128xf32, #tpu.memory_space<vmem>>) attributes {dimension_semantics = [#tpu.dimension_semantics<parallel>], iteration_bounds = array<i64: 2>, scalar_prefetch = 0 : i64, scratch_operands = 0 : i64, tpu.core_type = #tpu.core_type<tc>, window_params = [{transform_indices = @transform_0, window_bounds = array<i64: 12, 32, 128>}, {pipeline_mode = #tpu.pipeline_mode<synchronous>, transform_indices = @transform_1, window_bounds = array<i64: 640, 384>}, {pipeline_mode = #tpu.pipeline_mode<synchronous>, transform_indices = @transform_2, window_bounds = array<i64: 1, 384>}, {pipeline_mode = #tpu.pipeline_mode<synchronous>, transform_indices = @transform_3, window_bounds = array<i64: 384, 128>}, {pipeline_mode = #tpu.pipeline_mode<synchronous>, transform_indices = @transform_4, window_bounds = array<i64: 1, 128>}, {transform_indices = @transform_5, window_bounds = array<i64: 32, 128>}]} {
    %c0 = arith.constant 0 : index
    %c0_0 = arith.constant 0 : index
    %c0_1 = arith.constant 0 : index
    %0 = vector.load %arg1[%c0, %c0_0, %c0_1] : memref<12x32x128xbf16, #tpu.memory_space<vmem>>, vector<12x32x128xbf16>
    %c0_2 = arith.constant 0 : index
    %c0_3 = arith.constant 0 : index
    %1 = vector.load %arg2[%c0_2, %c0_3] : memref<640x384xbf16, #tpu.memory_space<vmem>>, vector<640x384xbf16>
    %2 = vector.extract_strided_slice %0 {offsets = [0, 0, 0], sizes = [8, 32, 128], strides = [1, 1, 1]} : vector<12x32x128xbf16> to vector<8x32x128xbf16>
    %3 = vector.extract_strided_slice %0 {offsets = [1, 0, 0], sizes = [8, 32, 128], strides = [1, 1, 1]} : vector<12x32x128xbf16> to vector<8x32x128xbf16>
    %4 = vector.extract_strided_slice %0 {offsets = [2, 0, 0], sizes = [8, 32, 128], strides = [1, 1, 1]} : vector<12x32x128xbf16> to vector<8x32x128xbf16>
    %5 = vector.extract_strided_slice %0 {offsets = [3, 0, 0], sizes = [8, 32, 128], strides = [1, 1, 1]} : vector<12x32x128xbf16> to vector<8x32x128xbf16>
    %6 = vector.extract_strided_slice %0 {offsets = [4, 0, 0], sizes = [8, 32, 128], strides = [1, 1, 1]} : vector<12x32x128xbf16> to vector<8x32x128xbf16>
    %7 = tpu.concatenate %2, %3, %4, %5, %6 in 2 : vector<8x32x128xbf16>, vector<8x32x128xbf16>, vector<8x32x128xbf16>, vector<8x32x128xbf16>, vector<8x32x128xbf16> -> vector<8x32x640xbf16>
    %8 = vector.shape_cast %7 : vector<8x32x640xbf16> to vector<256x640xbf16>
    %cst = arith.constant dense<0.000000e+00> : vector<256x384xf32>
    %9 = tpu.matmul %8, %1, %cst {dimension_numbers = #tpu.dot_dimension_numbers<[1], [0], [0], [1], [0, 0, 1, 1], [], []>} : vector<256x640xbf16>, vector<640x384xbf16>, vector<256x384xf32> -> vector<256x384xf32>
    %10 = vector.shape_cast %9 : vector<256x384xf32> to vector<8x32x384xf32>
    %cst_4 = arith.constant dense<0xFF800000> : vector<32x384xf32>
    %11 = vector.multi_reduction <maximumf>, %10, %cst_4 [0] : vector<8x32x384xf32> to vector<32x384xf32>
    %12 = vector.extract_strided_slice %11 {offsets = [0, 0], sizes = [32, 128], strides = [1, 1]} : vector<32x384xf32> to vector<32x128xf32>
    %13 = vector.extract_strided_slice %0 {offsets = [8, 0, 0], sizes = [2, 32, 128], strides = [1, 1, 1]} : vector<12x32x128xbf16> to vector<2x32x128xbf16>
    %14 = vector.extract_strided_slice %0 {offsets = [9, 0, 0], sizes = [2, 32, 128], strides = [1, 1, 1]} : vector<12x32x128xbf16> to vector<2x32x128xbf16>
    %15 = vector.extract_strided_slice %0 {offsets = [10, 0, 0], sizes = [2, 32, 128], strides = [1, 1, 1]} : vector<12x32x128xbf16> to vector<2x32x128xbf16>
    %16 = tpu.concatenate %13, %14, %15 in 2 : vector<2x32x128xbf16>, vector<2x32x128xbf16>, vector<2x32x128xbf16> -> vector<2x32x384xbf16>
    %17 = vector.shape_cast %16 : vector<2x32x384xbf16> to vector<64x384xbf16>
    %18 = vector.extract_strided_slice %1 {offsets = [0, 0], sizes = [384, 128], strides = [1, 1]} : vector<640x384xbf16> to vector<384x128xbf16>
    %cst_5 = arith.constant dense<0.000000e+00> : vector<64x128xf32>
    %19 = tpu.matmul %17, %18, %cst_5 {dimension_numbers = #tpu.dot_dimension_numbers<[1], [0], [0], [1], [0, 0, 1, 1], [], []>} : vector<64x384xbf16>, vector<384x128xbf16>, vector<64x128xf32> -> vector<64x128xf32>
    %20 = vector.shape_cast %19 : vector<64x128xf32> to vector<2x32x128xf32>
    %cst_6 = arith.constant dense<0xFF800000> : vector<32x128xf32>
    %21 = vector.multi_reduction <maximumf>, %20, %cst_6 [0] : vector<2x32x128xf32> to vector<32x128xf32>
    %22 = arith.maximumf %12, %21 : vector<32x128xf32>
    %23 = vector.extract_strided_slice %11 {offsets = [0, 128], sizes = [32, 128], strides = [1, 1]} : vector<32x384xf32> to vector<32x128xf32>
    %24 = vector.extract_strided_slice %0 {offsets = [8, 0, 0], sizes = [1, 32, 128], strides = [1, 1, 1]} : vector<12x32x128xbf16> to vector<1x32x128xbf16>
    %25 = vector.extract_strided_slice %0 {offsets = [9, 0, 0], sizes = [1, 32, 128], strides = [1, 1, 1]} : vector<12x32x128xbf16> to vector<1x32x128xbf16>
    %26 = vector.extract_strided_slice %0 {offsets = [10, 0, 0], sizes = [1, 32, 128], strides = [1, 1, 1]} : vector<12x32x128xbf16> to vector<1x32x128xbf16>
    %27 = vector.extract_strided_slice %0 {offsets = [11, 0, 0], sizes = [1, 32, 128], strides = [1, 1, 1]} : vector<12x32x128xbf16> to vector<1x32x128xbf16>
    %28 = tpu.concatenate %24, %25, %26, %27 in 2 : vector<1x32x128xbf16>, vector<1x32x128xbf16>, vector<1x32x128xbf16>, vector<1x32x128xbf16> -> vector<1x32x512xbf16>
    %29 = vector.shape_cast %28 : vector<1x32x512xbf16> to vector<32x512xbf16>
    %30 = vector.extract_strided_slice %1 {offsets = [0, 128], sizes = [512, 128], strides = [1, 1]} : vector<640x384xbf16> to vector<512x128xbf16>
    %cst_7 = arith.constant dense<0.000000e+00> : vector<32x128xf32>
    %31 = tpu.matmul %29, %30, %cst_7 {dimension_numbers = #tpu.dot_dimension_numbers<[1], [0], [0], [1], [0, 0, 1, 1], [], []>} : vector<32x512xbf16>, vector<512x128xbf16>, vector<32x128xf32> -> vector<32x128xf32>
    %32 = vector.shape_cast %31 : vector<32x128xf32> to vector<1x32x128xf32>
    %cst_8 = arith.constant dense<0xFF800000> : vector<32x128xf32>
    %33 = vector.multi_reduction <maximumf>, %32, %cst_8 [0] : vector<1x32x128xf32> to vector<32x128xf32>
    %34 = arith.maximumf %23, %33 : vector<32x128xf32>
    %35 = vector.extract_strided_slice %11 {offsets = [0, 256], sizes = [32, 128], strides = [1, 1]} : vector<32x384xf32> to vector<32x128xf32>
    %36 = tpu.concatenate %22, %34, %35 in 1 : vector<32x128xf32>, vector<32x128xf32>, vector<32x128xf32> -> vector<32x384xf32>
    %c0_9 = arith.constant 0 : index
    %c0_10 = arith.constant 0 : index
    %37 = vector.load %arg3[%c0_9, %c0_10] : memref<1x384xf32, #tpu.memory_space<vmem>>, vector<1x384xf32>
    %38 = vector.broadcast %37 : vector<1x384xf32> to vector<32x384xf32>
    %39 = arith.addf %36, %38 : vector<32x384xf32>
    %cst_11 = arith.constant 0.000000e+00 : f32
    %40 = vector.broadcast %cst_11 : f32 to vector<32x384xf32>
    %41 = arith.maximumf %39, %40 : vector<32x384xf32>
    %42 = arith.truncf %41 : vector<32x384xf32> to vector<32x384xbf16>
    %c0_12 = arith.constant 0 : index
    %c0_13 = arith.constant 0 : index
    %43 = vector.load %arg4[%c0_12, %c0_13] : memref<384x128xbf16, #tpu.memory_space<vmem>>, vector<384x128xbf16>
    %cst_14 = arith.constant dense<0.000000e+00> : vector<32x128xf32>
    %44 = tpu.matmul %42, %43, %cst_14 {dimension_numbers = #tpu.dot_dimension_numbers<[1], [0], [0], [1], [0, 0, 1, 1], [], []>} : vector<32x384xbf16>, vector<384x128xbf16>, vector<32x128xf32> -> vector<32x128xf32>
    %c0_15 = arith.constant 0 : index
    %c0_16 = arith.constant 0 : index
    %45 = vector.load %arg5[%c0_15, %c0_16] : memref<1x128xf32, #tpu.memory_space<vmem>>, vector<1x128xf32>
    %46 = vector.broadcast %45 : vector<1x128xf32> to vector<32x128xf32>
    %47 = arith.addf %44, %46 : vector<32x128xf32>
    %cst_17 = arith.constant 0.000000e+00 : f32
    %48 = vector.broadcast %cst_17 : f32 to vector<32x128xf32>
    %49 = arith.maximumf %47, %48 : vector<32x128xf32>
    %c0_18 = arith.constant 0 : index
    %c0_19 = arith.constant 0 : index
    %50 = vector.load %arg6[%c0_18, %c0_19] : memref<32x128xf32, #tpu.memory_space<vmem>>, vector<32x128xf32>
    tpu.vector_store %arg6[%c0_18, %c0_19], %49 {strides = array<i32>} : memref<32x128xf32, #tpu.memory_space<vmem>>, vector<32x128xf32>,
    return
  }
  func.func @transform_0(%arg0: i32) -> (i32, i32, i32) {
    %c0_i32 = arith.constant 0 : i32
    %c0_i32_0 = arith.constant 0 : i32
    %c0_i32_1 = arith.constant 0 : i32
    return %c0_i32, %arg0, %c0_i32_0 : i32, i32, i32
  }
  func.func @transform_1(%arg0: i32) -> (i32, i32) {
    %c0_i32 = arith.constant 0 : i32
    %c0_i32_0 = arith.constant 0 : i32
    %c0_i32_1 = arith.constant 0 : i32
    return %c0_i32, %c0_i32_0 : i32, i32
  }
  func.func @transform_2(%arg0: i32) -> (i32, i32) {
    %c0_i32 = arith.constant 0 : i32
    %c0_i32_0 = arith.constant 0 : i32
    %c0_i32_1 = arith.constant 0 : i32
    return %c0_i32, %c0_i32_0 : i32, i32
  }
  func.func @transform_3(%arg0: i32) -> (i32, i32) {
    %c0_i32 = arith.constant 0 : i32
    %c0_i32_0 = arith.constant 0 : i32
    %c0_i32_1 = arith.constant 0 : i32
    return %c0_i32, %c0_i32_0 : i32, i32
  }
  func.func @transform_4(%arg0: i32) -> (i32, i32) {
    %c0_i32 = arith.constant 0 : i32
    %c0_i32_0 = arith.constant 0 : i32
    %c0_i32_1 = arith.constant 0 : i32
    return %c0_i32, %c0_i32_0 : i32, i32
  }
  func.func @transform_5(%arg0: i32) -> (i32, i32) {
    %c0_i32 = arith.constant 0 : i32
    %c0_i32_0 = arith.constant 0 : i32
    return %arg0, %c0_i32 : i32, i32
  }
}

module attributes {stable_mosaic.version = 11 : i64} {
  func.func @kernel(%arg0: i32, %arg1: memref<12x32x128xbf16, #tpu.memory_space<vmem>>, %arg2: memref<640x384xbf16, #tpu.memory_space<vmem>>, %arg3: memref<1x384xf32, #tpu.memory_space<vmem>>, %arg4: memref<384x128xbf16, #tpu.memory_space<vmem>>, %arg5: memref<1x128xf32, #tpu.memory_space<vmem>>, %arg6: memref<32x128xf32, #tpu.memory_space<vmem>>) attributes {dimension_semantics = [#tpu.dimension_semantics<parallel>], iteration_bounds = array<i64: 2>, scalar_prefetch = 0 : i64, scratch_operands = 0 : i64, tpu.core_type = #tpu.core_type<tc>, window_params = [{transform_indices = @transform_0, window_bounds = array<i64: 12, 32, 128>}, {pipeline_mode = #tpu.pipeline_mode<synchronous>, transform_indices = @transform_1, window_bounds = array<i64: 640, 384>}, {pipeline_mode = #tpu.pipeline_mode<synchronous>, transform_indices = @transform_2, window_bounds = array<i64: 1, 384>}, {pipeline_mode = #tpu.pipeline_mode<synchronous>, transform_indices = @transform_3, window_bounds = array<i64: 384, 128>}, {pipeline_mode = #tpu.pipeline_mode<synchronous>, transform_indices = @transform_4, window_bounds = array<i64: 1, 128>}, {transform_indices = @transform_5, window_bounds = array<i64: 32, 128>}]} {
    %c0 = arith.constant 0 : index
    %c0_0 = arith.constant 0 : index
    %c0_1 = arith.constant 0 : index
    %0 = vector.load %arg1[%c0, %c0_0, %c0_1] : memref<12x32x128xbf16, #tpu.memory_space<vmem>>, vector<12x32x128xbf16>
    %c0_2 = arith.constant 0 : index
    %c0_3 = arith.constant 0 : index
    %1 = vector.load %arg2[%c0_2, %c0_3] : memref<640x384xbf16, #tpu.memory_space<vmem>>, vector<640x384xbf16>
    %2 = vector.extract_strided_slice %0 {offsets = [0, 0, 0], sizes = [8, 32, 128], strides = [1, 1, 1]} : vector<12x32x128xbf16> to vector<8x32x128xbf16>
    %3 = vector.extract_strided_slice %0 {offsets = [1, 0, 0], sizes = [8, 32, 128], strides = [1, 1, 1]} : vector<12x32x128xbf16> to vector<8x32x128xbf16>
    %4 = vector.extract_strided_slice %0 {offsets = [2, 0, 0], sizes = [8, 32, 128], strides = [1, 1, 1]} : vector<12x32x128xbf16> to vector<8x32x128xbf16>
    %5 = vector.extract_strided_slice %0 {offsets = [3, 0, 0], sizes = [8, 32, 128], strides = [1, 1, 1]} : vector<12x32x128xbf16> to vector<8x32x128xbf16>
    %6 = vector.extract_strided_slice %0 {offsets = [4, 0, 0], sizes = [8, 32, 128], strides = [1, 1, 1]} : vector<12x32x128xbf16> to vector<8x32x128xbf16>
    %7 = tpu.concatenate %2, %3, %4, %5, %6 in 2 : vector<8x32x128xbf16>, vector<8x32x128xbf16>, vector<8x32x128xbf16>, vector<8x32x128xbf16>, vector<8x32x128xbf16> -> vector<8x32x640xbf16>
    %8 = vector.shape_cast %7 : vector<8x32x640xbf16> to vector<256x640xbf16>
    %cst = arith.constant dense<0.000000e+00> : vector<256x384xf32>
    %9 = tpu.matmul %8, %1, %cst {dimension_numbers = #tpu.dot_dimension_numbers<[1], [0], [0], [1], [0, 0, 1, 1], [], []>} : vector<256x640xbf16>, vector<640x384xbf16>, vector<256x384xf32> -> vector<256x384xf32>
    %10 = vector.shape_cast %9 : vector<256x384xf32> to vector<8x32x384xf32>
    %cst_4 = arith.constant dense<0xFF800000> : vector<32x384xf32>
    %11 = vector.multi_reduction <maximumf>, %10, %cst_4 [0] : vector<8x32x384xf32> to vector<32x384xf32>
    %12 = vector.extract_strided_slice %11 {offsets = [0, 0], sizes = [32, 128], strides = [1, 1]} : vector<32x384xf32> to vector<32x128xf32>
    %13 = vector.extract_strided_slice %0 {offsets = [8, 0, 0], sizes = [2, 32, 128], strides = [1, 1, 1]} : vector<12x32x128xbf16> to vector<2x32x128xbf16>
    %14 = vector.extract_strided_slice %0 {offsets = [9, 0, 0], sizes = [2, 32, 128], strides = [1, 1, 1]} : vector<12x32x128xbf16> to vector<2x32x128xbf16>
    %15 = vector.extract_strided_slice %0 {offsets = [10, 0, 0], sizes = [2, 32, 128], strides = [1, 1, 1]} : vector<12x32x128xbf16> to vector<2x32x128xbf16>
    %16 = tpu.concatenate %13, %14, %15 in 2 : vector<2x32x128xbf16>, vector<2x32x128xbf16>, vector<2x32x128xbf16> -> vector<2x32x384xbf16>
    %17 = vector.shape_cast %16 : vector<2x32x384xbf16> to vector<64x384xbf16>
    %18 = vector.extract_strided_slice %1 {offsets = [0, 0], sizes = [384, 128], strides = [1, 1]} : vector<640x384xbf16> to vector<384x128xbf16>
    %cst_5 = arith.constant dense<0.000000e+00> : vector<64x128xf32>
    %19 = tpu.matmul %17, %18, %cst_5 {dimension_numbers = #tpu.dot_dimension_numbers<[1], [0], [0], [1], [0, 0, 1, 1], [], []>} : vector<64x384xbf16>, vector<384x128xbf16>, vector<64x128xf32> -> vector<64x128xf32>
    %20 = vector.shape_cast %19 : vector<64x128xf32> to vector<2x32x128xf32>
    %cst_6 = arith.constant dense<0xFF800000> : vector<32x128xf32>
    %21 = vector.multi_reduction <maximumf>, %20, %cst_6 [0] : vector<2x32x128xf32> to vector<32x128xf32>
    %22 = arith.maximumf %12, %21 : vector<32x128xf32>
    %23 = vector.extract_strided_slice %11 {offsets = [0, 128], sizes = [32, 128], strides = [1, 1]} : vector<32x384xf32> to vector<32x128xf32>
    %24 = vector.extract_strided_slice %0 {offsets = [8, 0, 0], sizes = [1, 32, 128], strides = [1, 1, 1]} : vector<12x32x128xbf16> to vector<1x32x128xbf16>
    %25 = vector.extract_strided_slice %0 {offsets = [9, 0, 0], sizes = [1, 32, 128], strides = [1, 1, 1]} : vector<12x32x128xbf16> to vector<1x32x128xbf16>
    %26 = vector.extract_strided_slice %0 {offsets = [10, 0, 0], sizes = [1, 32, 128], strides = [1, 1, 1]} : vector<12x32x128xbf16> to vector<1x32x128xbf16>
    %27 = vector.extract_strided_slice %0 {offsets = [11, 0, 0], sizes = [1, 32, 128], strides = [1, 1, 1]} : vector<12x32x128xbf16> to vector<1x32x128xbf16>
    %28 = tpu.concatenate %24, %25, %26, %27 in 2 : vector<1x32x128xbf16>, vector<1x32x128xbf16>, vector<1x32x128xbf16>, vector<1x32x128xbf16> -> vector<1x32x512xbf16>
    %29 = vector.shape_cast %28 : vector<1x32x512xbf16> to vector<32x512xbf16>
    %30 = vector.extract_strided_slice %1 {offsets = [0, 128], sizes = [512, 128], strides = [1, 1]} : vector<640x384xbf16> to vector<512x128xbf16>
    %cst_7 = arith.constant dense<0.000000e+00> : vector<32x128xf32>
    %31 = tpu.matmul %29, %30, %cst_7 {dimension_numbers = #tpu.dot_dimension_numbers<[1], [0], [0], [1], [0, 0, 1, 1], [], []>} : vector<32x512xbf16>, vector<512x128xbf16>, vector<32x128xf32> -> vector<32x128xf32>
    %32 = vector.shape_cast %31 : vector<32x128xf32> to vector<1x32x128xf32>
    %cst_8 = arith.constant dense<0xFF800000> : vector<32x128xf32>
    %33 = vector.multi_reduction <maximumf>, %32, %cst_8 [0] : vector<1x32x128xf32> to vector<32x128xf32>
    %34 = arith.maximumf %23, %33 : vector<32x128xf32>
    %35 = vector.extract_strided_slice %11 {offsets = [0, 256], sizes = [32, 128], strides = [1, 1]} : vector<32x384xf32> to vector<32x128xf32>
    %36 = tpu.concatenate %22, %34, %35 in 1 : vector<32x128xf32>, vector<32x128xf32>, vector<32x128xf32> -> vector<32x384xf32>
    %c0_9 = arith.constant 0 : index
    %c0_10 = arith.constant 0 : index
    %37 = vector.load %arg3[%c0_9, %c0_10] : memref<1x384xf32, #tpu.memory_space<vmem>>, vector<1x384xf32>
    %38 = vector.broadcast %37 : vector<1x384xf32> to vector<32x384xf32>
    %39 = arith.addf %36, %38 : vector<32x384xf32>
    %cst_11 = arith.constant 0.000000e+00 : f32
    %40 = vector.broadcast %cst_11 : f32 to vector<32x384xf32>
    %41 = arith.maximumf %39, %40 : vector<32x384xf32>
    %42 = arith.truncf %41 : vector<32x384xf32> to vector<32x384xbf16>
    %c0_12 = arith.constant 0 : index
    %c0_13 = arith.constant 0 : index
    %43 = vector.load %arg4[%c0_12, %c0_13] : memref<384x128xbf16, #tpu.memory_space<vmem>>, vector<384x128xbf16>
    %cst_14 = arith.constant dense<0.000000e+00> : vector<32x128xf32>
    %44 = tpu.matmul %42, %43, %cst_14 {dimension_numbers = #tpu.dot_dimension_numbers<[1], [0], [0], [1], [0, 0, 1, 1], [], []>} : vector<32x384xbf16>, vector<384x128xbf16>, vector<32x128xf32> -> vector<32x128xf32>
    %c0_15 = arith.constant 0 : index
    %c0_16 = arith.constant 0 : index
    %45 = vector.load %arg5[%c0_15, %c0_16] : memref<1x128xf32, #tpu.memory_space<vmem>>, vector<1x128xf32>
    %46 = vector.broadcast %45 : vector<1x128xf32> to vector<32x128xf32>
    %47 = arith.addf %44, %46 : vector<32x128xf32>
    %cst_17 = arith.constant 0.000000e+00 : f32
    %48 = vector.broadcast %cst_17 : f32 to vector<32x128xf32>
    %49 = arith.maximumf %47, %48 : vector<32x128xf32>
    %c0_18 = arith.constant 0 : index
    %c0_19 = arith.constant 0 : index
    %50 = vector.load %arg6[%c0_18, %c0_19] : memref<32x128xf32, #tpu.memory_space<vmem>>, vector<32x128xf32>
    tpu.vector_store %arg6[%c0_18, %c0_19], %49 {strides = array<i32>} : memref<32x128xf32, #tpu.memory_space<vmem>>, vector<32x128xf32>,
    return
  }
  func.func @transform_0(%arg0: i32) -> (i32, i32, i32) {
    %c0_i32 = arith.constant 0 : i32
    %c0_i32_0 = arith.constant 0 : i32
    %c0_i32_1 = arith.constant 0 : i32
    return %c0_i32, %arg0, %c0_i32_0 : i32, i32, i32
  }
  func.func @transform_1(%arg0: i32) -> (i32, i32) {
    %c0_i32 = arith.constant 0 : i32
    %c0_i32_0 = arith.constant 0 : i32
    %c0_i32_1 = arith.constant 0 : i32
    return %c0_i32, %c0_i32_0 : i32, i32
  }
  func.func @transform_2(%arg0: i32) -> (i32, i32) {
    %c0_i32 = arith.constant 0 : i32
    %c0_i32_0 = arith.constant 0 : i32
    %c0_i32_1 = arith.constant 0 : i32
    return %c0_i32, %c0_i32_0 : i32, i32
  }
  func.func @transform_3(%arg0: i32) -> (i32, i32) {
    %c0_i32 = arith.constant 0 : i32
    %c0_i32_0 = arith.constant 0 : i32
    %c0_i32_1 = arith.constant 0 : i32
    return %c0_i32, %c0_i32_0 : i32, i32
  }
  func.func @transform_4(%arg0: i32) -> (i32, i32) {
    %c0_i32 = arith.constant 0 : i32
    %c0_i32_0 = arith.constant 0 : i32
    %c0_i32_1 = arith.constant 0 : i32
    return %c0_i32, %c0_i32_0 : i32, i32
  }
  func.func @transform_5(%arg0: i32) -> (i32, i32) {
    %c0_i32 = arith.constant 0 : i32
    %c0_i32_0 = arith.constant 0 : i32
    return %arg0, %c0_i32 : i32, i32
  }
}

</mosaic_0001>

<bundles_post_ra>
// kernel: tpu_custom_call.1
= control target key start
LH: loop header
LB: loop body
LE: loop exit
PB: predicated region body
PF: predicated region fallthrough
CT: control target
= control target key end

     0   :  { %10 = vsyncpa [#allocation3], 0  ;;  %s5275_s0 = inlined_call_operand.hbm [shape: bf16[12,64,128], index: 0, kind: input, shape index: {}]   ;;  %s5276_s1 = inlined_call_operand.hbm [shape: bf16[640,384], index: 1, kind: input, shape index: {}]   ;;  %s5277_s2 = inlined_call_operand.vmem [shape: f32[1,384], index: 2, kind: input, shape index: {}]   ;;  %s5278_s3 = inlined_call_operand.hbm [shape: bf16[384,128], index: 3, kind: input, shape index: {}]   ;;  %s5279_s4 = inlined_call_operand.vmem [shape: f32[1,128], index: 4, kind: input, shape index: {}]   ;;  %s5280_s5 = inlined_call_operand.hbm [shape: f32[64,128], index: 5, kind: output, shape index: {}]  }
   0x1   :  { %12 = vsyncpa [#allocation3 + $0x1], 0 }
   0x2   :  { %13 = vsyncpa [#allocation6], 0 }
   0x3   :  { %14 = vsyncpa [#allocation4], 0 }
   0x4   :  { %16 = vsyncpa [#allocation4 + $0x1], 0  ;;  %s4441_s18 = smov 0   ;;  %s4443_s19 = smov 0  }
   0x5   :  { %s4445_s20 = smov 0   ;;  %s4447_s21 = smov 0  }
   0x6 LB: > { %s4462_s22 = sadd.s32 4294967295, %s4394_s21   ;;  %s3136_s23 = sadd.s32 4294967294, %s4394_s21   ;;  %s4394_s21 = sphi %s4447_s21, %s5304_s21   ;;  %s4390_s20 = sphi %s4445_s20, %s5303_s20   ;;  %s4386_s19 = sphi %s4443_s19, %s5302_s19   ;;  %s4382_s18 = sphi %s4441_s18, %s5301_s18  }
   0x7   : > { %s4466_s24 = sadd.s32 1, %s4394_s21   ;;  %s29_s25 = sadd.s32 1, %s4390_s20 }
   0x8   : > { %s26_s26 = ssub.s32 %s4394_s21, %s4466_s24  ;;  %p36_p0 = scmp.ne.s32.totalorder %s4390_s20, %s4386_s19 }
   0x9   : > { %p27_p1 = scmp.eq.s32.totalorder %s26_s26, 0  ;;  %p37_p2 = scmp.eq.s32.totalorder %s4394_s21, 0 }
   0xa   : > { %p42_p3 = scmp.ne.s32.totalorder %s4386_s19, %s4382_s18  ;;  %p5281_p4 = scmp.eq.s32.totalorder %s4462_s22, 0 }
   0xb   : > { %s4478_s27 = scalar_select %p27_p1, %s4390_s20, %s29_s25  }
   0xc   : > { %p4480_p5 = por %p37_p2, %p36_p0  ;;  %p4486_p6 = por %p5281_p4, %p42_p3 }
   0xd   : > { %5286 = sst [smem:[#allocation15_spill]] %s4478_s27  ;;  %p150_p7 = scmp.eq.s32.totalorder %s4462_s22, 1 }
   0xe   : > { %s5287_s28 = scalar_select %p4480_p5, 1, 0 }
   0xf   : > { %s5288_s29 = scalar_select %p4486_p6, 1, 0 }
  0x10   : > { %p156_p8 = scmp.eq.s32.totalorder %s3136_s23, 1  ;;  %p3137_p9 = scmp.ge.s32.totalorder %s4394_s21, 1 }
  0x11   : > { %p163_p10 = scmp.lt.s32.totalorder %s4394_s21, 3  ;;  %p4493_p11 = por %p150_p7, %p36_p0 }
  0x12   : > { %p4497_p12 = por %p156_p8, %p42_p3  ;;  %s4396_s8 = smov [#allocation5]  }
  0x13   : > { %s5289_s30 = scalar_select %p4493_p11, 1, 0 }
  0x14   : > { %s5290_s6 = scalar_select %p4497_p12, 1, 0 }
  0x15   : > { %p4501_p13 = pnand %p3137_p9, %p163_p10  ;;  %s175_s9 = sshll.u32 %s4396_s8, 4  ;;  %s176_s9 = int_to_ptr.vmem [resolvable:$true] %s175_s9 }
  0x16   : > { %s4397_s11 = smov [#allocation7]   ;;  %s4268_s15 = scalar_lea.hbm %s5276_s1, 15360 }
  0x17   : > { %s5291_s7 = scalar_select %p4501_p13, 1, 0 }
  0x18   : > { %p3960_p1 = pneg %p4501_p13  ;;  %s191_s12 = sshll.u32 %s4397_s11, 4  ;;  %s4513_s12 = int_to_ptr.vmem [resolvable:$true] %s191_s12 }
  0x19   : > { %p4269_p0 = scmp.ne.s32.totalorder %s5276_s1, %s4268_s15  ;;  %p4275_p9 = scmp.lt.u32.totalorder %s4268_s15, %s5276_s1 }
  0x1a   : > { %p4509_p2 = pnand %p3960_p1, %p5281_p4 }
  0x1c   : > { %p4270_p3 = pneg %p4509_p2 }
  0x1e   : > { %p4271_p7 = pnand %p4270_p3, %p4269_p0 }
  0x20   : > { %p4272_p8 = pneg %p4271_p7 }
  0x22   : > { %p4277_p10 = pnand %p4275_p9, %p4272_p8 }
  0x24   : > { %4280 = shalt.err (!%p4277_p10)
}
  0x25   : > { %s4281_s26 = scalar_lea.vmem %s176_s9, 15360  ;;  %p4289_p11 = scmp.lt.s32.totalorder %s176_s9, %s176_s9 }
  0x26   : > { %p4282_p1 = scmp.ne.s32.totalorder %s176_s9, %s4281_s26  ;;  %p4290_p6 = scmp.lt.s32.totalorder %s4281_s26, %s4281_s26 }
  0x28   : > { %p4284_p4 = pnand %p4282_p1, %p4270_p3  ;;  %p4291_p13 = por %p4290_p6, %p4289_p11 }
  0x2a   : > { %p4285_p12 = pneg %p4284_p4 }
  0x2c   : > { %p4292_p5 = pnand %p4291_p13, %p4285_p12 }
  0x2e   : > { %4295 = shalt.err (!%p4292_p5)
}
  0x2f   : > { %s4398_s8 = smov 192   ;;  %s4399_s11 = smov 12  }
  0x30   : > { %3963 = dma.hbm_to_vmem [thread:$0]  (!%p4509_p2), %s5276_s1, 15360, %s176_s9, [#allocation6], %s4398_s8, %s4398_s8, %s4399_s11  }
  0x31   : > { %s4296_s17 = scalar_lea.hbm %s5278_s3, 3072 }
  0x32   : > { %p4297_p4 = scmp.ne.s32.totalorder %s5278_s3, %s4296_s17  ;;  %p4303_p11 = scmp.lt.u32.totalorder %s4296_s17, %s5278_s3 }
  0x34   : > { %p4299_p5 = pnand %p4297_p4, %p4270_p3 }
  0x36   : > { %p4300_p6 = pneg %p4299_p5 }
  0x38   : > { %p4305_p12 = pnand %p4303_p11, %p4300_p6 }
  0x3a   : > { %4308 = shalt.err (!%p4305_p12)
}
  0x3b   : > { %s4309_s9 = scalar_lea.vmem %s4513_s12, 3072  ;;  %p4317_p8 = scmp.lt.s32.totalorder %s4513_s12, %s4513_s12 }
  0x3c   : > { %p4310_p13 = scmp.ne.s32.totalorder %s4513_s12, %s4309_s9  ;;  %p4318_p9 = scmp.lt.s32.totalorder %s4309_s9, %s4309_s9 }
  0x3e   : > { %p4312_p0 = pnand %p4310_p13, %p4270_p3  ;;  %p4319_p10 = por %p4318_p9, %p4317_p8 }
  0x40   : > { %p4313_p7 = pneg %p4312_p0 }
  0x42   : > { %p4320_p1 = pnand %p4319_p10, %p4313_p7 }
  0x44   : > { %4323 = shalt.err (!%p4320_p1)
}
  0x45   : > { %s4400_s27 = smov 64   ;;  %s4401_s8 = smov 4  }
  0x46   : > { %3966 = dma.hbm_to_vmem [thread:$0]  (!%p4509_p2), %s5278_s3, 3072, %s4513_s12, [#allocation6], %s4400_s27, %s4400_s27, %s4401_s8  }
  0x47   : > { %p3140_p4 = scmp.ge.s32.totalorder %s4394_s21, 2 }
  0x49   : > { %204 = sbr.rel (%p3140_p4) target bundleno = 96 (0x60), region = 32 }
  0x50   : > { %s208_s14 = sand.u32 1, %s4390_s20   ;;  %s3323_s10 = sshll.u32 %s4394_s21, 8 }
  0x51   : > { %s3939_s15 = smul.u32 192, %s208_s14  ;;  %s4402_s16 = smov 512  }
  0x52   : > { %p5293_p3 = scmp.ne.s32.totalorder %s5287_s28, 0  ;;  %s4403_s26 = smov 256  }
  0x53   : > { %s212_s23 = scalar_lea.vmem [#allocation2], %s3939_s15  ;;  %s4404_s9 = smov 4  }
  0x54   : > { %3946 = sst [smem:[#allocation10]] (%p5293_p3), %s4402_s16  ;;  %s231_s25 = sshll.u32 %s212_s23, 4  ;;  %s232_s25 = int_to_ptr.vmem [resolvable:$true] %s231_s25 }
  0x55   : > { %s3945_s12 = scalar_select %p5293_p3, [#allocation0], [#allocation11] }
  0x56   : > { %3947 = sst [smem:[#allocation10 + $0x1]] (%p5293_p3), %s4403_s26  ;;  %s218_s11 = scalar_lea.hbm %s5275_s0, %s3323_s10 }
  0x57   : > { %s223_s17 = sld [smem:[%s3945_s12]]   ;;  %s4405_s13 = smov 64  }
  0x58   : > { %3948 = sst [smem:[#allocation10 + $0x2]] (%p5293_p3), %s4404_s9  ;;  %s209_s12 = scalar_lea.sflag [#allocation3], %s208_s14 }
  0x59   : > { %3949 = sst [smem:[#allocation10 + $0x3]] (%p5293_p3), %s4405_s13  ;;  %s4406_s23 = smov [#allocation9]  }
  0x5a   : > { %3950 = sst [smem:[#allocation10 + $0x4]] (%p5293_p3), %s4405_s13 }
  0x5b   : > { %3951 = sst [smem:[#allocation10 + $0x5]] (%p5293_p3), %s4404_s9 }
  0x5d   : > { %s3143_s15 = sshll.u32 %s223_s17, 26 }
  0x5e   : > { %s3144_s16 = sadd.s32 134217728, %s3143_s15 }
  0x5f   : > { %3952 = dma.general (%p5293_p3), %s218_s11, 3072, %s232_s25, %s209_s12, %s4406_s23, [#allocation10], %s3144_s16, 0  }
  0x60 PF: > { %p5294_p2 = scmp.ne.s32.totalorder %s5291_s7, 0 }
  0x61   : > { %s4589_s10 = sand.u32 (!%p5294_p2), 1, %s4386_s19   ;;  %p5295_p5 = scmp.ne.s32.totalorder (!%p5294_p2), %s5288_s29, 0 }
  0x62   : > { %256 = sbr.rel (%p5294_p2) target bundleno = 1032 (0x408), region = 40  ;;  %s259_s27 = scalar_lea.sflag (!%p5294_p2), [#allocation3], %s4589_s10 }
  0x63   : > { %s3940_s26 = smul.u32 (!%p5294_p2), 192, %s4589_s10 }
  0x65   : > { %s4593_s8 = scalar_lea.vmem (!%p5294_p2), [#allocation2], %s3940_s26 }
  0x69   : > { %4369 = dma.done.wait (%p5295_p5), %s259_s27, 3072  }
  0x6a   : > { %4371 = vsyncadd (%p5295_p5), %s259_s27, 4294964224  ;;  %p5296_p6 = scmp.eq.s32.totalorder %s4462_s22, 0 }
  0x6c   : > { %4373 = dma.done.wait (%p5296_p6), [#allocation6], 18432   ;;  %p5297_p11 = pmov %p5296_p6 }
  0x6d   : > { %v4022_v0 = vld [vmem:[#allocation5 + $0x4] ss:$12 sps:$4 sm:$0xff]   ;;  %v4024_v1 = vld [vmem:[#allocation5 + $0xc8] ss:$12 sps:$4 sm:$0xff]   ;;  %v4025_v2 = vld [vmem:[#allocation5] ss:$12 sps:$4 sm:$0xff]  }
  0x6e   : > { %4375 = vsyncadd (%p5297_p11), [#allocation6], 4294948864  ;;  %1292 = vmatprep.subr.bf16.mxu0 %v4022_v0  ;;  %3325 = vmatprep.subr.bf16.mxu1 %v4024_v1  ;;  %v4026_v3 = vld [vmem:[#allocation5 + $0x8] ss:$12 sps:$4 sm:$0xff]   ;;  %v4029_v5 = vld [vmem:[#allocation5 + $0xe0] ss:$12 sps:$4 sm:$0xff]  }
  0x6f   : > { %1293 = vmatpush1.bf16.msra.mxu0 %v4025_v2  ;;  %v4027_v4 = vld [vmem:[#allocation5 + $0x1c] ss:$12 sps:$4 sm:$0xff]   ;;  %3326 = vmatpush3.bf16.msra.mxu1 %v4026_v3  ;;  %v4030_v6 = vld [vmem:[#allocation5 + $0x18] ss:$12 sps:$4 sm:$0xff]   ;;  %v4031_v7 = vld [vmem:[#allocation5 + $0x20] ss:$12 sps:$4 sm:$0xff]  }
  0x70   : > { %1294 = vmatprep.subr.bf16.mxu0 %v4027_v4  ;;  %3327 = vmatprep.subr.bf16.mxu1 %v4029_v5  ;;  %v4032_v8 = vld [vmem:[#allocation5 + $0x34] ss:$12 sps:$4 sm:$0xff]   ;;  %v4034_v9 = vld [vmem:[#allocation5 + $0xf8] ss:$12 sps:$4 sm:$0xff]   ;;  %v4035_v10 = vld [vmem:[#allocation5 + $0x30] ss:$12 sps:$4 sm:$0xff]  }
  0x71   : > { %v4036_v11 = vld [vmem:[#allocation5 + $0x38] ss:$12 sps:$4 sm:$0xff]   ;;  %v4039_v13 = vld [vmem:[#allocation5 + $0x110] ss:$12 sps:$4 sm:$0xff]   ;;  %v4040_v14 = vld [vmem:[#allocation5 + $0x48] ss:$12 sps:$4 sm:$0xff]  }
  0x72   : > { %v4037_v12 = vld [vmem:[#allocation5 + $0x4c] ss:$12 sps:$4 sm:$0xff]   ;;  %v4041_v15 = vld [vmem:[#allocation5 + $0x50] ss:$12 sps:$4 sm:$0xff]   ;;  %v4044_v17 = vld [vmem:[#allocation5 + $0x128] ss:$12 sps:$4 sm:$0xff]  }
  0x73   : > { %1295 = vmatpush1.bf16.msra.mxu0 %v4030_v6  ;;  %3328 = vmatpush3.bf16.msra.mxu1 %v4031_v7  ;;  %v4042_v16 = vld [vmem:[#allocation5 + $0x64] ss:$12 sps:$4 sm:$0xff]   ;;  %v4045_v18 = vld [vmem:[#allocation5 + $0x60] ss:$12 sps:$4 sm:$0xff]   ;;  %v4046_v19 = vld [vmem:[#allocation5 + $0x68] ss:$12 sps:$4 sm:$0xff]  }
  0x74   : > { %1296 = vmatprep.subr.bf16.mxu0 %v4032_v8  ;;  %3329 = vmatprep.subr.bf16.mxu1 %v4034_v9  ;;  %v4047_v20 = vld [vmem:[#allocation5 + $0x7c] ss:$12 sps:$4 sm:$0xff]   ;;  %v4049_v21 = vld [vmem:[#allocation5 + $0x140] ss:$12 sps:$4 sm:$0xff]   ;;  %v4050_v22 = vld [vmem:[#allocation5 + $0x78] ss:$12 sps:$4 sm:$0xff]  }
  0x75   : > { %v4051_v23 = vld [vmem:[#allocation5 + $0x80] ss:$12 sps:$4 sm:$0xff]   ;;  %v4054_v25 = vld [vmem:[#allocation5 + $0x158] ss:$12 sps:$4 sm:$0xff]   ;;  %v4055_v26 = vld [vmem:[#allocation5 + $0x90] ss:$12 sps:$4 sm:$0xff]  }
  0x76   : > { %v4052_v24 = vld [vmem:[#allocation5 + $0x94] ss:$12 sps:$4 sm:$0xff]   ;;  %v4056_v27 = vld [vmem:[#allocation5 + $0x98] ss:$12 sps:$4 sm:$0xff]   ;;  %v4059_v29 = vld [vmem:[#allocation5 + $0x170] ss:$12 sps:$4 sm:$0xff]  }
  0x77   : > { %1297 = vmatpush1.bf16.msra.mxu0 %v4035_v10  ;;  %3330 = vmatpush3.bf16.msra.mxu1 %v4036_v11  ;;  %v4057_v28 = vld [vmem:[#allocation5 + $0xac] ss:$12 sps:$4 sm:$0xff]   ;;  %v4604_v30 = vld [vmem:[%s4593_s8 + $0x10] sm:$0xff]   ;;  %v4608_v34 = vld [vmem:[%s4593_s8] sm:$0xff]   ;;  %s3148_s17 = sshll.u32 %s4589_s10, 5  ;;  %s3324_s11 = sshll.u32 %s4462_s22, 9 }
  0x78   : > { %1298 = vmatprep.subr.bf16.mxu0 %v4037_v12  ;;  %3331 = vmatprep.subr.bf16.mxu1 %v4039_v13  ;;  %v4060_v31 = vld [vmem:[#allocation5 + $0xa8] ss:$12 sps:$4 sm:$0xff]   ;;  %v4061_v32 = vld [vmem:[#allocation5 + $0xb0] ss:$12 sps:$4 sm:$0xff]   ;;  %v4610_v35 = vld [vmem:[#allocation5 + $0xc0] ss:$12 sps:$4 sm:$0xff]   ;;  %s5231_s16 = scalar_lea.hbm %s5280_s5, %s3324_s11 }
  0x79   : > { %v4063_v33 = vld [vmem:[#allocation5 + $0xc4] ss:$12 sps:$4 sm:$0xff]   ;;  %1903 = vmatprep.mubr.bf16.mxu1 %v4604_v30  ;;  %1324 = vmatprep.mubr.bf16.mxu0 %v4604_v30  ;;  %v4067_v36 = vld [vmem:[#allocation5 + $0xdc] ss:$12 sps:$4 sm:$0xff]   ;;  %v4071_v39 = vld [vmem:[#allocation5 + $0xf4] ss:$12 sps:$4 sm:$0xff]  }
  0x7a   : > { %v4614_v37 = vld [vmem:[%s4593_s8 + $0x18] sm:$0xff]   ;;  %v4620_v40 = vld [vmem:[%s4593_s8 + $0x8] sm:$0xff]   ;;  %v4623_v43 = vld [vmem:[%s4593_s8 + $0x20] sm:$0xff]   ;;  %s296_s25 = scalar_lea.vmem [#allocation8], %s3148_s17  ;;  %s3031_s12 = scalar_lea.sflag [#allocation4], %s4589_s10 }
  0x7b   : > { %1299 = vmatpush1.bf16.msra.mxu0 %v4040_v14  ;;  %3332 = vmatpush3.bf16.msra.mxu1 %v4041_v15  ;;  %v4069_v38 = vld [vmem:[#allocation5 + $0xd8] ss:$12 sps:$4 sm:$0xff]   ;;  %v4074_v41 = vld [vmem:[#allocation5 + $0xf0] ss:$12 sps:$4 sm:$0xff]   ;;  %v4077_v44 = vld [vmem:[#allocation5 + $0x108] ss:$12 sps:$4 sm:$0xff]  }
  0x7c   : > { %1300 = vmatprep.subr.bf16.mxu0 %v4042_v16  ;;  %3333 = vmatprep.subr.bf16.mxu1 %v4044_v17  ;;  %v4075_v42 = vld [vmem:[#allocation5 + $0x10c] ss:$12 sps:$4 sm:$0xff]   ;;  %v4079_v45 = vld [vmem:[#allocation5 + $0x124] ss:$12 sps:$4 sm:$0xff]   ;;  %v4096_v46 = vld [vmem:[#allocation5 + $0x248] ss:$12 sps:$4 sm:$0xff]  }
  0x7d   : > { %v4097_v47 = vld [vmem:[#allocation5 + $0x188] ss:$12 sps:$4 sm:$0xff]   ;;  %v4081_v48 = vld [vmem:[#allocation5 + $0x120] ss:$12 sps:$4 sm:$0xff]   ;;  %v4084_v51 = vld [vmem:[#allocation5 + $0x138] ss:$12 sps:$4 sm:$0xff]  }
  0x7e   : > { %v4082_v49 = vld [vmem:[#allocation5 + $0x13c] ss:$12 sps:$4 sm:$0xff]   ;;  %v4086_v52 = vld [vmem:[#allocation5 + $0x154] ss:$12 sps:$4 sm:$0xff]   ;;  %v4089_v56 = vld [vmem:[#allocation5 + $0x16c] ss:$12 sps:$4 sm:$0xff]  }
  0x7f   : > { %1301 = vmatpush1.bf16.msra.mxu0 %v4045_v18  ;;  %3334 = vmatpush3.bf16.msra.mxu1 %v4046_v19  ;;  %v4628_v50 = vld [vmem:[%s4593_s8 + $0x28] sm:$0xff]   ;;  %v4088_v55 = vld [vmem:[#allocation5 + $0x150] ss:$12 sps:$4 sm:$0xff]   ;;  %v4116_v59 = vld [vmem:[#allocation5 + $0x278] ss:$12 sps:$4 sm:$0xff]   ;;  %s3044_s9 = sshll.u32 %s296_s25, 4  ;;  %s5226_s9 = int_to_ptr.vmem [resolvable:$true] %s3044_s9 }
  0x80   : > { %1302 = vmatprep.subr.bf16.mxu0 %v4047_v20  ;;  %3335 = vmatprep.subr.bf16.mxu1 %v4049_v21  ;;  %v4106_v53 = vld [vmem:[#allocation5 + $0x260] ss:$12 sps:$4 sm:$0xff]   ;;  %v4633_v57 = vld [vmem:[%s4593_s8 + $0x30] sm:$0xff]   ;;  %v4117_v60 = vld [vmem:[#allocation5 + $0x1b8] ss:$12 sps:$4 sm:$0xff]   ;;  %s4324_s23 = scalar_lea.vmem %s5226_s9, 512 }
  0x81   : > { %v4107_v54 = vld [vmem:[#allocation5 + $0x1a0] ss:$12 sps:$4 sm:$0xff]   ;;  %v4091_v58 = vld [vmem:[#allocation5 + $0x168] ss:$12 sps:$4 sm:$0xff]   ;;  %v4095_v61 = vld [vmem:[#allocation5 + $0x184] ss:$12 sps:$4 sm:$0xff]   ;;  %p4325_p12 = scmp.ne.s32.totalorder %s5226_s9, %s4324_s23 }
  0x82   : > { %v4637_v62 = vld [vmem:[#allocation5 + $0x180] ss:$12 sps:$4 sm:$0xff]   ;;  %v4640_v63 = vld [vmem:[%s4593_s8 + $0x38] sm:$0xff]   ;;  %v4136_v8 = vld [vmem:[#allocation5 + $0x2a8] ss:$12 sps:$4 sm:$0xff]   ;;  %p5298_p13 = scmp.ne.s32.totalorder %s5289_s30, 0 }
  0x83   : > { %1303 = vmatpush1.bf16.msra.mxu0 %v4050_v22  ;;  %3336 = vmatpush3.bf16.msra.mxu1 %v4051_v23  ;;  %v4642_v0 = vld [vmem:[#allocation5 + $0x19c] ss:$12 sps:$4 sm:$0xff]   ;;  %v4099_v3 = vld [vmem:[#allocation5 + $0x198] ss:$12 sps:$4 sm:$0xff]   ;;  %v4649_v4 = vld [vmem:[#allocation5 + $0x1b4] ss:$12 sps:$4 sm:$0xff]  }
  0x84   : > { %1304 = vmatprep.subr.bf16.mxu0 %v4052_v24  ;;  %3337 = vmatprep.subr.bf16.mxu1 %v4054_v25  ;;  %v4126_v1 = vld [vmem:[#allocation5 + $0x290] ss:$12 sps:$4 sm:$0xff]   ;;  %v4653_v5 = vld [vmem:[%s4593_s8 + $0x40] sm:$0xff]   ;;  %v4655_v7 = vld [vmem:[#allocation5 + $0x1cc] ss:$12 sps:$4 sm:$0xff]   ;;  %p4326_p0 = pnand %p4325_p12, %p5298_p13  ;;  %s4408_s22 = smov [#allocation8]  }
  0x85   : > { %v4127_v2 = vld [vmem:[#allocation5 + $0x1d0] ss:$12 sps:$4 sm:$0xff]   ;;  %v4137_v9 = vld [vmem:[#allocation5 + $0x1e8] ss:$12 sps:$4 sm:$0xff]   ;;  %v4146_v13 = vld [vmem:[#allocation5 + $0x2c0] ss:$12 sps:$4 sm:$0xff]  }
  0x86   : > { %v4103_v6 = vld [vmem:[#allocation5 + $0x1b0] ss:$12 sps:$4 sm:$0xff]   ;;  %v4109_v10 = vld [vmem:[#allocation5 + $0x1c8] ss:$12 sps:$4 sm:$0xff]   ;;  %v4147_v14 = vld [vmem:[#allocation5 + $0x200] ss:$12 sps:$4 sm:$0xff]   ;;  %p4327_p7 = pneg %p4326_p0 }
  0x87   : > { %1305 = vmatpush1.bf16.msra.mxu0 %v4055_v26  ;;  %3338 = vmatpush3.bf16.msra.mxu1 %v4056_v27  ;;  %v4663_v11 = vld [vmem:[#allocation5 + $0x1e4] ss:$12 sps:$4 sm:$0xff]   ;;  %v4666_v12 = vld [vmem:[%s4593_s8 + $0x48] sm:$0xff]   ;;  %v4674_v18 = vld [vmem:[#allocation5 + $0x214] ss:$12 sps:$4 sm:$0xff]   ;;  %s4328_s26 = sshll.u32 %s4408_s22, 4  ;;  %s4329_s26 = int_to_ptr.vmem [resolvable:$false] %s4328_s26 }
  0x88   : > { %1306 = vmatprep.subr.bf16.mxu0 %v4057_v28  ;;  %3339 = vmatprep.subr.bf16.mxu1 %v4059_v29  ;;  %v4113_v15 = vld [vmem:[#allocation5 + $0x1e0] ss:$12 sps:$4 sm:$0xff]   ;;  %v4669_v16 = vld [vmem:[#allocation5 + $0x1fc] ss:$12 sps:$4 sm:$0xff]   ;;  %v4119_v17 = vld [vmem:[#allocation5 + $0x1f8] ss:$12 sps:$4 sm:$0xff]   ;;  %p4331_p8 = scmp.lt.s32.totalorder %s5226_s9, %s4329_s26 }
  0x89   : > { %v4152_v19 = vld [vmem:[#allocation5 + $0x2d8] ss:$12 sps:$4 sm:$0xff]   ;;  %v4154_v21 = vld [vmem:[#allocation5 + $0x2f0] ss:$12 sps:$4 sm:$0xff]   ;;  %v4691_v26 = vld [vmem:[#allocation5 + $0x228] ss:$12 sps:$4 sm:$0xff]  }
  0x8a   : > { %v4153_v20 = vld [vmem:[#allocation5 + $0x218] ss:$12 sps:$4 sm:$0xff]   ;;  %v4155_v22 = vld [vmem:[#allocation5 + $0x230] ss:$12 sps:$4 sm:$0xff]   ;;  %v4696_v28 = vld [vmem:[#allocation5 + $0x308] ss:$12 sps:$4 sm:$0xff]  }
  0x8b   : > { %1307 = vmatpush1.bf16.msra.mxu0 %v4060_v31  ;;  %3340 = vmatpush3.bf16.msra.mxu1 %v4061_v32  ;;  %v4679_v23 = vld [vmem:[%s4593_s8 + $0x50] sm:$0xff]   ;;  %v4684_v25 = vld [vmem:[#allocation5 + $0x22c] ss:$12 sps:$4 sm:$0xff]   ;;  %v4703_v31 = vld [vmem:[#allocation5 + $0x25c] ss:$12 sps:$4 sm:$0xff]   ;;  %s4330_s27 = scalar_lea.vmem %s4329_s26, 1024 }
  0x8c   : > { %1308 = vmatprep.subr.bf16.mxu0 %v4063_v33  ;;  %3437 = vmatprep.subr.bf16.mxu1 %v4096_v46  ;;  %v4681_v24 = vld [vmem:[#allocation5 + $0x210] ss:$12 sps:$4 sm:$0xff]   ;;  %v4139_v32 = vld [vmem:[#allocation5 + $0x258] ss:$12 sps:$4 sm:$0xff]   ;;  %v4709_v33 = vld [vmem:[#allocation5 + $0x274] ss:$12 sps:$4 sm:$0xff]   ;;  %p4332_p9 = scmp.lt.s32.totalorder %s4330_s27, %s4324_s23 }
  0x8d   : > { %v4693_v27 = vld [vmem:[#allocation5 + $0x244] ss:$12 sps:$4 sm:$0xff]   ;;  %v4699_v29 = vld [vmem:[%s4593_s8 + $0x58] sm:$0xff]  }
  0x8e   : > { %1904 = vmatmul.mubr.bf16.vlgmr.msra.gmra.mrb[0].mxu1 %v4608_v34  ;;  %v4740_v46 = vld [vmem:[%s4593_s8 + $0x70] sm:$0xff]   ;;  %p4333_p10 = por %p4332_p9, %p4331_p8 }
  0x8f   : > { %1309 = vmatpush1.bf16.msra.mxu0 %v4610_v35  ;;  %1911 = vmatprep.mubr.bf16.mxu1 %v4614_v37 }
  0x90   : > { %1310 = vmatprep.subr.bf16.mxu0 %v4067_v36  ;;  %3438 = vmatpush3.bf16.msra.mxu1 %v4097_v47  ;;  %v4143_v36 = vld [vmem:[#allocation5 + $0x270] ss:$12 sps:$4 sm:$0xff]   ;;  %p4334_p1 = pnand %p4333_p10, %p4327_p7 }
  0x91   : > { %3439 = vmatprep.subr.bf16.mxu1 %v4106_v53  ;;  %v4162_v47 = vld [vmem:[#allocation5 + $0x2d0] ss:$12 sps:$4 sm:$0xff]   ;;  %v4758_v53 = vld [vmem:[%s4593_s8 + $0x80] sm:$0xff]  }
  0x93   : > { %1311 = vmatpush1.bf16.msra.mxu0 %v4069_v38  ;;  %v4149_v38 = vld [vmem:[#allocation5 + $0x288] ss:$12 sps:$4 sm:$0xff]  }
  0x94   : > { %1312 = vmatprep.subr.bf16.mxu0 %v4071_v39  ;;  %3440 = vmatpush3.bf16.msra.mxu1 %v4107_v54  ;;  %v4722_v39 = vld [vmem:[#allocation5 + $0x2a4] ss:$12 sps:$4 sm:$0xff]   ;;  %v4765_v54 = vld [vmem:[%s4593_s8 + $0x88] sm:$0xff]  }
  0x95   : > { %3441 = vmatprep.subr.bf16.mxu1 %v4116_v59  ;;  %v4188_v59 = vld [vmem:[#allocation5 + $0x368] ss:$12 sps:$4 sm:$0xff]  }
  0x96   : > { %1912 = vmatmul.mubr.bf16.gmra.mrb[4].mxu1 %v4620_v40 }
  0x97   : > { %1313 = vmatpush1.bf16.msra.mxu0 %v4074_v41  ;;  %1919 = vmatprep.mubr.bf16.mxu1 %v4623_v43  ;;  %v4156_v41 = vld [vmem:[#allocation5 + $0x2a0] ss:$12 sps:$4 sm:$0xff]  }
  0x98   : > { %1314 = vmatprep.subr.bf16.mxu0 %v4075_v42  ;;  %3442 = vmatpush3.bf16.msra.mxu1 %v4117_v60  ;;  %v4729_v42 = vld [vmem:[#allocation5 + $0x2bc] ss:$12 sps:$4 sm:$0xff]   ;;  %v4194_v60 = vld [vmem:[#allocation5 + $0x380] ss:$12 sps:$4 sm:$0xff]  }
  0x99   : > { %3443 = vmatprep.subr.bf16.mxu1 %v4126_v1  ;;  %v4197_v1 = vld [vmem:[#allocation5 + $0x3b0] ss:$12 sps:$4 sm:$0xff]  }
  0x9b   : > { %1315 = vmatpush1.bf16.msra.mxu0 %v4077_v44  ;;  %v4159_v44 = vld [vmem:[#allocation5 + $0x2b8] ss:$12 sps:$4 sm:$0xff]  }
  0x9c   : > { %1316 = vmatprep.subr.bf16.mxu0 %v4079_v45  ;;  %3444 = vmatpush3.bf16.msra.mxu1 %v4127_v2  ;;  %v4735_v45 = vld [vmem:[#allocation5 + $0x2d4] ss:$12 sps:$4 sm:$0xff]  }
  0x9d   : > { %3445 = vmatprep.subr.bf16.mxu1 %v4136_v8  ;;  %v4168_v2 = vld [vmem:[#allocation5 + $0x300] ss:$12 sps:$4 sm:$0xff]  }
  0x9e   : > { %1920 = vmatmul.mubr.bf16.gmra.mrb[8].mxu1 %v4604_v30  ;;  %v4178_v8 = vld [vmem:[#allocation5 + $0x334] ss:$12 sps:$4 sm:$0xff]  }
  0x9f   : > { %1317 = vmatpush1.bf16.msra.mxu0 %v4081_v48  ;;  %1927 = vmatprep.mubr.bf16.mxu1 %v4628_v50  ;;  %v4742_v48 = vld [vmem:[#allocation5 + $0x2ec] ss:$12 sps:$4 sm:$0xff]  }
  0xa0   : > { %1318 = vmatprep.subr.bf16.mxu0 %v4082_v49  ;;  %3446 = vmatpush3.bf16.msra.mxu1 %v4137_v9  ;;  %v4165_v49 = vld [vmem:[#allocation5 + $0x2e8] ss:$12 sps:$4 sm:$0xff]   ;;  %v4176_v9 = vld [vmem:[#allocation5 + $0x330] ss:$12 sps:$4 sm:$0xff]  }
  0xa1   : > { %3447 = vmatprep.subr.bf16.mxu1 %v4146_v13  ;;  %v4185_v13 = vld [vmem:[#allocation5 + $0x360] ss:$12 sps:$4 sm:$0xff]  }
  0xa3   : > { %1319 = vmatpush1.bf16.msra.mxu0 %v4084_v51  ;;  %v4170_v51 = vld [vmem:[#allocation5 + $0x304] ss:$12 sps:$4 sm:$0xff]  }
  0xa4   : > { %1320 = vmatprep.subr.bf16.mxu0 %v4086_v52  ;;  %3448 = vmatpush3.bf16.msra.mxu1 %v4147_v14  ;;  %v4751_v52 = vld [vmem:[%s4593_s8 + $0x78] sm:$0xff]  }
  0xa5   : > { %3449 = vmatprep.subr.bf16.mxu1 %v4152_v19  ;;  %v4193_v14 = vld [vmem:[#allocation5 + $0x37c] ss:$12 sps:$4 sm:$0xff]   ;;  %v4203_v19 = vld [vmem:[#allocation5 + $0x3ac] ss:$12 sps:$4 sm:$0xff]  }
  0xa6   : > { %1928 = vmatmul.mubr.bf16.gmra.mrb[12].mxu1 %v4614_v37 }
  0xa7   : > { %1321 = vmatpush1.bf16.msra.mxu0 %v4088_v55  ;;  %1935 = vmatprep.mubr.bf16.mxu1 %v4633_v57  ;;  %v4175_v55 = vld [vmem:[#allocation5 + $0x320] ss:$12 sps:$4 sm:$0xff]  }
  0xa8   : > { %1322 = vmatprep.subr.bf16.mxu0 %v4089_v56  ;;  %3450 = vmatpush3.bf16.msra.mxu1 %v4153_v20  ;;  %v4179_v56 = vld [vmem:[#allocation5 + $0x338] ss:$12 sps:$4 sm:$0xff]  }
  0xa9   : > { %3451 = vmatprep.subr.bf16.mxu1 %v4154_v21  ;;  %v4823_v21 = vld [vmem:[%s4593_s8 + $0x90] sm:$0xff]  }
  0xab   : > { %1323 = vmatpush1.bf16.msra.mxu0 %v4091_v58  ;;  %v4183_v58 = vld [vmem:[#allocation5 + $0x350] ss:$12 sps:$4 sm:$0xff]  }
  0xac   : > { %1485 = vmatprep.subr.bf16.mxu0 %v4095_v61  ;;  %3452 = vmatpush3.bf16.msra.mxu1 %v4155_v22  ;;  %v4196_v61 = vld [vmem:[#allocation5 + $0x398] ss:$12 sps:$4 sm:$0xff]  }
  0xad   : > { %3719 = vmatprep.subr.bf16.mxu1 %v4696_v28 }
  0xae   : > { %1325 = vmatmul.mubr.bf16.vlgmr.msra.gmra.mrb[0].mxu0 %v4608_v34  ;;  %1936 = vmatmul.mubr.bf16.gmra.mrb[16].mxu1 %v4623_v43  ;;  %v4714_v34 = vld [vmem:[%s4593_s8 + $0x60] sm:$0xff]  }
  0xaf   : > { %1486 = vmatpush1.bf16.msra.mxu0 %v4637_v62  ;;  %1334 = vmatprep.mubr.bf16.mxu0 %v4614_v37 }
  0xb0   : > { %1943 = vmatprep.mubr.bf16.mxu1 %v4640_v63  ;;  %1487 = vmatprep.subr.bf16.mxu0 %v4642_v0 }
  0xb3   : > { %1488 = vmatpush1.bf16.msra.mxu0 %v4099_v3  ;;  %v4174_v3 = vld [vmem:[#allocation5 + $0x31c] ss:$12 sps:$4 sm:$0xff]  }
  0xb4   : > { %1489 = vmatprep.subr.bf16.mxu0 %v4649_v4 }
  0xb6   : > { %1335 = vmatmul.mubr.bf16.gmra.mrb[4].mxu0 %v4620_v40  ;;  %1944 = vmatmul.mubr.bf16.gmra.mrb[20].mxu1 %v4628_v50  ;;  %v4727_v40 = vld [vmem:[%s4593_s8 + $0x68] sm:$0xff]  }
  0xb7   : > { %1344 = vmatprep.mubr.bf16.mxu0 %v4623_v43  ;;  %1951 = vmatprep.mubr.bf16.mxu1 %v4653_v5 }
  0xb8   : > { %1490 = vmatpush1.bf16.msra.mxu0 %v4103_v6  ;;  %v4172_v6 = vld [vmem:[#allocation5 + $0x318] ss:$12 sps:$4 sm:$0xff]  }
  0xb9   : > { %1491 = vmatprep.subr.bf16.mxu0 %v4655_v7 }
  0xbc   : > { %1492 = vmatpush1.bf16.msra.mxu0 %v4109_v10  ;;  %v4182_v10 = vld [vmem:[#allocation5 + $0x34c] ss:$12 sps:$4 sm:$0xff]  }
  0xbd   : > { %1493 = vmatprep.subr.bf16.mxu0 %v4663_v11 }
  0xbe   : > { %1345 = vmatmul.mubr.bf16.gmra.mrb[8].mxu0 %v4604_v30  ;;  %1952 = vmatmul.mubr.bf16.gmra.mrb[24].mxu1 %v4633_v57  ;;  %v4133_v30 = vld [vmem:[#allocation5 + $0x240] ss:$12 sps:$4 sm:$0xff]  }
  0xbf   : > { %1354 = vmatprep.mubr.bf16.mxu0 %v4628_v50  ;;  %1959 = vmatprep.mubr.bf16.mxu1 %v4666_v12 }
  0xc0   : > { %1494 = vmatpush1.bf16.msra.mxu0 %v4113_v15  ;;  %v4200_v15 = vld [vmem:[#allocation5 + $0x394] ss:$12 sps:$4 sm:$0xff]  }
  0xc1   : > { %1495 = vmatprep.subr.bf16.mxu0 %v4669_v16 }
  0xc4   : > { %1496 = vmatpush1.bf16.msra.mxu0 %v4119_v17  ;;  %v4198_v17 = vld [vmem:[#allocation5 + $0x390] ss:$12 sps:$4 sm:$0xff]  }
  0xc5   : > { %1497 = vmatprep.subr.bf16.mxu0 %v4674_v18 }
  0xc6   : > { %1355 = vmatmul.mubr.bf16.gmra.mrb[12].mxu0 %v4614_v37  ;;  %1960 = vmatmul.mubr.bf16.gmra.mrb[28].mxu1 %v4640_v63  ;;  %v4716_v37 = vld [vmem:[#allocation5 + $0x28c] ss:$12 sps:$4 sm:$0xff]  }
  0xc7   : > { %1364 = vmatprep.mubr.bf16.mxu0 %v4633_v57  ;;  %1967 = vmatprep.mubr.bf16.mxu1 %v4679_v23 }
  0xc8   : > { %1498 = vmatpush1.bf16.msra.mxu0 %v4681_v24 }
  0xc9   : > { %1499 = vmatprep.subr.bf16.mxu0 %v4684_v25 }
  0xcc   : > { %1500 = vmatpush1.bf16.msra.mxu0 %v4691_v26 }
  0xcd   : > { %1501 = vmatprep.subr.bf16.mxu0 %v4693_v27 }
  0xce   : > { %1365 = vmatmul.mubr.bf16.gmra.mrb[16].mxu0 %v4623_v43  ;;  %1968 = vmatmul.mubr.bf16.gmra.mrb[32].mxu1 %v4653_v5 }
  0xcf   : > { %1374 = vmatprep.mubr.bf16.mxu0 %v4640_v63  ;;  %1975 = vmatprep.mubr.bf16.mxu1 %v4699_v29 }
  0xd0   : > { %1502 = vmatpush1.bf16.msra.mxu0 %v4133_v30 }
  0xd1   : > { %1503 = vmatprep.subr.bf16.mxu0 %v4703_v31 }
  0xd4   : > { %1504 = vmatpush1.bf16.msra.mxu0 %v4139_v32 }
  0xd5   : > { %1505 = vmatprep.subr.bf16.mxu0 %v4709_v33 }
  0xd6   : > { %1375 = vmatmul.mubr.bf16.gmra.mrb[20].mxu0 %v4628_v50  ;;  %1976 = vmatmul.mubr.bf16.gmra.mrb[36].mxu1 %v4666_v12 }
  0xd7   : > { %1384 = vmatprep.mubr.bf16.mxu0 %v4653_v5  ;;  %1983 = vmatprep.mubr.bf16.mxu1 %v4714_v34 }
  0xd8   : > { %1506 = vmatpush1.bf16.msra.mxu0 %v4143_v36 }
  0xd9   : > { %1507 = vmatprep.subr.bf16.mxu0 %v4716_v37 }
  0xdc   : > { %1508 = vmatpush1.bf16.msra.mxu0 %v4149_v38  ;;  %v4834_v38 = vld [vmem:[%s4593_s8 + $0x98] sm:$0xff]  }
  0xdd   : > { %1509 = vmatprep.subr.bf16.mxu0 %v4722_v39 }
  0xde   : > { %1385 = vmatmul.mubr.bf16.gmra.mrb[24].mxu0 %v4633_v57  ;;  %1984 = vmatmul.mubr.bf16.gmra.mrb[40].mxu1 %v4679_v23 }
  0xdf   : > { %1394 = vmatprep.mubr.bf16.mxu0 %v4666_v12  ;;  %1991 = vmatprep.mubr.bf16.mxu1 %v4727_v40 }
  0xe0   : > { %1510 = vmatpush1.bf16.msra.mxu0 %v4156_v41 }
  0xe1   : > { %1511 = vmatprep.subr.bf16.mxu0 %v4729_v42 }
  0xe4   : > { %1512 = vmatpush1.bf16.msra.mxu0 %v4159_v44 }
  0xe5   : > { %1513 = vmatprep.subr.bf16.mxu0 %v4735_v45 }
  0xe6   : > { %1395 = vmatmul.mubr.bf16.gmra.mrb[28].mxu0 %v4640_v63  ;;  %1992 = vmatmul.mubr.bf16.gmra.mrb[44].mxu1 %v4699_v29 }
  0xe7   : > { %1404 = vmatprep.mubr.bf16.mxu0 %v4679_v23  ;;  %1999 = vmatprep.mubr.bf16.mxu1 %v4740_v46 }
  0xe8   : > { %1514 = vmatpush1.bf16.msra.mxu0 %v4162_v47 }
  0xe9   : > { %1515 = vmatprep.subr.bf16.mxu0 %v4742_v48 }
  0xec   : > { %1516 = vmatpush1.bf16.msra.mxu0 %v4165_v49 }
  0xed   : > { %1678 = vmatprep.subr.bf16.mxu0 %v4170_v51 }
  0xee   : > { %1405 = vmatmul.mubr.bf16.gmra.mrb[32].mxu0 %v4653_v5  ;;  %2000 = vmatmul.mubr.bf16.gmra.mrb[48].mxu1 %v4714_v34 }
  0xef   : > { %1414 = vmatprep.mubr.bf16.mxu0 %v4699_v29  ;;  %2007 = vmatprep.mubr.bf16.mxu1 %v4751_v52 }
  0xf6   : > { %1415 = vmatmul.mubr.bf16.gmra.mrb[36].mxu0 %v4666_v12  ;;  %2008 = vmatmul.mubr.bf16.gmra.mrb[52].mxu1 %v4727_v40 }
  0xf7   : > { %1424 = vmatprep.mubr.bf16.mxu0 %v4714_v34  ;;  %2015 = vmatprep.mubr.bf16.mxu1 %v4758_v53 }
  0xfe   : > { %1425 = vmatmul.mubr.bf16.gmra.mrb[40].mxu0 %v4679_v23  ;;  %2016 = vmatmul.mubr.bf16.gmra.mrb[56].mxu1 %v4740_v46 }
  0xff   : > { %1434 = vmatprep.mubr.bf16.mxu0 %v4727_v40  ;;  %2023 = vmatprep.mubr.bf16.mxu1 %v4765_v54 }
 0x106   : > { %1435 = vmatmul.mubr.bf16.gmra.mrb[44].mxu0 %v4699_v29  ;;  %2024 = vmatmul.mubr.bf16.gmra.mrb[60].mxu1 %v4751_v52 }
 0x107   : > { %1444 = vmatprep.mubr.bf16.mxu0 %v4740_v46  ;;  %2064 = vmatprep.mubr.bf16.mxu1 %v4633_v57 }
 0x10e   : > { %1445 = vmatmul.mubr.bf16.gmra.mrb[48].mxu0 %v4714_v34  ;;  %2065 = vmatmul.mubr.bf16.vlgmr.msra.gmra.mrb[64].mxu1 %v4623_v43 }
 0x10f   : > { %1454 = vmatprep.mubr.bf16.mxu0 %v4751_v52  ;;  %2072 = vmatprep.mubr.bf16.mxu1 %v4640_v63 }
 0x110   : > { %3720 = vmatpush3.bf16.msra.mxu1 %v4696_v28 }
 0x111   : > { %3721 = vmatprep.subr.bf16.mxu1 %v4175_v55 }
 0x114   : > { %3722 = vmatpush3.bf16.msra.mxu1 %v4175_v55 }
 0x115   : > { %3723 = vmatprep.subr.bf16.mxu1 %v4179_v56 }
 0x116   : > { %1455 = vmatmul.mubr.bf16.gmra.mrb[52].mxu0 %v4727_v40  ;;  %2073 = vmatmul.mubr.bf16.gmra.mrb[68].mxu1 %v4628_v50 }
 0x117   : > { %1464 = vmatprep.mubr.bf16.mxu0 %v4758_v53  ;;  %2080 = vmatprep.mubr.bf16.mxu1 %v4653_v5 }
 0x118   : > { %3724 = vmatpush3.bf16.msra.mxu1 %v4179_v56  ;;  %v4845_v56 = vld [vmem:[%s4593_s8 + $0xa0] sm:$0xff]  }
 0x119   : > { %3725 = vmatprep.subr.bf16.mxu1 %v4183_v58 }
 0x11c   : > { %3726 = vmatpush3.bf16.msra.mxu1 %v4183_v58 }
 0x11d   : > { %3727 = vmatprep.subr.bf16.mxu1 %v4188_v59 }
 0x11e   : > { %1465 = vmatmul.mubr.bf16.gmra.mrb[56].mxu0 %v4740_v46  ;;  %2081 = vmatmul.mubr.bf16.gmra.mrb[72].mxu1 %v4633_v57 }
 0x11f   : > { %1474 = vmatprep.mubr.bf16.mxu0 %v4765_v54  ;;  %2088 = vmatprep.mubr.bf16.mxu1 %v4666_v12 }
 0x120   : > { %3728 = vmatpush3.bf16.msra.mxu1 %v4188_v59 }
 0x121   : > { %3729 = vmatprep.subr.bf16.mxu1 %v4194_v60 }
 0x124   : > { %3730 = vmatpush3.bf16.msra.mxu1 %v4194_v60 }
 0x125   : > { %3731 = vmatprep.subr.bf16.mxu1 %v4196_v61 }
 0x126   : > { %1475 = vmatmul.mubr.bf16.gmra.mrb[60].mxu0 %v4751_v52  ;;  %2089 = vmatmul.mubr.bf16.gmra.mrb[76].mxu1 %v4640_v63 }
 0x127   : > { %1517 = vmatprep.mubr.bf16.mxu0 %v4633_v57  ;;  %2096 = vmatprep.mubr.bf16.mxu1 %v4679_v23 }
 0x128   : > { %3732 = vmatpush3.bf16.msra.mxu1 %v4196_v61 }
 0x129   : > { %3733 = vmatprep.subr.bf16.mxu1 %v4197_v1 }
 0x12c   : > { %3734 = vmatpush3.bf16.msra.mxu1 %v4197_v1 }
 0x12d   : > { %3573 = vmatprep.subr.bf16.mxu1 %v4610_v35  ;;  %v4180_v35 = vld [vmem:[#allocation5 + $0x348] ss:$12 sps:$4 sm:$0xff]  }
 0x12e   : > { %1518 = vmatmul.mubr.bf16.vlgmr.msra.gmra.mrb[0].mxu0 %v4623_v43  ;;  %2097 = vmatmul.mubr.bf16.gmra.mrb[80].mxu1 %v4653_v5  ;;  %v4187_v43 = vld [vmem:[#allocation5 + $0x364] ss:$12 sps:$4 sm:$0xff]  }
 0x12f   : > { %1679 = vmatpush1.bf16.msra.mxu0 %v4168_v2  ;;  %1527 = vmatprep.mubr.bf16.mxu0 %v4640_v63 }
 0x130   : > { %2104 = vmatprep.mubr.bf16.mxu1 %v4699_v29  ;;  %1680 = vmatprep.subr.bf16.mxu0 %v4174_v3  ;;  %v4856_v3 = vld [vmem:[%s4593_s8 + $0xa8] sm:$0xff]  }
 0x133   : > { %1681 = vmatpush1.bf16.msra.mxu0 %v4172_v6 }
 0x134   : > { %1682 = vmatprep.subr.bf16.mxu0 %v4178_v8 }
 0x136   : > { %1528 = vmatmul.mubr.bf16.gmra.mrb[4].mxu0 %v4628_v50  ;;  %2105 = vmatmul.mubr.bf16.gmra.mrb[84].mxu1 %v4666_v12  ;;  %v4191_v50 = vld [vmem:[#allocation5 + $0x378] ss:$12 sps:$4 sm:$0xff]  }
 0x137   : > { %1537 = vmatprep.mubr.bf16.mxu0 %v4653_v5  ;;  %2112 = vmatprep.mubr.bf16.mxu1 %v4714_v34 }
 0x138   : > { %1683 = vmatpush1.bf16.msra.mxu0 %v4176_v9 }
 0x139   : > { %1684 = vmatprep.subr.bf16.mxu0 %v4182_v10 }
 0x13c   : > { %1685 = vmatpush1.bf16.msra.mxu0 %v4180_v35 }
 0x13d   : > { %1686 = vmatprep.subr.bf16.mxu0 %v4187_v43 }
 0x13e   : > { %1538 = vmatmul.mubr.bf16.gmra.mrb[8].mxu0 %v4633_v57  ;;  %2113 = vmatmul.mubr.bf16.gmra.mrb[88].mxu1 %v4679_v23  ;;  %v4201_v57 = vld [vmem:[#allocation5 + $0x3a8] ss:$12 sps:$4 sm:$0xff]  }
 0x13f   : > { %1547 = vmatprep.mubr.bf16.mxu0 %v4666_v12  ;;  %2120 = vmatprep.mubr.bf16.mxu1 %v4727_v40 }
 0x140   : > { %1687 = vmatpush1.bf16.msra.mxu0 %v4185_v13 }
 0x141   : > { %1688 = vmatprep.subr.bf16.mxu0 %v4193_v14 }
 0x144   : > { %1689 = vmatpush1.bf16.msra.mxu0 %v4191_v50 }
 0x145   : > { %1690 = vmatprep.subr.bf16.mxu0 %v4200_v15 }
 0x146   : > { %1548 = vmatmul.mubr.bf16.gmra.mrb[12].mxu0 %v4640_v63  ;;  %2121 = vmatmul.mubr.bf16.gmra.mrb[92].mxu1 %v4699_v29 }
 0x147   : > { %1557 = vmatprep.mubr.bf16.mxu0 %v4679_v23  ;;  %2128 = vmatprep.mubr.bf16.mxu1 %v4740_v46 }
 0x148   : > { %1691 = vmatpush1.bf16.msra.mxu0 %v4198_v17 }
 0x149   : > { %1692 = vmatprep.subr.bf16.mxu0 %v4203_v19 }
 0x14c   : > { %1693 = vmatpush1.bf16.msra.mxu0 %v4201_v57 }
 0x14d   : > { %3653 = vmatprep.subr.bf16.mxu0 %v4693_v27 }
 0x14e   : > { %1558 = vmatmul.mubr.bf16.gmra.mrb[16].mxu0 %v4653_v5  ;;  %2129 = vmatmul.mubr.bf16.gmra.mrb[96].mxu1 %v4714_v34 }
 0x14f   : > { %1567 = vmatprep.mubr.bf16.mxu0 %v4699_v29  ;;  %2136 = vmatprep.mubr.bf16.mxu1 %v4751_v52 }
 0x156   : > { %1568 = vmatmul.mubr.bf16.gmra.mrb[20].mxu0 %v4666_v12  ;;  %2137 = vmatmul.mubr.bf16.gmra.mrb[100].mxu1 %v4727_v40 }
 0x157   : > { %1577 = vmatprep.mubr.bf16.mxu0 %v4714_v34  ;;  %2144 = vmatprep.mubr.bf16.mxu1 %v4758_v53 }
 0x15e   : > { %1578 = vmatmul.mubr.bf16.gmra.mrb[24].mxu0 %v4679_v23  ;;  %2145 = vmatmul.mubr.bf16.gmra.mrb[104].mxu1 %v4740_v46 }
 0x15f   : > { %1587 = vmatprep.mubr.bf16.mxu0 %v4727_v40  ;;  %2152 = vmatprep.mubr.bf16.mxu1 %v4765_v54 }
 0x161   : > { %v3341_v63 = vpop.f32.mrb[0].mxu1 }
 0x162   : > { %v3342_v20 = vpop.f32.mrb[1].mxu1 }
 0x163   : > { %v4825_v22 = vadd.f32 %v3342_v20, %v3341_v63  ;;  %v3344_v27 = vpop.f32.mrb[2].mxu1 }
 0x164   : > { %v3345_v28 = vpop.f32.mrb[3].mxu1 }
 0x165   : > { %v4828_v30 = vadd.f32 %v3345_v28, %v3344_v27  ;;  %v4230_v28 = vld [vmem:[#allocation5] ss:$12 sps:$4 sm:$0xff]  }
 0x166   : > { %1588 = vmatmul.mubr.bf16.gmra.mrb[28].mxu0 %v4699_v29  ;;  %2153 = vmatmul.mubr.bf16.gmra.mrb[108].mxu1 %v4751_v52 }
 0x167   : > { %1597 = vmatprep.mubr.bf16.mxu0 %v4740_v46  ;;  %2160 = vmatprep.mubr.bf16.mxu1 %v4823_v21 }
 0x169   : > { %v3347_v32 = vpop.f32.mrb[4].mxu1 }
 0x16a   : > { %v3348_v36 = vpop.f32.mrb[5].mxu1 }
 0x16b   : > { %v4836_v41 = vadd.f32 %v3348_v36, %v3347_v32  ;;  %v3350_v44 = vpop.f32.mrb[6].mxu1  ;;  %v4231_v32 = vld [vmem:[#allocation5 + $0xd8] ss:$12 sps:$4 sm:$0xff]  }
 0x16c   : > { %v3351_v47 = vpop.f32.mrb[7].mxu1 }
 0x16d   : > { %v4839_v49 = vadd.f32 %v3351_v47, %v3350_v44 }
 0x16e   : > { %1598 = vmatmul.mubr.bf16.gmra.mrb[32].mxu0 %v4714_v34  ;;  %2161 = vmatmul.mubr.bf16.gmra.mrb[112].mxu1 %v4758_v53 }
 0x16f   : > { %1607 = vmatprep.mubr.bf16.mxu0 %v4751_v52  ;;  %2168 = vmatprep.mubr.bf16.mxu1 %v4834_v38 }
 0x171   : > { %v3353_v51 = vpop.f32.mrb[8].mxu1 }
 0x172   : > { %v3354_v55 = vpop.f32.mrb[9].mxu1 }
 0x173   : > { %v4847_v58 = vadd.f32 %v3354_v55, %v3353_v51  ;;  %v3356_v59 = vpop.f32.mrb[10].mxu1  ;;  %v4232_v55 = vld [vmem:[#allocation5 + $0x18] ss:$12 sps:$4 sm:$0xff]  }
 0x174   : > { %v3357_v60 = vpop.f32.mrb[11].mxu1 }
 0x175   : > { %v4850_v61 = vadd.f32 %v3357_v60, %v3356_v59  ;;  %v4233_v60 = vld [vmem:[#allocation5 + $0xf0] ss:$12 sps:$4 sm:$0xff]  }
 0x176   : > { %1608 = vmatmul.mubr.bf16.gmra.mrb[36].mxu0 %v4727_v40  ;;  %2169 = vmatmul.mubr.bf16.gmra.mrb[116].mxu1 %v4765_v54 }
 0x177   : > { %1617 = vmatprep.mubr.bf16.mxu0 %v4758_v53  ;;  %2176 = vmatprep.mubr.bf16.mxu1 %v4845_v56 }
 0x179   : > { %v3359_v1 = vpop.f32.mrb[12].mxu1 }
 0x17a   : > { %v3360_v2 = vpop.f32.mrb[13].mxu1 }
 0x17b   : > { %v4858_v6 = vadd.f32 %v3360_v2, %v3359_v1  ;;  %v3362_v8 = vpop.f32.mrb[14].mxu1  ;;  %v4234_v2 = vld [vmem:[#allocation5 + $0x30] ss:$12 sps:$4 sm:$0xff]  }
 0x17c   : > { %v3363_v9 = vpop.f32.mrb[15].mxu1 }
 0x17d   : > { %v4861_v10 = vadd.f32 %v3363_v9, %v3362_v8  ;;  %v4235_v8 = vld [vmem:[#allocation5 + $0x108] ss:$12 sps:$4 sm:$0xff]  }
 0x17e   : > { %1618 = vmatmul.mubr.bf16.gmra.mrb[40].mxu0 %v4740_v46  ;;  %2177 = vmatmul.mubr.bf16.gmra.mrb[120].mxu1 %v4823_v21 }
 0x17f   : > { %1627 = vmatprep.mubr.bf16.mxu0 %v4765_v54  ;;  %2184 = vmatprep.mubr.bf16.mxu1 %v4856_v3 }
 0x181   : > { %v3365_v35 = vpop.f32.mrb[16].mxu1 }
 0x182   : > { %v3366_v43 = vpop.f32.mrb[17].mxu1 }
 0x183   : > { %v4866_v13 = vadd.f32 %v3366_v43, %v3365_v35  ;;  %v3368_v14 = vpop.f32.mrb[18].mxu1 }
 0x184   : > { %v3369_v50 = vpop.f32.mrb[19].mxu1 }
 0x185   : > { %v4869_v15 = vadd.f32 %v3369_v50, %v3368_v14  ;;  %v4236_v50 = vld [vmem:[#allocation5 + $0x48] ss:$12 sps:$4 sm:$0xff]  }
 0x186   : > { %1628 = vmatmul.mubr.bf16.gmra.mrb[44].mxu0 %v4751_v52  ;;  %2185 = vmatmul.mubr.bf16.gmra.mrb[124].mxu1 %v4834_v38 }
 0x187   : > { %1637 = vmatprep.mubr.bf16.mxu0 %v4823_v21  ;;  %3735 = vmatprep.mubr.bf16.mxu1 %v4653_v5 }
 0x189   : > { %v3371_v17 = vpop.f32.mrb[20].mxu1 }
 0x18a   : > { %v3372_v19 = vpop.f32.mrb[21].mxu1 }
 0x18b   : > { %v4874_v57 = vadd.f32 %v3372_v19, %v3371_v17  ;;  %v3374_v63 = vpop.f32.mrb[22].mxu1  ;;  %v4237_v19 = vld [vmem:[#allocation5 + $0x120] ss:$12 sps:$4 sm:$0xff]  }
 0x18c   : > { %v3375_v20 = vpop.f32.mrb[23].mxu1 }
 0x18d   : > { %v4877_v27 = vadd.f32 %v3375_v20, %v3374_v63  ;;  %v4238_v20 = vld [vmem:[#allocation5 + $0x60] ss:$12 sps:$4 sm:$0xff]  }
 0x18e   : > { %1638 = vmatmul.mubr.bf16.gmra.mrb[48].mxu0 %v4758_v53  ;;  %3736 = vmatmul.mubr.bf16.vlgmr.msra.gmra.mrb[128].mxu1 %v4666_v12 }
 0x18f   : > { %1647 = vmatprep.mubr.bf16.mxu0 %v4834_v38  ;;  %3739 = vmatprep.mubr.bf16.mxu1 %v4679_v23 }
 0x190   : > { %3574 = vmatpush3.bf16.msra.mxu1 %v4230_v28  ;;  %v4239_v28 = vld [vmem:[#allocation5 + $0x138] ss:$12 sps:$4 sm:$0xff]  }
 0x191   : > { %3575 = vmatprep.subr.bf16.mxu1 %v4231_v32  ;;  %v3377_v36 = vpop.f32.mrb[24].mxu1 }
 0x192   : > { %v3378_v44 = vpop.f32.mrb[25].mxu1 }
 0x193   : > { %v4882_v47 = vadd.f32 %v3378_v44, %v3377_v36  ;;  %v3380_v51 = vpop.f32.mrb[26].mxu1 }
 0x194   : > { %3576 = vmatpush3.bf16.msra.mxu1 %v4232_v55  ;;  %v3381_v59 = vpop.f32.mrb[27].mxu1  ;;  %v4240_v55 = vld [vmem:[#allocation5 + $0x78] ss:$12 sps:$4 sm:$0xff]  }
 0x195   : > { %3577 = vmatprep.subr.bf16.mxu1 %v4233_v60  ;;  %v4885_v1 = vadd.f32 %v3381_v59, %v3380_v51  ;;  %v4241_v60 = vld [vmem:[#allocation5 + $0x150] ss:$12 sps:$4 sm:$0xff]  }
 0x196   : > { %1648 = vmatmul.mubr.bf16.gmra.mrb[52].mxu0 %v4765_v54  ;;  %3740 = vmatmul.mubr.bf16.gmra.mrb[132].mxu1 %v4699_v29 }
 0x197   : > { %1657 = vmatprep.mubr.bf16.mxu0 %v4845_v56  ;;  %3743 = vmatprep.mubr.bf16.mxu1 %v4714_v34 }
 0x198   : > { %3578 = vmatpush3.bf16.msra.mxu1 %v4234_v2 }
 0x199   : > { %3579 = vmatprep.subr.bf16.mxu1 %v4235_v8  ;;  %v3383_v9 = vpop.f32.mrb[28].mxu1  ;;  %v4407_v8 = vmov 0  }
 0x19a   : > { %v3384_v35 = vpop.f32.mrb[29].mxu1 }
 0x19b   : > { %v4890_v43 = vadd.f32 %v3384_v35, %v3383_v9  ;;  %v3386_v14 = vpop.f32.mrb[30].mxu1  ;;  %v4242_v9 = vld [vmem:[#allocation5 + $0x90] ss:$12 sps:$4 sm:$0xff]   ;;  %v4243_v35 = vld [vmem:[#allocation5 + $0x168] ss:$12 sps:$4 sm:$0xff]  }
 0x19c   : > { %3580 = vmatpush3.bf16.msra.mxu1 %v4236_v50  ;;  %v3387_v17 = vpop.f32.mrb[31].mxu1 }
 0x19d   : > { %3581 = vmatprep.subr.bf16.mxu1 %v4237_v19  ;;  %v4893_v63 = vadd.f32 %v3387_v17, %v3386_v14 }
 0x19e   : > { %1658 = vmatmul.mubr.bf16.gmra.mrb[56].mxu0 %v4823_v21  ;;  %3744 = vmatmul.mubr.bf16.gmra.mrb[136].mxu1 %v4727_v40 }
 0x19f   : > { %1667 = vmatprep.mubr.bf16.mxu0 %v4856_v3  ;;  %3747 = vmatprep.mubr.bf16.mxu1 %v4740_v46 }
 0x1a0   : > { %3582 = vmatpush3.bf16.msra.mxu1 %v4238_v20  ;;  %v4244_v20 = vld [vmem:[#allocation5 + $0xa8] ss:$12 sps:$4 sm:$0xff]  }
 0x1a1   : > { %3583 = vmatprep.subr.bf16.mxu1 %v4239_v28  ;;  %v3389_v32 = vpop.f32.mrb[32].mxu1 }
 0x1a2   : > { %v3390_v36 = vpop.f32.mrb[33].mxu1 }
 0x1a3   : > { %v4898_v44 = vadd.f32 %v3390_v36, %v3389_v32  ;;  %v3392_v51 = vpop.f32.mrb[34].mxu1  ;;  %v4245_v36 = vld [vmem:[#allocation5 + $0x184] ss:$12 sps:$4 sm:$0xff]  }
 0x1a4   : > { %3584 = vmatpush3.bf16.msra.mxu1 %v4240_v55  ;;  %v3393_v59 = vpop.f32.mrb[35].mxu1 }
 0x1a5   : > { %3585 = vmatprep.subr.bf16.mxu1 %v4241_v60  ;;  %v4901_v2 = vadd.f32 %v3393_v59, %v3392_v51 }
 0x1a6   : > { %1668 = vmatmul.mubr.bf16.gmra.mrb[60].mxu0 %v4834_v38  ;;  %3748 = vmatmul.mubr.bf16.gmra.mrb[140].mxu1 %v4751_v52 }
 0x1a7   : > { %1710 = vmatprep.mubr.bf16.mxu0 %v4407_v8  ;;  %3751 = vmatprep.mubr.bf16.mxu1 %v4758_v53 }
 0x1a8   : > { %3586 = vmatpush3.bf16.msra.mxu1 %v4242_v9  ;;  %v4929_v9 = vld [vmem:[%s4593_s8 + $0xb0] sm:$0xff]  }
 0x1a9   : > { %3587 = vmatprep.subr.bf16.mxu1 %v4243_v35  ;;  %v3395_v14 = vpop.f32.mrb[36].mxu1 }
 0x1aa   : > { %v3396_v50 = vpop.f32.mrb[37].mxu1 }
 0x1ab   : > { %v4906_v17 = vadd.f32 %v3396_v50, %v3395_v14  ;;  %v3398_v19 = vpop.f32.mrb[38].mxu1 }
 0x1ac   : > { %3588 = vmatpush3.bf16.msra.mxu1 %v4244_v20  ;;  %v3399_v28 = vpop.f32.mrb[39].mxu1 }
 0x1ad   : > { %3767 = vmatprep.subr.bf16.mxu1 %v4637_v62  ;;  %v4910_v32 = vadd.f32 %v3399_v28, %v3398_v19  ;;  %v4246_v28 = vld [vmem:[#allocation5 + $0x180] ss:$12 sps:$4 sm:$0xff]  }
 0x1ae   : > { %1711 = vmatmul.mubr.bf16.vlgmr.msra.gmra.mrb[0].mxu0 %v4653_v5  ;;  %3752 = vmatmul.mubr.bf16.gmra.mrb[144].mxu1 %v4765_v54 }
 0x1af   : > { %3654 = vmatpush3.bf16.msra.mxu0 %v4245_v36  ;;  %1720 = vmatprep.mubr.bf16.mxu0 %v4407_v8 }
 0x1b0   : > { %3755 = vmatprep.mubr.bf16.mxu1 %v4823_v21  ;;  %3655 = vmatprep.subr.bf16.mxu0 %v4703_v31 }
 0x1b1   : > { %v3401_v51 = vpop.f32.mrb[40].mxu1 }
 0x1b2   : > { %v3402_v55 = vpop.f32.mrb[41].mxu1 }
 0x1b3   : > { %3656 = vmatpush3.bf16.msra.mxu0 %v4642_v0  ;;  %v4917_v62 = vadd.f32 %v3402_v55, %v3401_v51  ;;  %v3404_v5 = vpop.f32.mrb[42].mxu1  ;;  %v4248_v55 = vld [vmem:[#allocation5 + $0x1b0] ss:$12 sps:$4 sm:$0xff]  }
 0x1b4   : > { %3657 = vmatprep.subr.bf16.mxu0 %v4709_v33  ;;  %v3405_v59 = vpop.f32.mrb[43].mxu1 }
 0x1b5   : > { %v4921_v60 = vadd.f32 %v3405_v59, %v3404_v5  ;;  %v4249_v59 = vld [vmem:[#allocation5 + $0x1c8] ss:$12 sps:$4 sm:$0xff]  }
 0x1b6   : > { %1721 = vmatmul.mubr.bf16.gmra.mrb[4].mxu0 %v4666_v12  ;;  %3756 = vmatmul.mubr.bf16.gmra.mrb[148].mxu1 %v4834_v38 }
 0x1b7   : > { %1730 = vmatprep.mubr.bf16.mxu0 %v4407_v8  ;;  %3759 = vmatprep.mubr.bf16.mxu1 %v4845_v56 }
 0x1b8   : > { %3658 = vmatpush3.bf16.msra.mxu0 %v4649_v4 }
 0x1b9   : > { %3659 = vmatprep.subr.bf16.mxu0 %v4716_v37  ;;  %v3407_v0 = vpop.f32.mrb[44].mxu1  ;;  %v4944_v37 = vld [vmem:[%s4593_s8 + $0xb8] sm:$0xff]  }
 0x1ba   : > { %v3408_v31 = vpop.f32.mrb[45].mxu1 }
 0x1bb   : > { %v4931_v33 = vadd.f32 %v3408_v31, %v3407_v0  ;;  %v3410_v12 = vpop.f32.mrb[46].mxu1 }
 0x1bc   : > { %3660 = vmatpush3.bf16.msra.mxu0 %v4655_v7  ;;  %v3411_v35 = vpop.f32.mrb[47].mxu1 }
 0x1bd   : > { %3661 = vmatprep.subr.bf16.mxu0 %v4722_v39  ;;  %v4936_v14 = vadd.f32 %v3411_v35, %v3410_v12 }
 0x1be   : > { %1731 = vmatmul.mubr.bf16.gmra.mrb[8].mxu0 %v4679_v23  ;;  %3760 = vmatmul.mubr.bf16.gmra.mrb[152].mxu1 %v4856_v3 }
 0x1bf   : > { %1740 = vmatprep.mubr.bf16.mxu0 %v4407_v8  ;;  %3763 = vmatprep.mubr.bf16.mxu1 %v4929_v9 }
 0x1c0   : > { %3662 = vmatpush3.bf16.msra.mxu0 %v4663_v11 }
 0x1c1   : > { %3663 = vmatprep.subr.bf16.mxu0 %v4729_v42  ;;  %v3413_v4 = vpop.f32.mrb[48].mxu1 }
 0x1c2   : > { %v3414_v7 = vpop.f32.mrb[49].mxu1 }
 0x1c3   : > { %v4946_v50 = vadd.f32 %v3414_v7, %v3413_v4  ;;  %v3416_v39 = vpop.f32.mrb[50].mxu1  ;;  %v4250_v4 = vld [vmem:[#allocation5 + $0x1e0] ss:$12 sps:$4 sm:$0xff]  }
 0x1c4   : > { %3664 = vmatpush3.bf16.msra.mxu0 %v4669_v16  ;;  %v3417_v23 = vpop.f32.mrb[51].mxu1 }
 0x1c5   : > { %3665 = vmatprep.subr.bf16.mxu0 %v4735_v45  ;;  %v4951_v19 = vadd.f32 %v3417_v23, %v3416_v39  ;;  %v4251_v39 = vld [vmem:[#allocation5 + $0x1f8] ss:$12 sps:$4 sm:$0xff]  }
 0x1c6   : > { %1741 = vmatmul.mubr.bf16.gmra.mrb[12].mxu0 %v4699_v29  ;;  %3764 = vmatmul.mubr.bf16.gmra.mrb[156].mxu1 %v4944_v37 }
 0x1c7   : > { %1750 = vmatprep.mubr.bf16.mxu0 %v4407_v8  ;;  %2470 = vmatprep.mubr.bf16.mxu1 %v4823_v21 }
 0x1c8   : > { %3666 = vmatpush3.bf16.msra.mxu0 %v4674_v18  ;;  %v4247_v18 = vld [vmem:[#allocation5 + $0x198] ss:$12 sps:$4 sm:$0xff]  }
 0x1c9   : > { %3667 = vmatprep.subr.bf16.mxu0 %v4742_v48  ;;  %v3419_v11 = vpop.f32.mrb[52].mxu1 }
 0x1ca   : > { %v3420_v42 = vpop.f32.mrb[53].mxu1 }
 0x1cb   : > { %v4958_v16 = vadd.f32 %v3420_v42, %v3419_v11  ;;  %v3422_v20 = vpop.f32.mrb[54].mxu1 }
 0x1cc   : > { %3668 = vmatpush3.bf16.msra.mxu0 %v4684_v25  ;;  %v3423_v29 = vpop.f32.mrb[55].mxu1 }
 0x1cd   : > { %v4962_v45 = vadd.f32 %v3423_v29, %v3422_v20 }
 0x1ce   : > { %1751 = vmatmul.mubr.bf16.gmra.mrb[16].mxu0 %v4714_v34  ;;  %2471 = vmatmul.mubr.bf16.vlgmr.msra.gmra.mrb[160].mxu1 %v4758_v53 }
 0x1cf   : > { %1760 = vmatprep.mubr.bf16.mxu0 %v4407_v8  ;;  %3768 = vmatpush3.bf16.msra.mxu1 %v4246_v28 }
 0x1d0   : > { %2478 = vmatprep.mubr.bf16.mxu1 %v4834_v38  ;;  %3769 = vmatprep.subr.bf16.mxu1 %v4247_v18 }
 0x1d1   : > { %v3425_v48 = vpop.f32.mrb[56].mxu1 }
 0x1d2   : > { %v3426_v36 = vpop.f32.mrb[57].mxu1 }
 0x1d3   : > { %3770 = vmatpush3.bf16.msra.mxu1 %v4247_v18  ;;  %v4967_v51 = vadd.f32 %v3426_v36, %v3425_v48  ;;  %v3428_v25 = vpop.f32.mrb[58].mxu1 }
 0x1d4   : > { %3771 = vmatprep.subr.bf16.mxu1 %v4248_v55  ;;  %v3429_v34 = vpop.f32.mrb[59].mxu1 }
 0x1d5   : > { %v4970_v5 = vadd.f32 %v3429_v34, %v3428_v25 }
 0x1d6   : > { %1761 = vmatmul.mubr.bf16.gmra.mrb[20].mxu0 %v4727_v40  ;;  %2479 = vmatmul.mubr.bf16.gmra.mrb[164].mxu1 %v4765_v54 }
 0x1d7   : > { %1770 = vmatprep.mubr.bf16.mxu0 %v4407_v8  ;;  %3772 = vmatpush3.bf16.msra.mxu1 %v4248_v55  ;;  %v4252_v55 = vld [vmem:[#allocation5 + $0xc4] ss:$12 sps:$4 sm:$0xff]  }
 0x1d8   : > { %2486 = vmatprep.mubr.bf16.mxu1 %v4845_v56  ;;  %3773 = vmatprep.subr.bf16.mxu1 %v4249_v59 }
 0x1d9   : > { %v3431_v0 = vpop.f32.mrb[60].mxu1 }
 0x1da   : > { %v3432_v31 = vpop.f32.mrb[61].mxu1 }
 0x1db   : > { %3774 = vmatpush3.bf16.msra.mxu1 %v4249_v59  ;;  %v4975_v12 = vadd.f32 %v3432_v31, %v3431_v0  ;;  %v3434_v35 = vpop.f32.mrb[62].mxu1 }
 0x1dc   : > { %3775 = vmatprep.subr.bf16.mxu1 %v4250_v4  ;;  %v3435_v40 = vpop.f32.mrb[63].mxu1 }
 0x1dd   : > { %v4978_v7 = vadd.f32 %v3435_v40, %v3434_v35  ;;  %v4255_v40 = vld [vmem:[#allocation5 + $0x1c] ss:$12 sps:$4 sm:$0xff]  }
 0x1de   : > { %1771 = vmatmul.mubr.bf16.gmra.mrb[24].mxu0 %v4740_v46  ;;  %2487 = vmatmul.mubr.bf16.gmra.mrb[168].mxu1 %v4823_v21 }
 0x1df   : > { %1780 = vmatprep.mubr.bf16.mxu0 %v4407_v8  ;;  %3776 = vmatpush3.bf16.msra.mxu1 %v4250_v4 }
 0x1e0   : > { %2494 = vmatprep.mubr.bf16.mxu1 %v4856_v3  ;;  %3777 = vmatprep.subr.bf16.mxu1 %v4251_v39 }
 0x1e1   : > { %v3453_v23 = vpop.f32.mrb[64].mxu1 }
 0x1e2   : > { %v3454_v11 = vpop.f32.mrb[65].mxu1 }
 0x1e3   : > { %v3455_v42 = vadd.f32 %v3454_v11, %v3453_v23  ;;  %v3456_v20 = vpop.f32.mrb[66].mxu1  ;;  %3778 = vmatpush3.bf16.msra.mxu1 %v4251_v39  ;;  %v4256_v39 = vld [vmem:[#allocation5 + $0xf4] ss:$12 sps:$4 sm:$0xff]  }
 0x1e4   : > { %v3457_v29 = vpop.f32.mrb[67].mxu1  ;;  %3779 = vmatprep.subr.bf16.mxu1 %v4681_v24 }
 0x1e5   : > { %v3458_v46 = vadd.f32 %v3457_v29, %v3456_v20  ;;  %v4986_v28 = vadd.f32 %v3455_v42, %v4825_v22  ;;  %v4258_v20 = vld [vmem:[#allocation5 + $0x10c] ss:$12 sps:$4 sm:$0xff]  }
 0x1e6   : > { %1781 = vmatmul.mubr.bf16.gmra.mrb[28].mxu0 %v4751_v52  ;;  %2495 = vmatmul.mubr.bf16.gmra.mrb[172].mxu1 %v4834_v38 }
 0x1e7   : > { %1790 = vmatprep.mubr.bf16.mxu0 %v4407_v8  ;;  %3780 = vmatpush3.bf16.msra.mxu1 %v4681_v24  ;;  %v4993_v18 = vadd.f32 %v3458_v46, %v4828_v30  ;;  %v4253_v30 = vld [vmem:[#allocation5 + $0x4] ss:$12 sps:$4 sm:$0xff]  }
 0x1e8   : > { %3783 = vmatprep.mubr.bf16.mxu1 %v4845_v56  ;;  %3781 = vmatprep.subr.bf16.mxu1 %v4691_v26 }
 0x1e9   : > { %v3459_v48 = vpop.f32.mrb[68].mxu1 }
 0x1ea   : > { %v3460_v36 = vpop.f32.mrb[69].mxu1 }
 0x1eb   : > { %v3461_v25 = vadd.f32 %v3460_v36, %v3459_v48  ;;  %v3462_v52 = vpop.f32.mrb[70].mxu1  ;;  %3782 = vmatpush3.bf16.msra.mxu1 %v4691_v26  ;;  %v4254_v26 = vld [vmem:[#allocation5 + $0xdc] ss:$12 sps:$4 sm:$0xff]  }
 0x1ec   : > { %v3463_v22 = vpop.f32.mrb[71].mxu1  ;;  %3625 = vmatprep.subr.bf16.mxu1 %v4252_v55 }
 0x1ed   : > { %v3464_v34 = vadd.f32 %v3463_v22, %v3462_v52  ;;  %v4999_v24 = vadd.f32 %v3461_v25, %v4836_v41  ;;  %v4259_v25 = vld [vmem:[#allocation5 + $0x4c] ss:$12 sps:$4 sm:$0xff]   ;;  %v4260_v52 = vld [vmem:[#allocation5 + $0x124] ss:$12 sps:$4 sm:$0xff]  }
 0x1ee   : > { %1791 = vmatmul.mubr.bf16.gmra.mrb[32].mxu0 %v4758_v53  ;;  %3784 = vmatmul.mubr.bf16.vlgmr.msra.gmra.mrb[176].mxu1 %v4856_v3 }
 0x1ef   : > { %1800 = vmatprep.mubr.bf16.mxu0 %v4407_v8  ;;  %3787 = vmatprep.mubr.bf16.mxu1 %v4929_v9  ;;  %v5005_v59 = vadd.f32 %v3464_v34, %v4839_v49  ;;  %v4257_v49 = vld [vmem:[#allocation5 + $0x34] ss:$12 sps:$4 sm:$0xff]  }
 0x1f0   : > { %3626 = vmatpush3.bf16.msra.mxu1 %v4253_v30  ;;  %v4262_v30 = vld [vmem:[#allocation5 + $0x13c] ss:$12 sps:$4 sm:$0xff]  }
 0x1f1   : > { %3627 = vmatprep.subr.bf16.mxu1 %v4254_v26  ;;  %v3465_v0 = vpop.f32.mrb[72].mxu1 }
 0x1f2   : > { %v3466_v31 = vpop.f32.mrb[73].mxu1 }
 0x1f3   : > { %v3467_v35 = vadd.f32 %v3466_v31, %v3465_v0  ;;  %v3468_v4 = vpop.f32.mrb[74].mxu1 }
 0x1f4   : > { %3628 = vmatpush3.bf16.msra.mxu1 %v4255_v40  ;;  %v3469_v41 = vpop.f32.mrb[75].mxu1 }
 0x1f5   : > { %3629 = vmatprep.subr.bf16.mxu1 %v4256_v39  ;;  %v3470_v23 = vadd.f32 %v3469_v41, %v3468_v4  ;;  %v5009_v11 = vadd.f32 %v3467_v35, %v4847_v58  ;;  %v4263_v4 = vld [vmem:[#allocation5 + $0x7c] ss:$12 sps:$4 sm:$0xff]   ;;  %v4265_v39 = vld [vmem:[#allocation5 + $0x94] ss:$12 sps:$4 sm:$0xff]  }
 0x1f6   : > { %1801 = vmatmul.mubr.bf16.gmra.mrb[36].mxu0 %v4765_v54  ;;  %3788 = vmatmul.mubr.bf16.gmra.mrb[180].mxu1 %v4944_v37 }
 0x1f7   : > { %1810 = vmatprep.mubr.bf16.mxu0 %v4407_v8  ;;  %2608 = vmatprep.mubr.bf16.mxu1 %v4823_v21  ;;  %v5015_v42 = vadd.f32 %v3470_v23, %v4850_v61  ;;  %v4261_v61 = vld [vmem:[#allocation5 + $0x64] ss:$12 sps:$4 sm:$0xff]  }
 0x1f8   : > { %3630 = vmatpush3.bf16.msra.mxu1 %v4257_v49  ;;  %v4266_v49 = vld [vmem:[#allocation5 + $0x16c] ss:$12 sps:$4 sm:$0xff]  }
 0x1f9   : > { %3631 = vmatprep.subr.bf16.mxu1 %v4258_v20  ;;  %v3471_v29 = vpop.f32.mrb[76].mxu1 }
 0x1fa   : > { %v3472_v46 = vpop.f32.mrb[77].mxu1 }
 0x1fb   : > { %v3473_v48 = vadd.f32 %v3472_v46, %v3471_v29  ;;  %v3474_v36 = vpop.f32.mrb[78].mxu1 }
 0x1fc   : > { %3632 = vmatpush3.bf16.msra.mxu1 %v4259_v25  ;;  %v3475_v58 = vpop.f32.mrb[79].mxu1 }
 0x1fd   : > { %3633 = vmatprep.subr.bf16.mxu1 %v4260_v52  ;;  %v3476_v22 = vadd.f32 %v3475_v58, %v3474_v36  ;;  %v5019_v55 = vadd.f32 %v3473_v48, %v4858_v6  ;;  %v4267_v36 = vld [vmem:[#allocation5 + $0xac] ss:$12 sps:$4 sm:$0xff]  }
 0x1fe   : > { %1811 = vmatmul.mubr.bf16.gmra.mrb[40].mxu0 %v4823_v21  ;;  %v4264_v21 = vld [vmem:[#allocation5 + $0x154] ss:$12 sps:$4 sm:$0xff]  }
 0x1ff   : > { %1820 = vmatprep.mubr.bf16.mxu0 %v4407_v8  ;;  %v5023_v34 = vadd.f32 %v3476_v22, %v4861_v10  ;;  %v4206_v10 = vld [vmem:[#allocation7 + $0x80] sm:$0xff]  }
 0x200   : > { %3634 = vmatpush3.bf16.msra.mxu1 %v4261_v61  ;;  %3791 = vmatprep.subr.bf16.mxu0 %v4206_v10 }
 0x201   : > { %3635 = vmatprep.subr.bf16.mxu1 %v4262_v30  ;;  %v3477_v26 = vpop.f32.mrb[80].mxu1 }
 0x202   : > { %v3478_v0 = vpop.f32.mrb[81].mxu1 }
 0x203   : > { %v3479_v31 = vadd.f32 %v3478_v0, %v3477_v26  ;;  %v3480_v35 = vpop.f32.mrb[82].mxu1 }
 0x204   : > { %3636 = vmatpush3.bf16.msra.mxu1 %v4263_v4  ;;  %v3481_v40 = vpop.f32.mrb[83].mxu1 }
 0x205   : > { %3637 = vmatprep.subr.bf16.mxu1 %v4264_v21  ;;  %v3482_v6 = vadd.f32 %v3481_v40, %v3480_v35  ;;  %v5027_v41 = vadd.f32 %v3479_v31, %v4866_v13 }
 0x206   : > { %1821 = vmatmul.mubr.bf16.gmra.mrb[44].mxu0 %v4834_v38 }
 0x207   : > { %1830 = vmatprep.mubr.bf16.mxu0 %v4407_v8  ;;  %v5031_v23 = vadd.f32 %v3482_v6, %v4869_v15 }
 0x208   : > { %3638 = vmatpush3.bf16.msra.mxu1 %v4265_v39 }
 0x209   : > { %3639 = vmatprep.subr.bf16.mxu1 %v4266_v49  ;;  %v3483_v20 = vpop.f32.mrb[84].mxu1 }
 0x20a   : > { %v3484_v29 = vpop.f32.mrb[85].mxu1 }
 0x20b   : > { %v3485_v46 = vadd.f32 %v3484_v29, %v3483_v20  ;;  %v3486_v48 = vpop.f32.mrb[86].mxu1 }
 0x20c   : > { %3640 = vmatpush3.bf16.msra.mxu1 %v4267_v36  ;;  %v3487_v25 = vpop.f32.mrb[87].mxu1  ;;  %v4207_v36 = vld [vmem:[#allocation7 + $0x88] sm:$0xff]  }
 0x20d   : > { %v3488_v13 = vadd.f32 %v3487_v25, %v3486_v48  ;;  %v5035_v58 = vadd.f32 %v3485_v46, %v4874_v57 }
 0x20e   : > { %1831 = vmatmul.mubr.bf16.gmra.mrb[48].mxu0 %v4845_v56 }
 0x20f   : > { %1840 = vmatprep.mubr.bf16.mxu0 %v4407_v8  ;;  %2609 = vmatmul.mubr.bf16.vlgmr.msra.gmra.mrb[184].mxu1 %v4758_v53  ;;  %v5041_v15 = vadd.f32 %v3488_v13, %v4877_v27 }
 0x210   : > { %2616 = vmatprep.mubr.bf16.mxu1 %v4834_v38 }
 0x211   : > { %v3489_v52 = vpop.f32.mrb[88].mxu1 }
 0x212   : > { %v3490_v22 = vpop.f32.mrb[89].mxu1 }
 0x213   : > { %v3491_v61 = vadd.f32 %v3490_v22, %v3489_v52  ;;  %v3492_v30 = vpop.f32.mrb[90].mxu1 }
 0x214   : > { %v3493_v26 = vpop.f32.mrb[91].mxu1 }
 0x215   : > { %v3494_v0 = vadd.f32 %v3493_v26, %v3492_v30  ;;  %v5045_v57 = vadd.f32 %v3491_v61, %v4882_v47  ;;  %v4209_v26 = vld [vmem:[#allocation7 + $0x98] sm:$0xff]  }
 0x216   : > { %1841 = vmatmul.mubr.bf16.gmra.mrb[52].mxu0 %v4856_v3 }
 0x217   : > { %1850 = vmatprep.mubr.bf16.mxu0 %v4407_v8  ;;  %2617 = vmatmul.mubr.bf16.gmra.mrb[188].mxu1 %v4765_v54  ;;  %v5050_v53 = vadd.f32 %v3494_v0, %v4885_v1 }
 0x219   : > { %v3495_v38 = vpop.f32.mrb[92].mxu1 }
 0x21a   : > { %v3496_v27 = vpop.f32.mrb[93].mxu1 }
 0x21b   : > { %v3497_v31 = vadd.f32 %v3496_v27, %v3495_v38  ;;  %v3498_v35 = vpop.f32.mrb[94].mxu1 }
 0x21c   : > { %v3499_v4 = vpop.f32.mrb[95].mxu1 }
 0x21d   : > { %v3500_v40 = vadd.f32 %v3499_v4, %v3498_v35  ;;  %v5054_v21 = vadd.f32 %v3497_v31, %v4890_v43  ;;  %v4211_v35 = vld [vmem:[#allocation7 + $0xa8] sm:$0xff]  }
 0x21e   : > { %1851 = vmatmul.mubr.bf16.gmra.mrb[56].mxu0 %v4929_v9 }
 0x21f   : > { %1860 = vmatprep.mubr.bf16.mxu0 %v4407_v8  ;;  %v5058_v47 = vadd.f32 %v3500_v40, %v4893_v63 }
 0x221   : > { %v3501_v54 = vpop.f32.mrb[96].mxu1 }
 0x222   : > { %v3502_v6 = vpop.f32.mrb[97].mxu1 }
 0x223   : > { %v3503_v1 = vadd.f32 %v3502_v6, %v3501_v54  ;;  %v3504_v39 = vpop.f32.mrb[98].mxu1 }
 0x224   : > { %v3505_v49 = vpop.f32.mrb[99].mxu1 }
 0x225   : > { %v3506_v20 = vadd.f32 %v3505_v49, %v3504_v39  ;;  %v5062_v29 = vadd.f32 %v3503_v1, %v4898_v44  ;;  %v4213_v49 = vld [vmem:[#allocation7 + $0xb8] sm:$0xff]  }
 0x226   : > { %1861 = vmatmul.mubr.bf16.gmra.mrb[60].mxu0 %v4944_v37 }
 0x227   : > { %2657 = vmatprep.mubr.bf16.mxu0 %v4929_v9  ;;  %v5066_v43 = vadd.f32 %v3506_v20, %v4901_v2  ;;  %v4208_v2 = vld [vmem:[#allocation7 + $0x90] sm:$0xff]  }
 0x229   : > { %v3507_v8 = vpop.f32.mrb[100].mxu1 }
 0x22a   : > { %v3508_v46 = vpop.f32.mrb[101].mxu1 }
 0x22b   : > { %v3509_v63 = vadd.f32 %v3508_v46, %v3507_v8  ;;  %v3510_v48 = vpop.f32.mrb[102].mxu1 }
 0x22c   : > { %v3511_v25 = vpop.f32.mrb[103].mxu1 }
 0x22d   : > { %v3512_v13 = vadd.f32 %v3511_v25, %v3510_v48  ;;  %v5070_v52 = vadd.f32 %v3509_v63, %v4906_v17 }
 0x22e   : > { %2658 = vmatmul.mubr.bf16.vlgmr.msra.gmra.mrb[64].mxu0 %v4845_v56 }
 0x22f   : > { %2665 = vmatprep.mubr.bf16.mxu0 %v4944_v37  ;;  %3792 = vmatpush3.bf16.msra.mxu0 %v4206_v10  ;;  %v5074_v44 = vadd.f32 %v3512_v13, %v4910_v32  ;;  %v4210_v37 = vld [vmem:[#allocation7 + $0xa0] sm:$0xff]  }
 0x230   : > { %3793 = vmatprep.subr.bf16.mxu0 %v4207_v36 }
 0x231   : > { %v3513_v9 = vpop.f32.mrb[104].mxu1 }
 0x232   : > { %v3514_v22 = vpop.f32.mrb[105].mxu1 }
 0x233   : > { %3794 = vmatpush3.bf16.msra.mxu0 %v4207_v36  ;;  %v3515_v61 = vadd.f32 %v3514_v22, %v3513_v9  ;;  %v3516_v30 = vpop.f32.mrb[106].mxu1 }
 0x234   : > { %3795 = vmatprep.subr.bf16.mxu0 %v4208_v2  ;;  %v3517_v0 = vpop.f32.mrb[107].mxu1 }
 0x235   : > { %v3518_v56 = vadd.f32 %v3517_v0, %v3516_v30  ;;  %v5078_v17 = vadd.f32 %v3515_v61, %v4917_v62 }
 0x236   : > { %2666 = vmatmul.mubr.bf16.gmra.mrb[68].mxu0 %v4856_v3 }
 0x237   : > { %3796 = vmatpush3.bf16.msra.mxu0 %v4208_v2  ;;  %v5081_v32 = vadd.f32 %v3518_v56, %v4921_v60  ;;  %v4212_v60 = vld [vmem:[#allocation7 + $0xb0] sm:$0xff]  }
 0x238   : > { %3797 = vmatprep.subr.bf16.mxu0 %v4209_v26 }
 0x239   : > { %v3519_v10 = vpop.f32.mrb[108].mxu1 }
 0x23a   : > { %v3520_v38 = vpop.f32.mrb[109].mxu1 }
 0x23b   : > { %3798 = vmatpush3.bf16.msra.mxu0 %v4209_v26  ;;  %v3521_v27 = vadd.f32 %v3520_v38, %v3519_v10  ;;  %v3522_v31 = vpop.f32.mrb[110].mxu1 }
 0x23c   : > { %3799 = vmatprep.subr.bf16.mxu0 %v4210_v37  ;;  %v3523_v4 = vpop.f32.mrb[111].mxu1 }
 0x23d   : > { %v3524_v40 = vadd.f32 %v3523_v4, %v3522_v31  ;;  %v5084_v3 = vadd.f32 %v3521_v27, %v4931_v33 }
 0x23f   : > { %3800 = vmatpush3.bf16.msra.mxu0 %v4210_v37  ;;  %v5087_v62 = vadd.f32 %v3524_v40, %v4936_v14 }
 0x240   : > { %3801 = vmatprep.subr.bf16.mxu0 %v4211_v35 }
 0x241   : > { %v3525_v54 = vpop.f32.mrb[112].mxu1 }
 0x242   : > { %v3526_v6 = vpop.f32.mrb[113].mxu1 }
 0x243   : > { %3802 = vmatpush3.bf16.msra.mxu0 %v4211_v35  ;;  %v3527_v1 = vadd.f32 %v3526_v6, %v3525_v54  ;;  %v3528_v39 = vpop.f32.mrb[114].mxu1 }
 0x244   : > { %3803 = vmatprep.subr.bf16.mxu0 %v4212_v60  ;;  %v3529_v20 = vpop.f32.mrb[115].mxu1 }
 0x245   : > { %v3530_v8 = vadd.f32 %v3529_v20, %v3528_v39  ;;  %v5090_v46 = vadd.f32 %v3527_v1, %v4946_v50 }
 0x247   : > { %3804 = vmatpush3.bf16.msra.mxu0 %v4212_v60  ;;  %v5093_v33 = vadd.f32 %v3530_v8, %v4951_v19 }
 0x248   : > { %3805 = vmatprep.subr.bf16.mxu0 %v4213_v49 }
 0x249   : > { %v3531_v14 = vpop.f32.mrb[116].mxu1 }
 0x24a   : > { %v3532_v63 = vpop.f32.mrb[117].mxu1 }
 0x24b   : > { %3806 = vmatpush3.bf16.msra.mxu0 %v4213_v49  ;;  %v3533_v48 = vadd.f32 %v3532_v63, %v3531_v14  ;;  %v3534_v36 = vpop.f32.mrb[118].mxu1 }
 0x24c   : > { %v3535_v25 = vpop.f32.mrb[119].mxu1 }
 0x24d   : > { %v3536_v13 = vadd.f32 %v3535_v25, %v3534_v36  ;;  %v5096_v2 = vadd.f32 %v3533_v48, %v4958_v16 }
 0x24f   : > { %v5099_v9 = vadd.f32 %v3536_v13, %v4962_v45  ;;  %v4215_v13 = vld [vmem:[#allocation7] sm:$0xff]  }
 0x251   : > { %v3537_v50 = vpop.f32.mrb[120].mxu1 }
 0x252   : > { %v3538_v22 = vpop.f32.mrb[121].mxu1 }
 0x253   : > { %v3539_v61 = vadd.f32 %v3538_v22, %v3537_v50  ;;  %v3540_v30 = vpop.f32.mrb[122].mxu1 }
 0x254   : > { %v3541_v19 = vpop.f32.mrb[123].mxu1 }
 0x255   : > { %v3542_v26 = vadd.f32 %v3541_v19, %v3540_v30  ;;  %v5102_v0 = vadd.f32 %v3539_v61, %v4967_v51  ;;  %v4216_v30 = vld [vmem:[#allocation7 + $0x48] sm:$0xff]  }
 0x257   : > { %v5105_v56 = vadd.f32 %v3542_v26, %v4970_v5  ;;  %v4217_v26 = vld [vmem:[#allocation7 + $0x8] sm:$0xff]  }
 0x259   : > { %v3543_v37 = vpop.f32.mrb[124].mxu1 }
 0x25a   : > { %v3544_v10 = vpop.f32.mrb[125].mxu1 }
 0x25b   : > { %v3545_v38 = vadd.f32 %v3544_v10, %v3543_v37  ;;  %v3546_v16 = vpop.f32.mrb[126].mxu1 }
 0x25c   : > { %v3547_v27 = vpop.f32.mrb[127].mxu1 }
 0x25d   : > { %v3548_v31 = vadd.f32 %v3547_v27, %v3546_v16  ;;  %v5108_v45 = vadd.f32 %v3545_v38, %v4975_v12  ;;  %v4219_v16 = vld [vmem:[#allocation7 + $0x10] sm:$0xff]  }
 0x25f   : > { %v5111_v35 = vadd.f32 %v3548_v31, %v4978_v7 }
 0x261   : > { %v3737_v4 = vpop.f32.mrb[128].mxu1 }
 0x262   : > { %v2236_v40 = vadd.f32 %v3737_v4, %v4999_v24  ;;  %v2227_v51 = vpop.f32.mrb[129].mxu1 }
 0x263   : > { %v2228_v60 = vadd.f32 %v2227_v51, %v4986_v28  ;;  %v3738_v5 = vpop.f32.mrb[130].mxu1  ;;  %v4220_v51 = vld [vmem:[#allocation7 + $0x58] sm:$0xff]  }
 0x264   : > { %v2239_v54 = vadd.f32 %v3738_v5, %v5005_v59  ;;  %v2230_v6 = vpop.f32.mrb[131].mxu1  ;;  %v4214_v59 = vld [vmem:[#allocation7 + $0x40] sm:$0xff]  }
 0x265   : > { %v2231_v1 = vadd.f32 %v2230_v6, %v4993_v18  ;;  %3681 = vmatprep.subr.bf16.mxu1 %v4214_v59 }
 0x266   : > { %3682 = vmatpush3.bf16.msra.mxu1 %v4215_v13 }
 0x267   : > { %3683 = vmatprep.subr.bf16.mxu1 %v4216_v30 }
 0x269   : > { %v3741_v39 = vpop.f32.mrb[132].mxu1 }
 0x26a   : > { %v2252_v49 = vadd.f32 %v3741_v39, %v5019_v55  ;;  %v2243_v12 = vpop.f32.mrb[133].mxu1  ;;  %3684 = vmatpush3.bf16.msra.mxu1 %v4217_v26  ;;  %v4222_v39 = vld [vmem:[#allocation7 + $0x60] sm:$0xff]  }
 0x26b   : > { %v2244_v20 = vadd.f32 %v2243_v12, %v5009_v11  ;;  %v3742_v7 = vpop.f32.mrb[134].mxu1  ;;  %v4223_v12 = vld [vmem:[#allocation7 + $0x20] sm:$0xff]  }
 0x26c   : > { %v2410_v8 = vmax.f32 %v2236_v40, %v2252_v49  ;;  %v2255_v14 = vadd.f32 %v3742_v7, %v5023_v34  ;;  %v2246_v24 = vpop.f32.mrb[135].mxu1 }
 0x26d   : > { %v2368_v63 = vmax.f32 %v2228_v60, %v2244_v20  ;;  %v2247_v28 = vadd.f32 %v2246_v24, %v5015_v42 }
 0x26e   : > { %v2431_v48 = vmax.f32 %v2239_v54, %v2255_v14  ;;  %v4221_v54 = vld [vmem:[#allocation7 + $0x18] sm:$0xff]  }
 0x26f   : > { %v2389_v36 = vmax.f32 %v2231_v1, %v2247_v28 }
 0x271   : > { %v3745_v25 = vpop.f32.mrb[136].mxu1 }
 0x272   : > { %v2268_v18 = vadd.f32 %v3745_v25, %v5035_v58  ;;  %v2259_v50 = vpop.f32.mrb[137].mxu1  ;;  %v4218_v58 = vld [vmem:[#allocation7 + $0x50] sm:$0xff]   ;;  %v4225_v25 = vld [vmem:[#allocation7 + $0x28] sm:$0xff]  }
 0x273   : > { %v2260_v55 = vadd.f32 %v2259_v50, %v5027_v41  ;;  %v3746_v11 = vpop.f32.mrb[138].mxu1  ;;  %3685 = vmatprep.subr.bf16.mxu1 %v4218_v58 }
 0x274   : > { %v2411_v22 = vmax.f32 %v2410_v8, %v2268_v18  ;;  %v2271_v34 = vadd.f32 %v3746_v11, %v5041_v15  ;;  %v2262_v61 = vpop.f32.mrb[139].mxu1  ;;  %3686 = vmatpush3.bf16.msra.mxu1 %v4219_v16  ;;  %v4227_v11 = vld [vmem:[#allocation7 + $0x30] sm:$0xff]   ;;  %v2680_v16 = vlaneseq }
 0x275   : > { %v2369_v19 = vmax.f32 %v2368_v63, %v2260_v55  ;;  %v2263_v42 = vadd.f32 %v2262_v61, %v5031_v23  ;;  %3687 = vmatprep.subr.bf16.mxu1 %v4220_v51 }
 0x276   : > { %v2432_v37 = vmax.f32 %v2431_v48, %v2271_v34  ;;  %v4224_v48 = vld [vmem:[#allocation7 + $0x68] sm:$0xff]   ;;  %v5156_v51 = vshrl.u32 %v2680_v16, 7 }
 0x277   : > { %v2390_v10 = vmax.f32 %v2389_v36, %v2263_v42 }
 0x278   : > { %3688 = vmatpush3.bf16.msra.mxu1 %v4221_v54 }
 0x279   : > { %v3749_v38 = vpop.f32.mrb[140].mxu1  ;;  %3689 = vmatprep.subr.bf16.mxu1 %v4222_v39 }
 0x27a   : > { %v2284_v41 = vadd.f32 %v3749_v38, %v5054_v21  ;;  %v2275_v27 = vpop.f32.mrb[141].mxu1  ;;  %v4229_v38 = vld [vmem:[#allocation7 + $0x38] sm:$0xff]  }
 0x27b   : > { %v2276_v31 = vadd.f32 %v2275_v27, %v5045_v57  ;;  %v3750_v15 = vpop.f32.mrb[142].mxu1 }
 0x27c   : > { %v2412_v4 = vmax.f32 %v2411_v22, %v2284_v41  ;;  %v2287_v40 = vadd.f32 %v3750_v15, %v5058_v47  ;;  %v2278_v23 = vpop.f32.mrb[143].mxu1  ;;  %3690 = vmatpush3.bf16.msra.mxu1 %v4223_v12  ;;  %v2690_v12 = vsub.s32 2, %v5156_v51 }
 0x27d   : > { %v2370_v60 = vmax.f32 %v2369_v19, %v2276_v31  ;;  %v2279_v5 = vadd.f32 %v2278_v23, %v5050_v53  ;;  %3691 = vmatprep.subr.bf16.mxu1 %v4224_v48 }
 0x27e   : > { %v2433_v6 = vmax.f32 %v2432_v37, %v2287_v40  ;;  %v4228_v37 = vld [vmem:[#allocation7 + $0x78] sm:$0xff]  }
 0x27f   : > { %v2391_v1 = vmax.f32 %v2390_v10, %v2279_v5 }
 0x280   : > { %3692 = vmatpush3.bf16.msra.mxu1 %v4225_v25 }
 0x281   : > { %v5129_v21 = vpop.f32.mrb[0].mxu0  ;;  %v3753_v49 = vpop.f32.mrb[144].mxu1 }
 0x282   : > { %v5131_v57 = vpop.f32.mrb[1].mxu0  ;;  %v2300_v20 = vadd.f32 %v3753_v49, %v5070_v52  ;;  %v2291_v47 = vpop.f32.mrb[145].mxu1 }
 0x283   : > { %v5134_v7 = vpop.f32.mrb[2].mxu0  ;;  %v2292_v53 = vadd.f32 %v2291_v47, %v5062_v29  ;;  %v3754_v8 = vpop.f32.mrb[146].mxu1  ;;  %v4226_v29 = vld [vmem:[#allocation7 + $0x70] sm:$0xff]  }
 0x284   : > { %v5137_v14 = vpop.f32.mrb[3].mxu0  ;;  %v2413_v24 = vmax.f32 %v2412_v4, %v2300_v20  ;;  %v2303_v63 = vadd.f32 %v3754_v8, %v5074_v44  ;;  %v2294_v28 = vpop.f32.mrb[147].mxu1  ;;  %3693 = vmatprep.subr.bf16.mxu1 %v4226_v29 }
 0x285   : > { %v2371_v36 = vmax.f32 %v2370_v60, %v2292_v53  ;;  %v2295_v59 = vadd.f32 %v2294_v28, %v5066_v43  ;;  %3694 = vmatpush3.bf16.msra.mxu1 %v4227_v11 }
 0x286   : > { %v2434_v52 = vmax.f32 %v2433_v6, %v2303_v63  ;;  %3695 = vmatprep.subr.bf16.mxu1 %v4228_v37 }
 0x287   : > { %v2392_v13 = vmax.f32 %v2391_v1, %v2295_v59 }
 0x289   : > { %v5141_v18 = vpop.f32.mrb[4].mxu0  ;;  %v3757_v50 = vpop.f32.mrb[148].mxu1  ;;  %3696 = vmatpush3.bf16.msra.mxu1 %v4229_v38 }
 0x28a   : > { %v5143_v55 = vpop.f32.mrb[5].mxu0  ;;  %v2316_v22 = vadd.f32 %v3757_v50, %v5084_v3  ;;  %v2307_v44 = vpop.f32.mrb[149].mxu1 }
 0x28b   : > { %v5146_v34 = vpop.f32.mrb[6].mxu0  ;;  %v2308_v43 = vadd.f32 %v2307_v44, %v5078_v17  ;;  %v3758_v61 = vpop.f32.mrb[150].mxu1 }
 0x28c   : > { %v5149_v30 = vpop.f32.mrb[7].mxu0  ;;  %v2414_v19 = vmax.f32 %v2413_v24, %v2316_v22  ;;  %v2319_v42 = vadd.f32 %v3758_v61, %v5087_v62  ;;  %v2310_v26 = vpop.f32.mrb[151].mxu1 }
 0x28d   : > { %v2372_v10 = vmax.f32 %v2371_v36, %v2308_v43  ;;  %v2311_v58 = vadd.f32 %v2310_v26, %v5081_v32 }
 0x28e   : > { %v2435_v3 = vmax.f32 %v2434_v52, %v2319_v42 }
 0x28f   : > { %v2393_v41 = vmax.f32 %v2392_v13, %v2311_v58 }
 0x291   : > { %v1732_v27 = vpop.f32.mrb[8].mxu0  ;;  %v3761_v31 = vpop.f32.mrb[152].mxu1 }
 0x292   : > { %v2354_v17 = vmax.f32 %v5129_v21, %v1732_v27  ;;  %v1734_v15 = vpop.f32.mrb[9].mxu0  ;;  %v2332_v4 = vadd.f32 %v3761_v31, %v5096_v2  ;;  %v2323_v40 = vpop.f32.mrb[153].mxu1 }
 0x293   : > { %v2361_v62 = vmax.f32 %v5131_v57, %v1734_v15  ;;  %v1736_v23 = vpop.f32.mrb[10].mxu0  ;;  %v2324_v32 = vadd.f32 %v2323_v40, %v5090_v46  ;;  %v3762_v5 = vpop.f32.mrb[154].mxu1  ;;  %v5167_v46 = vld [vmem:[%s5277_s2] sm:$0x7] }
 0x294   : > { %v2375_v60 = vmax.f32 %v5134_v7, %v1736_v23  ;;  %v1738_v54 = vpop.f32.mrb[11].mxu0  ;;  %v2415_v6 = vmax.f32 %v2414_v19, %v2332_v4  ;;  %v2335_v1 = vadd.f32 %v3762_v5, %v5099_v9  ;;  %v2326_v39 = vpop.f32.mrb[155].mxu1 }
 0x295   : > { %v2382_v21 = vmax.f32 %v5137_v14, %v1738_v54  ;;  %v2373_v49 = vmax.f32 %v2372_v10, %v2324_v32  ;;  %v2327_v2 = vadd.f32 %v2326_v39, %v5093_v33  ;;  %v2691_v14 = vrot.slane %v5167_v46, %v2690_v12 }
 0x296   : > { %v2436_v57 = vmax.f32 %v2435_v3, %v2335_v1 }
 0x297   : > { %v2394_v20 = vmax.f32 %v2393_v41, %v2327_v2 }
 0x299   : > { %v1742_v47 = vpop.f32.mrb[12].mxu0  ;;  %v3765_v53 = vpop.f32.mrb[156].mxu1 }
 0x29a   : > { %v2396_v7 = vmax.f32 %v5141_v18, %v1742_v47  ;;  %v1744_v9 = vpop.f32.mrb[13].mxu0  ;;  %v2348_v8 = vadd.f32 %v3765_v53, %v5108_v45  ;;  %v2339_v24 = vpop.f32.mrb[157].mxu1 }
 0x29b   : > { %v2403_v33 = vmax.f32 %v5143_v55, %v1744_v9  ;;  %v1746_v63 = vpop.f32.mrb[14].mxu0  ;;  %v2340_v28 = vadd.f32 %v2339_v24, %v5102_v0  ;;  %v3766_v36 = vpop.f32.mrb[158].mxu1 }
 0x29c   : > { %v2417_v48 = vmax.f32 %v5146_v34, %v1746_v63  ;;  %v1748_v59 = vpop.f32.mrb[15].mxu0  ;;  %v2416_v25 = vmax.f32 %v2415_v6, %v2348_v8  ;;  %v2351_v52 = vadd.f32 %v3766_v36, %v5111_v35  ;;  %v2342_v18 = vpop.f32.mrb[159].mxu1 }
 0x29d   : > { %v2424_v13 = vmax.f32 %v5149_v30, %v1748_v59  ;;  %v2374_v29 = vmax.f32 %v2373_v49, %v2340_v28  ;;  %v2343_v45 = vadd.f32 %v2342_v18, %v5105_v56 }
 0x29e   : > { %v2703_v50 = vadd.f32 %v2691_v14, %v2416_v25  ;;  %v2437_v11 = vmax.f32 %v2436_v57, %v2351_v52 }
 0x29f   : > { %v2697_v55 = vadd.f32 %v2691_v14, %v2374_v29  ;;  %v2395_v22 = vmax.f32 %v2394_v20, %v2343_v45 }
 0x2a0   : > { %v2706_v44 = vadd.f32 %v2691_v14, %v2437_v11  ;;  %v2715_v42 = vmax.f32 %v2703_v50, 0.0 }
 0x2a1   : > { %v1752_v43 = vpop.f32.mrb[16].mxu0  ;;  %v2700_v0 = vadd.f32 %v2691_v14, %v2395_v22  ;;  %v3589_v19 = vpop.f32.mrb[160].mxu1  ;;  %v2709_v10 = vmax.f32 %v2697_v55, 0.0 }
 0x2a2   : > { %v5178_v61 = vmax.f32 %v2354_v17, %v1752_v43  ;;  %v1754_v34 = vpop.f32.mrb[17].mxu0  ;;  %v2718_v26 = vmax.f32 %v2706_v44, 0.0  ;;  %v3590_v37 = vpop.f32.mrb[161].mxu1 }
 0x2a3   : > { %v5180_v35 = vmax.f32 %v2361_v62, %v1754_v34  ;;  %v1756_v30 = vpop.f32.mrb[18].mxu0  ;;  %v2712_v58 = vmax.f32 %v2700_v0, 0.0  ;;  %v3591_v3 = vadd.f32 %v3590_v37, %v3589_v19  ;;  %v3592_v16 = vpop.f32.mrb[162].mxu1 }
 0x2a4   : > { %v2376_v56 = vmax.f32 %v2375_v60, %v1756_v30  ;;  %v1758_v38 = vpop.f32.mrb[19].mxu0  ;;  %v2724_v41 = vpack.c.bf16 %v2718_v26, %v2715_v42  ;;  %v3593_v31 = vpop.f32.mrb[163].mxu1 }
 0x2a5   : > { %v2383_v27 = vmax.f32 %v2382_v21, %v1758_v38  ;;  %v2721_v15 = vpack.c.bf16 %v2712_v58, %v2709_v10  ;;  %v3594_v17 = vadd.f32 %v3593_v31, %v3592_v16 }
 0x2a7   : > { %3807 = vmatprep.mubr.bf16.mxu0 %v2721_v15 }
 0x2a8   : > { %3808 = vmatmul.mubr.bf16.vlgmr.msra.gmra.mrb[72].mxu0 %v2724_v41 }
 0x2a9   : > { %v1762_v4 = vpop.f32.mrb[20].mxu0  ;;  %v3595_v62 = vpop.f32.mrb[164].mxu1 }
 0x2aa   : > { %v2397_v40 = vmax.f32 %v2396_v7, %v1762_v4  ;;  %v1764_v23 = vpop.f32.mrb[21].mxu0  ;;  %v3596_v54 = vpop.f32.mrb[165].mxu1 }
 0x2ab   : > { %v2404_v32 = vmax.f32 %v2403_v33, %v1764_v23  ;;  %v1766_v5 = vpop.f32.mrb[22].mxu0  ;;  %v3597_v60 = vadd.f32 %v3596_v54, %v3595_v62  ;;  %v3598_v39 = vpop.f32.mrb[166].mxu1 }
 0x2ac   : > { %v2418_v6 = vmax.f32 %v2417_v48, %v1766_v5  ;;  %v1768_v1 = vpop.f32.mrb[23].mxu0  ;;  %v3599_v2 = vpop.f32.mrb[167].mxu1 }
 0x2ad   : > { %v2425_v49 = vmax.f32 %v2424_v13, %v1768_v1  ;;  %v3600_v57 = vadd.f32 %v3599_v2, %v3598_v39 }
 0x2b1   : > { %v1772_v21 = vpop.f32.mrb[24].mxu0  ;;  %v3601_v47 = vpop.f32.mrb[168].mxu1 }
 0x2b2   : > { %v2356_v12 = vmax.f32 %v5178_v61, %v1772_v21  ;;  %v1774_v20 = vpop.f32.mrb[25].mxu0  ;;  %v3602_v9 = vpop.f32.mrb[169].mxu1 }
 0x2b3   : > { %v2363_v53 = vmax.f32 %v5180_v35, %v1774_v20  ;;  %v1776_v7 = vpop.f32.mrb[26].mxu0  ;;  %v3603_v33 = vadd.f32 %v3602_v9, %v3601_v47  ;;  %v3604_v24 = vpop.f32.mrb[170].mxu1 }
 0x2b4   : > { %v2377_v8 = vmax.f32 %v2376_v56, %v1776_v7  ;;  %v1778_v14 = vpop.f32.mrb[27].mxu0  ;;  %v3605_v28 = vpop.f32.mrb[171].mxu1 }
 0x2b5   : > { %v2384_v63 = vmax.f32 %v2383_v27, %v1778_v14  ;;  %v3606_v48 = vadd.f32 %v3605_v28, %v3604_v24 }
 0x2b9   : > { %v1782_v36 = vpop.f32.mrb[28].mxu0  ;;  %v3607_v52 = vpop.f32.mrb[172].mxu1 }
 0x2ba   : > { %v2398_v59 = vmax.f32 %v2397_v40, %v1782_v36  ;;  %v1784_v25 = vpop.f32.mrb[29].mxu0  ;;  %v3608_v29 = vpop.f32.mrb[173].mxu1 }
 0x2bb   : > { %v2405_v13 = vmax.f32 %v2404_v32, %v1784_v25  ;;  %v1786_v18 = vpop.f32.mrb[30].mxu0  ;;  %v3609_v11 = vadd.f32 %v3608_v29, %v3607_v52  ;;  %v3610_v55 = vpop.f32.mrb[174].mxu1 }
 0x2bc   : > { %v2419_v45 = vmax.f32 %v2418_v6, %v1786_v18  ;;  %v1788_v50 = vpop.f32.mrb[31].mxu0  ;;  %v3611_v44 = vpop.f32.mrb[175].mxu1 }
 0x2bd   : > { %v2426_v22 = vmax.f32 %v2425_v49, %v1788_v50  ;;  %v3612_v43 = vadd.f32 %v3611_v44, %v3610_v55 }
 0x2c1   : > { %v1792_v0 = vpop.f32.mrb[32].mxu0  ;;  %v3785_v19 = vpop.f32.mrb[176].mxu1 }
 0x2c2   : > { %v2357_v61 = vmax.f32 %v2356_v12, %v1792_v0  ;;  %v1794_v34 = vpop.f32.mrb[33].mxu0  ;;  %v5184_v26 = vadd.f32 %v3785_v19, %v3597_v60  ;;  %v2537_v30 = vpop.f32.mrb[177].mxu1 }
 0x2c3   : > { %v2364_v42 = vmax.f32 %v2363_v53, %v1794_v34  ;;  %v1796_v35 = vpop.f32.mrb[34].mxu0  ;;  %v5186_v10 = vadd.f32 %v3591_v3, %v2537_v30  ;;  %v3786_v56 = vpop.f32.mrb[178].mxu1 }
 0x2c4   : > { %v2378_v37 = vmax.f32 %v2377_v8, %v1796_v35  ;;  %v1798_v58 = vpop.f32.mrb[35].mxu0  ;;  %v5188_v16 = vadd.f32 %v3786_v56, %v3600_v57  ;;  %v2540_v41 = vpop.f32.mrb[179].mxu1 }
 0x2c5   : > { %v2385_v38 = vmax.f32 %v2384_v63, %v1798_v58  ;;  %v5190_v27 = vadd.f32 %v3594_v17, %v2540_v41 }
 0x2c9   : > { %v1802_v31 = vpop.f32.mrb[36].mxu0  ;;  %v3789_v4 = vpop.f32.mrb[180].mxu1 }
 0x2ca   : > { %v2399_v15 = vmax.f32 %v2398_v59, %v1802_v31  ;;  %v1804_v40 = vpop.f32.mrb[37].mxu0  ;;  %v5192_v23 = vadd.f32 %v3789_v4, %v3609_v11  ;;  %v2553_v32 = vpop.f32.mrb[181].mxu1 }
 0x2cb   : > { %v2406_v62 = vmax.f32 %v2405_v13, %v1804_v40  ;;  %v1806_v5 = vpop.f32.mrb[38].mxu0  ;;  %v5194_v54 = vadd.f32 %v3603_v33, %v2553_v32  ;;  %v3790_v6 = vpop.f32.mrb[182].mxu1  ;;  %v2682_v40 = vsub.s32 0, %v5156_v51 }
 0x2cc   : > { %v2420_v3 = vmax.f32 %v2419_v45, %v1806_v5  ;;  %v1808_v1 = vpop.f32.mrb[39].mxu0  ;;  %v2570_v60 = vmax.f32 %v5184_v26, %v5192_v23  ;;  %v5198_v39 = vadd.f32 %v3790_v6, %v3612_v43  ;;  %v2556_v49 = vpop.f32.mrb[183].mxu1 }
 0x2cd   : > { %v2427_v17 = vmax.f32 %v2426_v22, %v1808_v1  ;;  %v2568_v2 = vmax.f32 %v5186_v10, %v5194_v54  ;;  %v2557_v57 = vadd.f32 %v3606_v48, %v2556_v49  ;;  %v2683_v54 = vrot.slane %v5167_v46, %v2682_v40 }
 0x2ce   : > { %v2571_v21 = vmax.f32 %v5188_v16, %v5198_v39 }
 0x2cf   : > { %v2569_v12 = vmax.f32 %v5190_v27, %v2557_v57 }
 0x2d1   : > { %v1812_v20 = vpop.f32.mrb[40].mxu0 }
 0x2d2   : > { %v2358_v47 = vmax.f32 %v2357_v61, %v1812_v20  ;;  %v1814_v53 = vpop.f32.mrb[41].mxu0 }
 0x2d3   : > { %v2365_v7 = vmax.f32 %v2364_v42, %v1814_v53  ;;  %v1816_v9 = vpop.f32.mrb[42].mxu0 }
 0x2d4   : > { %v2379_v8 = vmax.f32 %v2378_v37, %v1816_v9  ;;  %v1818_v14 = vpop.f32.mrb[43].mxu0 }
 0x2d5   : > { %v2386_v33 = vmax.f32 %v2385_v38, %v1818_v14 }
 0x2d9   : > { %v1822_v24 = vpop.f32.mrb[44].mxu0 }
 0x2da   : > { %v2400_v63 = vmax.f32 %v2399_v15, %v1822_v24  ;;  %v1824_v28 = vpop.f32.mrb[45].mxu0 }
 0x2db   : > { %v2407_v36 = vmax.f32 %v2406_v62, %v1824_v28  ;;  %v1826_v59 = vpop.f32.mrb[46].mxu0 }
 0x2dc   : > { %v2421_v25 = vmax.f32 %v2420_v3, %v1826_v59  ;;  %v1828_v48 = vpop.f32.mrb[47].mxu0 }
 0x2dd   : > { %v2428_v52 = vmax.f32 %v2427_v17, %v1828_v48 }
 0x2e1   : > { %v1832_v13 = vpop.f32.mrb[48].mxu0 }
 0x2e2   : > { %v2359_v18 = vmax.f32 %v2358_v47, %v1832_v13  ;;  %v1834_v29 = vpop.f32.mrb[49].mxu0  ;;  %v3641_v45 = vpop.f32.mrb[184].mxu1 }
 0x2e3   : > { %v5205_v50 = vmax.f32 %v2365_v7, %v1834_v29  ;;  %v1836_v11 = vpop.f32.mrb[50].mxu0  ;;  %v3642_v55 = vpop.f32.mrb[185].mxu1  ;;  %v2686_v29 = vsub.s32 1, %v5156_v51 }
 0x2e4   : > { %v2380_v22 = vmax.f32 %v2379_v8, %v1836_v11  ;;  %v1838_v44 = vpop.f32.mrb[51].mxu0  ;;  %v3643_v43 = vadd.f32 %v3642_v55, %v3641_v45  ;;  %v3644_v0 = vpop.f32.mrb[186].mxu1 }
 0x2e5   : > { %v2387_v61 = vmax.f32 %v2386_v33, %v1838_v44  ;;  %v3645_v34 = vpop.f32.mrb[187].mxu1 }
 0x2e6   : > { %v3646_v19 = vadd.f32 %v3645_v34, %v3644_v0  ;;  %v2687_v0 = vrot.slane %v5167_v46, %v2686_v29 }
 0x2e9   : > { %v1842_v42 = vpop.f32.mrb[52].mxu0 }
 0x2ea   : > { %v2401_v35 = vmax.f32 %v2400_v63, %v1842_v42  ;;  %v1844_v30 = vpop.f32.mrb[53].mxu0  ;;  %v3647_v37 = vpop.f32.mrb[188].mxu1 }
 0x2eb   : > { %v5207_v10 = vmax.f32 %v2407_v36, %v1844_v30  ;;  %v1846_v58 = vpop.f32.mrb[54].mxu0  ;;  %v3648_v56 = vpop.f32.mrb[189].mxu1 }
 0x2ec   : > { %v2422_v38 = vmax.f32 %v2421_v25, %v1846_v58  ;;  %v1848_v41 = vpop.f32.mrb[55].mxu0  ;;  %v3649_v27 = vadd.f32 %v3648_v56, %v3647_v37  ;;  %v3650_v31 = vpop.f32.mrb[190].mxu1 }
 0x2ed   : > { %v2429_v15 = vmax.f32 %v2428_v52, %v1848_v41  ;;  %v3651_v4 = vpop.f32.mrb[191].mxu1 }
 0x2ee   : > { %v3652_v62 = vadd.f32 %v3651_v4, %v3650_v31 }
 0x2f1   : > { %v1852_v32 = vpop.f32.mrb[56].mxu0 }
 0x2f2   : > { %v2360_v5 = vmax.f32 %v2359_v18, %v1852_v32  ;;  %v1854_v3 = vpop.f32.mrb[57].mxu0 }
 0x2f3   : > { %v2367_v6 = vmax.f32 %v5205_v50, %v1854_v3  ;;  %v1856_v1 = vpop.f32.mrb[58].mxu0 }
 0x2f4   : > { %v2572_v17 = vmax.f32 %v2360_v5, %v2568_v2  ;;  %v2381_v49 = vmax.f32 %v2380_v22, %v1856_v1  ;;  %v1858_v57 = vpop.f32.mrb[59].mxu0 }
 0x2f5   : > { %v2388_v20 = vmax.f32 %v2387_v61, %v1858_v57 }
 0x2f6   : > { %v2695_v47 = vadd.f32 %v2683_v54, %v2572_v17  ;;  %v2573_v53 = vmax.f32 %v2381_v49, %v2569_v12 }
 0x2f8   : > { %v2698_v7 = vadd.f32 %v2683_v54, %v2573_v53  ;;  %v2707_v8 = vmax.f32 %v2695_v47, 0.0 }
 0x2f9   : > { %v1862_v9 = vpop.f32.mrb[60].mxu0 }
 0x2fa   : > { %v2710_v14 = vmax.f32 %v2698_v7, 0.0  ;;  %v2402_v33 = vmax.f32 %v2401_v35, %v1862_v9  ;;  %v1864_v24 = vpop.f32.mrb[61].mxu0 }
 0x2fb   : > { %v2409_v63 = vmax.f32 %v5207_v10, %v1864_v24  ;;  %v1866_v28 = vpop.f32.mrb[62].mxu0 }
 0x2fc   : > { %v2719_v36 = vpack.c.bf16 %v2710_v14, %v2707_v8  ;;  %v2574_v59 = vmax.f32 %v2402_v33, %v2570_v60  ;;  %v2423_v2 = vmax.f32 %v2422_v38, %v1866_v28  ;;  %v1868_v25 = vpop.f32.mrb[63].mxu0 }
 0x2fd   : > { %v2430_v48 = vmax.f32 %v2429_v15, %v1868_v25 }
 0x2fe   : > { %v2701_v52 = vadd.f32 %v2683_v54, %v2574_v59  ;;  %v2575_v12 = vmax.f32 %v2423_v2, %v2571_v21 }
 0x300   : > { %v2704_v13 = vadd.f32 %v2683_v54, %v2575_v12  ;;  %v2713_v45 = vmax.f32 %v2701_v52, 0.0 }
 0x301   : > { %v3669_v18 = vpop.f32.mrb[64].mxu0 }
 0x302   : > { %v2716_v50 = vmax.f32 %v2704_v13, 0.0  ;;  %v3670_v11 = vpop.f32.mrb[65].mxu0 }
 0x303   : > { %v3671_v55 = vadd.f32 %v3670_v11, %v3669_v18  ;;  %v3672_v22 = vpop.f32.mrb[66].mxu0 }
 0x304   : > { %v3673_v44 = vpop.f32.mrb[67].mxu0  ;;  %v2722_v26 = vpack.c.bf16 %v2716_v50, %v2713_v45 }
 0x305   : > { %v2660_v23 = vadd.f32 %v3671_v55, %v3643_v43  ;;  %v3674_v60 = vadd.f32 %v3673_v44, %v3672_v22 }
 0x307   : > { %v2674_v61 = vmax.f32 %v2367_v6, %v2660_v23  ;;  %v2663_v34 = vadd.f32 %v3674_v60, %v3646_v19 }
 0x309   : > { %v2675_v42 = vmax.f32 %v2388_v20, %v2663_v34  ;;  %v3675_v16 = vpop.f32.mrb[68].mxu0  ;;  %v2696_v39 = vadd.f32 %v2687_v0, %v2674_v61 }
 0x30a   : > { %v3676_v21 = vpop.f32.mrb[69].mxu0 }
 0x30b   : > { %v3677_v35 = vadd.f32 %v3676_v21, %v3675_v16  ;;  %v3678_v30 = vpop.f32.mrb[70].mxu0  ;;  %v2699_v51 = vadd.f32 %v2687_v0, %v2675_v42  ;;  %v2708_v56 = vmax.f32 %v2696_v39, 0.0 }
 0x30c   : > { %v3679_v37 = vpop.f32.mrb[71].mxu0 }
 0x30d   : > { %v2668_v10 = vadd.f32 %v3677_v35, %v3649_v27  ;;  %v3680_v58 = vadd.f32 %v3679_v37, %v3678_v30  ;;  %v2711_v38 = vmax.f32 %v2699_v51, 0.0 }
 0x30f   : > { %v2676_v41 = vmax.f32 %v2409_v63, %v2668_v10  ;;  %v2671_v31 = vadd.f32 %v3680_v58, %v3652_v62  ;;  %v2720_v43 = vpack.c.bf16 %v2711_v38, %v2708_v56  ;;  %v3293_v62 = vld [vmem:[%s5279_s4] ss:$0 sm:$0xff] }
 0x311   : > { %v2677_v15 = vmax.f32 %v2430_v48, %v2671_v31  ;;  %2956 = vmatprep.mubr.bf16.mxu1 %v2720_v43  ;;  %v2702_v46 = vadd.f32 %v2687_v0, %v2676_v41 }
 0x312   : > { %2957 = vmatmul.mubr.bf16.vlgmr.msra.gmra.mrb[192].mxu1 %v2719_v36 }
 0x313   : > { %v2705_v19 = vadd.f32 %v2687_v0, %v2677_v15  ;;  %v2714_v4 = vmax.f32 %v2702_v46, 0.0 }
 0x315   : > { %v2717_v40 = vmax.f32 %v2705_v19, 0.0 }
 0x317   : > { %v2723_v32 = vpack.c.bf16 %v2717_v40, %v2714_v4 }
 0x319   : > { %2964 = vmatprep.mubr.bf16.mxu1 %v2723_v32 }
 0x31a   : > { %2965 = vmatmul.mubr.bf16.gmra.mrb[196].mxu1 %v2722_v26 }
 0x37b   : > { %v3809_v5 = vpop.f32.mrb[72].mxu0 }
 0x37c   : > { %v3007_v54 = vpop.f32.mrb[73].mxu0 }
 0x37d   : > { %v3810_v27 = vpop.f32.mrb[74].mxu0 }
 0x37e   : > { %v3010_v3 = vpop.f32.mrb[75].mxu0 }
 0x3e5   : > { %v3697_v6 = vpop.f32.mrb[192].mxu1 }
 0x3e6   : > { %v3698_v1 = vpop.f32.mrb[193].mxu1 }
 0x3e7   : > { %v3699_v17 = vadd.f32 %v3698_v1, %v3697_v6  ;;  %v3700_v49 = vpop.f32.mrb[194].mxu1 }
 0x3e8   : > { %v3701_v57 = vpop.f32.mrb[195].mxu1 }
 0x3e9   : > { %v2959_v20 = vadd.f32 %v3699_v17, %v3293_v62  ;;  %v3702_v47 = vadd.f32 %v3701_v57, %v3700_v49 }
 0x3eb   : > { %v3008_v53 = vadd.f32 %v3007_v54, %v2959_v20  ;;  %v2962_v7 = vadd.f32 %v3702_v47, %v3293_v62 }
 0x3ed   : > { %v3022_v9 = vmax.f32 %v3008_v53, 0.0  ;;  %v3011_v8 = vadd.f32 %v3010_v3, %v2962_v7  ;;  %v3703_v14 = vpop.f32.mrb[196].mxu1 }
 0x3ee   : > { %v3704_v33 = vpop.f32.mrb[197].mxu1 }
 0x3ef   : > { %3026 = vst [vmem:[%s296_s25] sm:$0xff] %v3022_v9  ;;  %v3023_v24 = vmax.f32 %v3011_v8, 0.0  ;;  %v3705_v63 = vadd.f32 %v3704_v33, %v3703_v14  ;;  %v3706_v28 = vpop.f32.mrb[198].mxu1 }
 0x3f0   : > { %v3707_v36 = vpop.f32.mrb[199].mxu1 }
 0x3f1   : > { %3027 = vst [vmem:[%s296_s25 + $0x8] sm:$0xff] %v3023_v24  ;;  %v2967_v59 = vadd.f32 %v3705_v63, %v3293_v62  ;;  %v3708_v2 = vadd.f32 %v3707_v36, %v3706_v28 }
 0x3f3   : > { %v3016_v25 = vadd.f32 %v3809_v5, %v2967_v59  ;;  %v2970_v48 = vadd.f32 %v3708_v2, %v3293_v62 }
 0x3f5   : > { %v3024_v52 = vmax.f32 %v3016_v25, 0.0  ;;  %v3019_v12 = vadd.f32 %v3810_v27, %v2970_v48 }
 0x3f7   : > { %3028 = vst [vmem:[%s296_s25 + $0x10] sm:$0xff] %v3024_v52  ;;  %v3025_v13 = vmax.f32 %v3019_v12, 0.0 }
 0x3f9   : > { %3029 = vst [vmem:[%s296_s25 + $0x18] sm:$0xff] %v3025_v13 }
 0x3fa   : > { %4337 = shalt.err (!%p4334_p1)
}
 0x3fb   : > { %s4338_s8 = scalar_lea.hbm %s5231_s16, 512  ;;  %s4342_s7 = scalar_lea.hbm %s5280_s5, 1024 }
 0x3fc   : > { %p4339_p3 = scmp.ne.s32.totalorder %s5231_s16, %s4338_s8  ;;  %p4343_p6 = scmp.lt.u32.totalorder %s5231_s16, %s5280_s5 }
 0x3fd   : > { %p4344_p11 = scmp.lt.u32.totalorder %s4342_s7, %s4338_s8  ;;  %p4346_p0 = scmp.lt.u32.totalorder %s4338_s8, %s5231_s16 }
 0x3fe   : > { %p4340_p2 = pnand %p4339_p3, %p5298_p13 }
 0x3ff   : > { %p4345_p12 = por %p4344_p11, %p4343_p6 }
 0x400   : > { %p4341_p5 = pneg %p4340_p2 }
 0x401   : > { %p4347_p7 = por %p4346_p0, %p4345_p12 }
 0x403   : > { %p4348_p8 = pnand %p4347_p7, %p4341_p5 }
 0x405   : > { %4351 = shalt.err (!%p4348_p8)
}
 0x406   : > { %s4409_s25 = smov 128   ;;  %s4410_s11 = smov 8  }
 0x407   : > { %3958 = dma.vmem_to_hbm [thread:$0]  (%p5298_p13), %s5226_s9, 512, %s5231_s16, %s3031_s12, %s4409_s25, %s4409_s25, %s4410_s11  }
 0x408 PF: > { %s3059_s13 = sand.u32 1, %s4382_s18   ;;  %p5299_p9 = scmp.ne.s32.totalorder %s5290_s6, 0 }
 0x409   : > { %s3060_s15 = scalar_lea.sflag [#allocation4], %s3059_s13 }
 0x40a   : > { %p3968_p10 = pnand %p3140_p4, %p5299_p9 }
 0x40c   : > { %4377 = dma.done.wait (!%p3968_p10), %s3060_s15, 512  }
 0x40d   : > { %4379 = vsyncadd (!%p3968_p10), %s3060_s15, 4294966784  ;;  %s5300_s23 = sld [smem:[#allocation15_spill]]  ;;  %p19_p1 = scmp.ge.s32.totalorder %s4466_s24, 4  }
 0x40e   : > { %s5301_s18 = smov %s4386_s19  ;;  %s5302_s19 = smov %s4390_s20 }
 0x40f   : > { %s5304_s21 = smov %s4466_s24  ;;  %21 = sbr.rel (!%p19_p1) target bundleno = 6 (0x6), region = 98 }
 0x413   : > { %s5303_s20 = smov %s5300_s23 }
 0x416   :  { %3065 = vsyncpa [#allocation3], 1 }
 0x417   :  { %3067 = vsyncpa [#allocation3 + $0x1], 1 }
 0x418   :  { %3068 = vsyncpa [#allocation6], 1 }
 0x419   :  { %3069 = vsyncpa [#allocation4], 1 }
 0x41a   :  { %3071 = vsyncpa [#allocation4 + $0x1], 1 }

// kernel: tpu_custom_call.1
= control target key start
LH: loop header
LB: loop body
LE: loop exit
PB: predicated region body
PF: predicated region fallthrough
CT: control target
= control target key end

     0   :  { %10 = vsyncpa [#allocation3], 0  ;;  %s5275_s0 = inlined_call_operand.hbm [shape: bf16[12,64,128], index: 0, kind: input, shape index: {}]   ;;  %s5276_s1 = inlined_call_operand.hbm [shape: bf16[640,384], index: 1, kind: input, shape index: {}]   ;;  %s5277_s2 = inlined_call_operand.vmem [shape: f32[1,384], index: 2, kind: input, shape index: {}]   ;;  %s5278_s3 = inlined_call_operand.hbm [shape: bf16[384,128], index: 3, kind: input, shape index: {}]   ;;  %s5279_s4 = inlined_call_operand.vmem [shape: f32[1,128], index: 4, kind: input, shape index: {}]   ;;  %s5280_s5 = inlined_call_operand.hbm [shape: f32[64,128], index: 5, kind: output, shape index: {}]  }
   0x1   :  { %12 = vsyncpa [#allocation3 + $0x1], 0 }
   0x2   :  { %13 = vsyncpa [#allocation6], 0 }
   0x3   :  { %14 = vsyncpa [#allocation4], 0 }
   0x4   :  { %16 = vsyncpa [#allocation4 + $0x1], 0  ;;  %s4441_s18 = smov 0   ;;  %s4443_s19 = smov 0  }
   0x5   :  { %s4445_s20 = smov 0   ;;  %s4447_s21 = smov 0  }
   0x6 LB: > { %s4462_s22 = sadd.s32 4294967295, %s4394_s21   ;;  %s3136_s23 = sadd.s32 4294967294, %s4394_s21   ;;  %s4394_s21 = sphi %s4447_s21, %s5304_s21   ;;  %s4390_s20 = sphi %s4445_s20, %s5303_s20   ;;  %s4386_s19 = sphi %s4443_s19, %s5302_s19   ;;  %s4382_s18 = sphi %s4441_s18, %s5301_s18  }
   0x7   : > { %s4466_s24 = sadd.s32 1, %s4394_s21   ;;  %s29_s25 = sadd.s32 1, %s4390_s20 }
   0x8   : > { %s26_s26 = ssub.s32 %s4394_s21, %s4466_s24  ;;  %p36_p0 = scmp.ne.s32.totalorder %s4390_s20, %s4386_s19 }
   0x9   : > { %p27_p1 = scmp.eq.s32.totalorder %s26_s26, 0  ;;  %p37_p2 = scmp.eq.s32.totalorder %s4394_s21, 0 }
   0xa   : > { %p42_p3 = scmp.ne.s32.totalorder %s4386_s19, %s4382_s18  ;;  %p5281_p4 = scmp.eq.s32.totalorder %s4462_s22, 0 }
   0xb   : > { %s4478_s27 = scalar_select %p27_p1, %s4390_s20, %s29_s25  }
   0xc   : > { %p4480_p5 = por %p37_p2, %p36_p0  ;;  %p4486_p6 = por %p5281_p4, %p42_p3 }
   0xd   : > { %5286 = sst [smem:[#allocation15_spill]] %s4478_s27  ;;  %p150_p7 = scmp.eq.s32.totalorder %s4462_s22, 1 }
   0xe   : > { %s5287_s28 = scalar_select %p4480_p5, 1, 0 }
   0xf   : > { %s5288_s29 = scalar_select %p4486_p6, 1, 0 }
  0x10   : > { %p156_p8 = scmp.eq.s32.totalorder %s3136_s23, 1  ;;  %p3137_p9 = scmp.ge.s32.totalorder %s4394_s21, 1 }
  0x11   : > { %p163_p10 = scmp.lt.s32.totalorder %s4394_s21, 3  ;;  %p4493_p11 = por %p150_p7, %p36_p0 }
  0x12   : > { %p4497_p12 = por %p156_p8, %p42_p3  ;;  %s4396_s8 = smov [#allocation5]  }
  0x13   : > { %s5289_s30 = scalar_select %p4493_p11, 1, 0 }
  0x14   : > { %s5290_s6 = scalar_select %p4497_p12, 1, 0 }
  0x15   : > { %p4501_p13 = pnand %p3137_p9, %p163_p10  ;;  %s175_s9 = sshll.u32 %s4396_s8, 4  ;;  %s176_s9 = int_to_ptr.vmem [resolvable:$true] %s175_s9 }
  0x16   : > { %s4397_s11 = smov [#allocation7]   ;;  %s4268_s15 = scalar_lea.hbm %s5276_s1, 15360 }
  0x17   : > { %s5291_s7 = scalar_select %p4501_p13, 1, 0 }
  0x18   : > { %p3960_p1 = pneg %p4501_p13  ;;  %s191_s12 = sshll.u32 %s4397_s11, 4  ;;  %s4513_s12 = int_to_ptr.vmem [resolvable:$true] %s191_s12 }
  0x19   : > { %p4269_p0 = scmp.ne.s32.totalorder %s5276_s1, %s4268_s15  ;;  %p4275_p9 = scmp.lt.u32.totalorder %s4268_s15, %s5276_s1 }
  0x1a   : > { %p4509_p2 = pnand %p3960_p1, %p5281_p4 }
  0x1c   : > { %p4270_p3 = pneg %p4509_p2 }
  0x1e   : > { %p4271_p7 = pnand %p4270_p3, %p4269_p0 }
  0x20   : > { %p4272_p8 = pneg %p4271_p7 }
  0x22   : > { %p4277_p10 = pnand %p4275_p9, %p4272_p8 }
  0x24   : > { %4280 = shalt.err (!%p4277_p10)
}
  0x25   : > { %s4281_s26 = scalar_lea.vmem %s176_s9, 15360  ;;  %p4289_p11 = scmp.lt.s32.totalorder %s176_s9, %s176_s9 }
  0x26   : > { %p4282_p1 = scmp.ne.s32.totalorder %s176_s9, %s4281_s26  ;;  %p4290_p6 = scmp.lt.s32.totalorder %s4281_s26, %s4281_s26 }
  0x28   : > { %p4284_p4 = pnand %p4282_p1, %p4270_p3  ;;  %p4291_p13 = por %p4290_p6, %p4289_p11 }
  0x2a   : > { %p4285_p12 = pneg %p4284_p4 }
  0x2c   : > { %p4292_p5 = pnand %p4291_p13, %p4285_p12 }
  0x2e   : > { %4295 = shalt.err (!%p4292_p5)
}
  0x2f   : > { %s4398_s8 = smov 192   ;;  %s4399_s11 = smov 12  }
  0x30   : > { %3963 = dma.hbm_to_vmem [thread:$0]  (!%p4509_p2), %s5276_s1, 15360, %s176_s9, [#allocation6], %s4398_s8, %s4398_s8, %s4399_s11  }
  0x31   : > { %s4296_s17 = scalar_lea.hbm %s5278_s3, 3072 }
  0x32   : > { %p4297_p4 = scmp.ne.s32.totalorder %s5278_s3, %s4296_s17  ;;  %p4303_p11 = scmp.lt.u32.totalorder %s4296_s17, %s5278_s3 }
  0x34   : > { %p4299_p5 = pnand %p4297_p4, %p4270_p3 }
  0x36   : > { %p4300_p6 = pneg %p4299_p5 }
  0x38   : > { %p4305_p12 = pnand %p4303_p11, %p4300_p6 }
  0x3a   : > { %4308 = shalt.err (!%p4305_p12)
}
  0x3b   : > { %s4309_s9 = scalar_lea.vmem %s4513_s12, 3072  ;;  %p4317_p8 = scmp.lt.s32.totalorder %s4513_s12, %s4513_s12 }
  0x3c   : > { %p4310_p13 = scmp.ne.s32.totalorder %s4513_s12, %s4309_s9  ;;  %p4318_p9 = scmp.lt.s32.totalorder %s4309_s9, %s4309_s9 }
  0x3e   : > { %p4312_p0 = pnand %p4310_p13, %p4270_p3  ;;  %p4319_p10 = por %p4318_p9, %p4317_p8 }
  0x40   : > { %p4313_p7 = pneg %p4312_p0 }
  0x42   : > { %p4320_p1 = pnand %p4319_p10, %p4313_p7 }
  0x44   : > { %4323 = shalt.err (!%p4320_p1)
}
  0x45   : > { %s4400_s27 = smov 64   ;;  %s4401_s8 = smov 4  }
  0x46   : > { %3966 = dma.hbm_to_vmem [thread:$0]  (!%p4509_p2), %s5278_s3, 3072, %s4513_s12, [#allocation6], %s4400_s27, %s4400_s27, %s4401_s8  }
  0x47   : > { %p3140_p4 = scmp.ge.s32.totalorder %s4394_s21, 2 }
  0x49   : > { %204 = sbr.rel (%p3140_p4) target bundleno = 96 (0x60), region = 32 }
  0x50   : > { %s208_s14 = sand.u32 1, %s4390_s20   ;;  %s3323_s10 = sshll.u32 %s4394_s21, 8 }
  0x51   : > { %s3939_s15 = smul.u32 192, %s208_s14  ;;  %s4402_s16 = smov 512  }
  0x52   : > { %p5293_p3 = scmp.ne.s32.totalorder %s5287_s28, 0  ;;  %s4403_s26 = smov 256  }
  0x53   : > { %s212_s23 = scalar_lea.vmem [#allocation2], %s3939_s15  ;;  %s4404_s9 = smov 4  }
  0x54   : > { %3946 = sst [smem:[#allocation10]] (%p5293_p3), %s4402_s16  ;;  %s231_s25 = sshll.u32 %s212_s23, 4  ;;  %s232_s25 = int_to_ptr.vmem [resolvable:$true] %s231_s25 }
  0x55   : > { %s3945_s12 = scalar_select %p5293_p3, [#allocation0], [#allocation11] }
  0x56   : > { %3947 = sst [smem:[#allocation10 + $0x1]] (%p5293_p3), %s4403_s26  ;;  %s218_s11 = scalar_lea.hbm %s5275_s0, %s3323_s10 }
  0x57   : > { %s223_s17 = sld [smem:[%s3945_s12]]   ;;  %s4405_s13 = smov 64  }
  0x58   : > { %3948 = sst [smem:[#allocation10 + $0x2]] (%p5293_p3), %s4404_s9  ;;  %s209_s12 = scalar_lea.sflag [#allocation3], %s208_s14 }
  0x59   : > { %3949 = sst [smem:[#allocation10 + $0x3]] (%p5293_p3), %s4405_s13  ;;  %s4406_s23 = smov [#allocation9]  }
  0x5a   : > { %3950 = sst [smem:[#allocation10 + $0x4]] (%p5293_p3), %s4405_s13 }
  0x5b   : > { %3951 = sst [smem:[#allocation10 + $0x5]] (%p5293_p3), %s4404_s9 }
  0x5d   : > { %s3143_s15 = sshll.u32 %s223_s17, 26 }
  0x5e   : > { %s3144_s16 = sadd.s32 134217728, %s3143_s15 }
  0x5f   : > { %3952 = dma.general (%p5293_p3), %s218_s11, 3072, %s232_s25, %s209_s12, %s4406_s23, [#allocation10], %s3144_s16, 0  }
  0x60 PF: > { %p5294_p2 = scmp.ne.s32.totalorder %s5291_s7, 0 }
  0x61   : > { %s4589_s10 = sand.u32 (!%p5294_p2), 1, %s4386_s19   ;;  %p5295_p5 = scmp.ne.s32.totalorder (!%p5294_p2), %s5288_s29, 0 }
  0x62   : > { %256 = sbr.rel (%p5294_p2) target bundleno = 1032 (0x408), region = 40  ;;  %s259_s27 = scalar_lea.sflag (!%p5294_p2), [#allocation3], %s4589_s10 }
  0x63   : > { %s3940_s26 = smul.u32 (!%p5294_p2), 192, %s4589_s10 }
  0x65   : > { %s4593_s8 = scalar_lea.vmem (!%p5294_p2), [#allocation2], %s3940_s26 }
  0x69   : > { %4369 = dma.done.wait (%p5295_p5), %s259_s27, 3072  }
  0x6a   : > { %4371 = vsyncadd (%p5295_p5), %s259_s27, 4294964224  ;;  %p5296_p6 = scmp.eq.s32.totalorder %s4462_s22, 0 }
  0x6c   : > { %4373 = dma.done.wait (%p5296_p6), [#allocation6], 18432   ;;  %p5297_p11 = pmov %p5296_p6 }
  0x6d   : > { %v4022_v0 = vld [vmem:[#allocation5 + $0x4] ss:$12 sps:$4 sm:$0xff]   ;;  %v4024_v1 = vld [vmem:[#allocation5 + $0xc8] ss:$12 sps:$4 sm:$0xff]   ;;  %v4025_v2 = vld [vmem:[#allocation5] ss:$12 sps:$4 sm:$0xff]  }
  0x6e   : > { %4375 = vsyncadd (%p5297_p11), [#allocation6], 4294948864  ;;  %1292 = vmatprep.subr.bf16.mxu0 %v4022_v0  ;;  %3325 = vmatprep.subr.bf16.mxu1 %v4024_v1  ;;  %v4026_v3 = vld [vmem:[#allocation5 + $0x8] ss:$12 sps:$4 sm:$0xff]   ;;  %v4029_v5 = vld [vmem:[#allocation5 + $0xe0] ss:$12 sps:$4 sm:$0xff]  }
  0x6f   : > { %1293 = vmatpush1.bf16.msra.mxu0 %v4025_v2  ;;  %v4027_v4 = vld [vmem:[#allocation5 + $0x1c] ss:$12 sps:$4 sm:$0xff]   ;;  %3326 = vmatpush3.bf16.msra.mxu1 %v4026_v3  ;;  %v4030_v6 = vld [vmem:[#allocation5 + $0x18] ss:$12 sps:$4 sm:$0xff]   ;;  %v4031_v7 = vld [vmem:[#allocation5 + $0x20] ss:$12 sps:$4 sm:$0xff]  }
  0x70   : > { %1294 = vmatprep.subr.bf16.mxu0 %v4027_v4  ;;  %3327 = vmatprep.subr.bf16.mxu1 %v4029_v5  ;;  %v4032_v8 = vld [vmem:[#allocation5 + $0x34] ss:$12 sps:$4 sm:$0xff]   ;;  %v4034_v9 = vld [vmem:[#allocation5 + $0xf8] ss:$12 sps:$4 sm:$0xff]   ;;  %v4035_v10 = vld [vmem:[#allocation5 + $0x30] ss:$12 sps:$4 sm:$0xff]  }
  0x71   : > { %v4036_v11 = vld [vmem:[#allocation5 + $0x38] ss:$12 sps:$4 sm:$0xff]   ;;  %v4039_v13 = vld [vmem:[#allocation5 + $0x110] ss:$12 sps:$4 sm:$0xff]   ;;  %v4040_v14 = vld [vmem:[#allocation5 + $0x48] ss:$12 sps:$4 sm:$0xff]  }
  0x72   : > { %v4037_v12 = vld [vmem:[#allocation5 + $0x4c] ss:$12 sps:$4 sm:$0xff]   ;;  %v4041_v15 = vld [vmem:[#allocation5 + $0x50] ss:$12 sps:$4 sm:$0xff]   ;;  %v4044_v17 = vld [vmem:[#allocation5 + $0x128] ss:$12 sps:$4 sm:$0xff]  }
  0x73   : > { %1295 = vmatpush1.bf16.msra.mxu0 %v4030_v6  ;;  %3328 = vmatpush3.bf16.msra.mxu1 %v4031_v7  ;;  %v4042_v16 = vld [vmem:[#allocation5 + $0x64] ss:$12 sps:$4 sm:$0xff]   ;;  %v4045_v18 = vld [vmem:[#allocation5 + $0x60] ss:$12 sps:$4 sm:$0xff]   ;;  %v4046_v19 = vld [vmem:[#allocation5 + $0x68] ss:$12 sps:$4 sm:$0xff]  }
  0x74   : > { %1296 = vmatprep.subr.bf16.mxu0 %v4032_v8  ;;  %3329 = vmatprep.subr.bf16.mxu1 %v4034_v9  ;;  %v4047_v20 = vld [vmem:[#allocation5 + $0x7c] ss:$12 sps:$4 sm:$0xff]   ;;  %v4049_v21 = vld [vmem:[#allocation5 + $0x140] ss:$12 sps:$4 sm:$0xff]   ;;  %v4050_v22 = vld [vmem:[#allocation5 + $0x78] ss:$12 sps:$4 sm:$0xff]  }
  0x75   : > { %v4051_v23 = vld [vmem:[#allocation5 + $0x80] ss:$12 sps:$4 sm:$0xff]   ;;  %v4054_v25 = vld [vmem:[#allocation5 + $0x158] ss:$12 sps:$4 sm:$0xff]   ;;  %v4055_v26 = vld [vmem:[#allocation5 + $0x90] ss:$12 sps:$4 sm:$0xff]  }
  0x76   : > { %v4052_v24 = vld [vmem:[#allocation5 + $0x94] ss:$12 sps:$4 sm:$0xff]   ;;  %v4056_v27 = vld [vmem:[#allocation5 + $0x98] ss:$12 sps:$4 sm:$0xff]   ;;  %v4059_v29 = vld [vmem:[#allocation5 + $0x170] ss:$12 sps:$4 sm:$0xff]  }
  0x77   : > { %1297 = vmatpush1.bf16.msra.mxu0 %v4035_v10  ;;  %3330 = vmatpush3.bf16.msra.mxu1 %v4036_v11  ;;  %v4057_v28 = vld [vmem:[#allocation5 + $0xac] ss:$12 sps:$4 sm:$0xff]   ;;  %v4604_v30 = vld [vmem:[%s4593_s8 + $0x10] sm:$0xff]   ;;  %v4608_v34 = vld [vmem:[%s4593_s8] sm:$0xff]   ;;  %s3148_s17 = sshll.u32 %s4589_s10, 5  ;;  %s3324_s11 = sshll.u32 %s4462_s22, 9 }
  0x78   : > { %1298 = vmatprep.subr.bf16.mxu0 %v4037_v12  ;;  %3331 = vmatprep.subr.bf16.mxu1 %v4039_v13  ;;  %v4060_v31 = vld [vmem:[#allocation5 + $0xa8] ss:$12 sps:$4 sm:$0xff]   ;;  %v4061_v32 = vld [vmem:[#allocation5 + $0xb0] ss:$12 sps:$4 sm:$0xff]   ;;  %v4610_v35 = vld [vmem:[#allocation5 + $0xc0] ss:$12 sps:$4 sm:$0xff]   ;;  %s5231_s16 = scalar_lea.hbm %s5280_s5, %s3324_s11 }
  0x79   : > { %v4063_v33 = vld [vmem:[#allocation5 + $0xc4] ss:$12 sps:$4 sm:$0xff]   ;;  %1903 = vmatprep.mubr.bf16.mxu1 %v4604_v30  ;;  %1324 = vmatprep.mubr.bf16.mxu0 %v4604_v30  ;;  %v4067_v36 = vld [vmem:[#allocation5 + $0xdc] ss:$12 sps:$4 sm:$0xff]   ;;  %v4071_v39 = vld [vmem:[#allocation5 + $0xf4] ss:$12 sps:$4 sm:$0xff]  }
  0x7a   : > { %v4614_v37 = vld [vmem:[%s4593_s8 + $0x18] sm:$0xff]   ;;  %v4620_v40 = vld [vmem:[%s4593_s8 + $0x8] sm:$0xff]   ;;  %v4623_v43 = vld [vmem:[%s4593_s8 + $0x20] sm:$0xff]   ;;  %s296_s25 = scalar_lea.vmem [#allocation8], %s3148_s17  ;;  %s3031_s12 = scalar_lea.sflag [#allocation4], %s4589_s10 }
  0x7b   : > { %1299 = vmatpush1.bf16.msra.mxu0 %v4040_v14  ;;  %3332 = vmatpush3.bf16.msra.mxu1 %v4041_v15  ;;  %v4069_v38 = vld [vmem:[#allocation5 + $0xd8] ss:$12 sps:$4 sm:$0xff]   ;;  %v4074_v41 = vld [vmem:[#allocation5 + $0xf0] ss:$12 sps:$4 sm:$0xff]   ;;  %v4077_v44 = vld [vmem:[#allocation5 + $0x108] ss:$12 sps:$4 sm:$0xff]  }
  0x7c   : > { %1300 = vmatprep.subr.bf16.mxu0 %v4042_v16  ;;  %3333 = vmatprep.subr.bf16.mxu1 %v4044_v17  ;;  %v4075_v42 = vld [vmem:[#allocation5 + $0x10c] ss:$12 sps:$4 sm:$0xff]   ;;  %v4079_v45 = vld [vmem:[#allocation5 + $0x124] ss:$12 sps:$4 sm:$0xff]   ;;  %v4096_v46 = vld [vmem:[#allocation5 + $0x248] ss:$12 sps:$4 sm:$0xff]  }
  0x7d   : > { %v4097_v47 = vld [vmem:[#allocation5 + $0x188] ss:$12 sps:$4 sm:$0xff]   ;;  %v4081_v48 = vld [vmem:[#allocation5 + $0x120] ss:$12 sps:$4 sm:$0xff]   ;;  %v4084_v51 = vld [vmem:[#allocation5 + $0x138] ss:$12 sps:$4 sm:$0xff]  }
  0x7e   : > { %v4082_v49 = vld [vmem:[#allocation5 + $0x13c] ss:$12 sps:$4 sm:$0xff]   ;;  %v4086_v52 = vld [vmem:[#allocation5 + $0x154] ss:$12 sps:$4 sm:$0xff]   ;;  %v4089_v56 = vld [vmem:[#allocation5 + $0x16c] ss:$12 sps:$4 sm:$0xff]  }
  0x7f   : > { %1301 = vmatpush1.bf16.msra.mxu0 %v4045_v18  ;;  %3334 = vmatpush3.bf16.msra.mxu1 %v4046_v19  ;;  %v4628_v50 = vld [vmem:[%s4593_s8 + $0x28] sm:$0xff]   ;;  %v4088_v55 = vld [vmem:[#allocation5 + $0x150] ss:$12 sps:$4 sm:$0xff]   ;;  %v4116_v59 = vld [vmem:[#allocation5 + $0x278] ss:$12 sps:$4 sm:$0xff]   ;;  %s3044_s9 = sshll.u32 %s296_s25, 4  ;;  %s5226_s9 = int_to_ptr.vmem [resolvable:$true] %s3044_s9 }
  0x80   : > { %1302 = vmatprep.subr.bf16.mxu0 %v4047_v20  ;;  %3335 = vmatprep.subr.bf16.mxu1 %v4049_v21  ;;  %v4106_v53 = vld [vmem:[#allocation5 + $0x260] ss:$12 sps:$4 sm:$0xff]   ;;  %v4633_v57 = vld [vmem:[%s4593_s8 + $0x30] sm:$0xff]   ;;  %v4117_v60 = vld [vmem:[#allocation5 + $0x1b8] ss:$12 sps:$4 sm:$0xff]   ;;  %s4324_s23 = scalar_lea.vmem %s5226_s9, 512 }
  0x81   : > { %v4107_v54 = vld [vmem:[#allocation5 + $0x1a0] ss:$12 sps:$4 sm:$0xff]   ;;  %v4091_v58 = vld [vmem:[#allocation5 + $0x168] ss:$12 sps:$4 sm:$0xff]   ;;  %v4095_v61 = vld [vmem:[#allocation5 + $0x184] ss:$12 sps:$4 sm:$0xff]   ;;  %p4325_p12 = scmp.ne.s32.totalorder %s5226_s9, %s4324_s23 }
  0x82   : > { %v4637_v62 = vld [vmem:[#allocation5 + $0x180] ss:$12 sps:$4 sm:$0xff]   ;;  %v4640_v63 = vld [vmem:[%s4593_s8 + $0x38] sm:$0xff]   ;;  %v4136_v8 = vld [vmem:[#allocation5 + $0x2a8] ss:$12 sps:$4 sm:$0xff]   ;;  %p5298_p13 = scmp.ne.s32.totalorder %s5289_s30, 0 }
  0x83   : > { %1303 = vmatpush1.bf16.msra.mxu0 %v4050_v22  ;;  %3336 = vmatpush3.bf16.msra.mxu1 %v4051_v23  ;;  %v4642_v0 = vld [vmem:[#allocation5 + $0x19c] ss:$12 sps:$4 sm:$0xff]   ;;  %v4099_v3 = vld [vmem:[#allocation5 + $0x198] ss:$12 sps:$4 sm:$0xff]   ;;  %v4649_v4 = vld [vmem:[#allocation5 + $0x1b4] ss:$12 sps:$4 sm:$0xff]  }
  0x84   : > { %1304 = vmatprep.subr.bf16.mxu0 %v4052_v24  ;;  %3337 = vmatprep.subr.bf16.mxu1 %v4054_v25  ;;  %v4126_v1 = vld [vmem:[#allocation5 + $0x290] ss:$12 sps:$4 sm:$0xff]   ;;  %v4653_v5 = vld [vmem:[%s4593_s8 + $0x40] sm:$0xff]   ;;  %v4655_v7 = vld [vmem:[#allocation5 + $0x1cc] ss:$12 sps:$4 sm:$0xff]   ;;  %p4326_p0 = pnand %p4325_p12, %p5298_p13  ;;  %s4408_s22 = smov [#allocation8]  }
  0x85   : > { %v4127_v2 = vld [vmem:[#allocation5 + $0x1d0] ss:$12 sps:$4 sm:$0xff]   ;;  %v4137_v9 = vld [vmem:[#allocation5 + $0x1e8] ss:$12 sps:$4 sm:$0xff]   ;;  %v4146_v13 = vld [vmem:[#allocation5 + $0x2c0] ss:$12 sps:$4 sm:$0xff]  }
  0x86   : > { %v4103_v6 = vld [vmem:[#allocation5 + $0x1b0] ss:$12 sps:$4 sm:$0xff]   ;;  %v4109_v10 = vld [vmem:[#allocation5 + $0x1c8] ss:$12 sps:$4 sm:$0xff]   ;;  %v4147_v14 = vld [vmem:[#allocation5 + $0x200] ss:$12 sps:$4 sm:$0xff]   ;;  %p4327_p7 = pneg %p4326_p0 }
  0x87   : > { %1305 = vmatpush1.bf16.msra.mxu0 %v4055_v26  ;;  %3338 = vmatpush3.bf16.msra.mxu1 %v4056_v27  ;;  %v4663_v11 = vld [vmem:[#allocation5 + $0x1e4] ss:$12 sps:$4 sm:$0xff]   ;;  %v4666_v12 = vld [vmem:[%s4593_s8 + $0x48] sm:$0xff]   ;;  %v4674_v18 = vld [vmem:[#allocation5 + $0x214] ss:$12 sps:$4 sm:$0xff]   ;;  %s4328_s26 = sshll.u32 %s4408_s22, 4  ;;  %s4329_s26 = int_to_ptr.vmem [resolvable:$false] %s4328_s26 }
  0x88   : > { %1306 = vmatprep.subr.bf16.mxu0 %v4057_v28  ;;  %3339 = vmatprep.subr.bf16.mxu1 %v4059_v29  ;;  %v4113_v15 = vld [vmem:[#allocation5 + $0x1e0] ss:$12 sps:$4 sm:$0xff]   ;;  %v4669_v16 = vld [vmem:[#allocation5 + $0x1fc] ss:$12 sps:$4 sm:$0xff]   ;;  %v4119_v17 = vld [vmem:[#allocation5 + $0x1f8] ss:$12 sps:$4 sm:$0xff]   ;;  %p4331_p8 = scmp.lt.s32.totalorder %s5226_s9, %s4329_s26 }
  0x89   : > { %v4152_v19 = vld [vmem:[#allocation5 + $0x2d8] ss:$12 sps:$4 sm:$0xff]   ;;  %v4154_v21 = vld [vmem:[#allocation5 + $0x2f0] ss:$12 sps:$4 sm:$0xff]   ;;  %v4691_v26 = vld [vmem:[#allocation5 + $0x228] ss:$12 sps:$4 sm:$0xff]  }
  0x8a   : > { %v4153_v20 = vld [vmem:[#allocation5 + $0x218] ss:$12 sps:$4 sm:$0xff]   ;;  %v4155_v22 = vld [vmem:[#allocation5 + $0x230] ss:$12 sps:$4 sm:$0xff]   ;;  %v4696_v28 = vld [vmem:[#allocation5 + $0x308] ss:$12 sps:$4 sm:$0xff]  }
  0x8b   : > { %1307 = vmatpush1.bf16.msra.mxu0 %v4060_v31  ;;  %3340 = vmatpush3.bf16.msra.mxu1 %v4061_v32  ;;  %v4679_v23 = vld [vmem:[%s4593_s8 + $0x50] sm:$0xff]   ;;  %v4684_v25 = vld [vmem:[#allocation5 + $0x22c] ss:$12 sps:$4 sm:$0xff]   ;;  %v4703_v31 = vld [vmem:[#allocation5 + $0x25c] ss:$12 sps:$4 sm:$0xff]   ;;  %s4330_s27 = scalar_lea.vmem %s4329_s26, 1024 }
  0x8c   : > { %1308 = vmatprep.subr.bf16.mxu0 %v4063_v33  ;;  %3437 = vmatprep.subr.bf16.mxu1 %v4096_v46  ;;  %v4681_v24 = vld [vmem:[#allocation5 + $0x210] ss:$12 sps:$4 sm:$0xff]   ;;  %v4139_v32 = vld [vmem:[#allocation5 + $0x258] ss:$12 sps:$4 sm:$0xff]   ;;  %v4709_v33 = vld [vmem:[#allocation5 + $0x274] ss:$12 sps:$4 sm:$0xff]   ;;  %p4332_p9 = scmp.lt.s32.totalorder %s4330_s27, %s4324_s23 }
  0x8d   : > { %v4693_v27 = vld [vmem:[#allocation5 + $0x244] ss:$12 sps:$4 sm:$0xff]   ;;  %v4699_v29 = vld [vmem:[%s4593_s8 + $0x58] sm:$0xff]  }
  0x8e   : > { %1904 = vmatmul.mubr.bf16.vlgmr.msra.gmra.mrb[0].mxu1 %v4608_v34  ;;  %v4740_v46 = vld [vmem:[%s4593_s8 + $0x70] sm:$0xff]   ;;  %p4333_p10 = por %p4332_p9, %p4331_p8 }
  0x8f   : > { %1309 = vmatpush1.bf16.msra.mxu0 %v4610_v35  ;;  %1911 = vmatprep.mubr.bf16.mxu1 %v4614_v37 }
  0x90   : > { %1310 = vmatprep.subr.bf16.mxu0 %v4067_v36  ;;  %3438 = vmatpush3.bf16.msra.mxu1 %v4097_v47  ;;  %v4143_v36 = vld [vmem:[#allocation5 + $0x270] ss:$12 sps:$4 sm:$0xff]   ;;  %p4334_p1 = pnand %p4333_p10, %p4327_p7 }
  0x91   : > { %3439 = vmatprep.subr.bf16.mxu1 %v4106_v53  ;;  %v4162_v47 = vld [vmem:[#allocation5 + $0x2d0] ss:$12 sps:$4 sm:$0xff]   ;;  %v4758_v53 = vld [vmem:[%s4593_s8 + $0x80] sm:$0xff]  }
  0x93   : > { %1311 = vmatpush1.bf16.msra.mxu0 %v4069_v38  ;;  %v4149_v38 = vld [vmem:[#allocation5 + $0x288] ss:$12 sps:$4 sm:$0xff]  }
  0x94   : > { %1312 = vmatprep.subr.bf16.mxu0 %v4071_v39  ;;  %3440 = vmatpush3.bf16.msra.mxu1 %v4107_v54  ;;  %v4722_v39 = vld [vmem:[#allocation5 + $0x2a4] ss:$12 sps:$4 sm:$0xff]   ;;  %v4765_v54 = vld [vmem:[%s4593_s8 + $0x88] sm:$0xff]  }
  0x95   : > { %3441 = vmatprep.subr.bf16.mxu1 %v4116_v59  ;;  %v4188_v59 = vld [vmem:[#allocation5 + $0x368] ss:$12 sps:$4 sm:$0xff]  }
  0x96   : > { %1912 = vmatmul.mubr.bf16.gmra.mrb[4].mxu1 %v4620_v40 }
  0x97   : > { %1313 = vmatpush1.bf16.msra.mxu0 %v4074_v41  ;;  %1919 = vmatprep.mubr.bf16.mxu1 %v4623_v43  ;;  %v4156_v41 = vld [vmem:[#allocation5 + $0x2a0] ss:$12 sps:$4 sm:$0xff]  }
  0x98   : > { %1314 = vmatprep.subr.bf16.mxu0 %v4075_v42  ;;  %3442 = vmatpush3.bf16.msra.mxu1 %v4117_v60  ;;  %v4729_v42 = vld [vmem:[#allocation5 + $0x2bc] ss:$12 sps:$4 sm:$0xff]   ;;  %v4194_v60 = vld [vmem:[#allocation5 + $0x380] ss:$12 sps:$4 sm:$0xff]  }
  0x99   : > { %3443 = vmatprep.subr.bf16.mxu1 %v4126_v1  ;;  %v4197_v1 = vld [vmem:[#allocation5 + $0x3b0] ss:$12 sps:$4 sm:$0xff]  }
  0x9b   : > { %1315 = vmatpush1.bf16.msra.mxu0 %v4077_v44  ;;  %v4159_v44 = vld [vmem:[#allocation5 + $0x2b8] ss:$12 sps:$4 sm:$0xff]  }
  0x9c   : > { %1316 = vmatprep.subr.bf16.mxu0 %v4079_v45  ;;  %3444 = vmatpush3.bf16.msra.mxu1 %v4127_v2  ;;  %v4735_v45 = vld [vmem:[#allocation5 + $0x2d4] ss:$12 sps:$4 sm:$0xff]  }
  0x9d   : > { %3445 = vmatprep.subr.bf16.mxu1 %v4136_v8  ;;  %v4168_v2 = vld [vmem:[#allocation5 + $0x300] ss:$12 sps:$4 sm:$0xff]  }
  0x9e   : > { %1920 = vmatmul.mubr.bf16.gmra.mrb[8].mxu1 %v4604_v30  ;;  %v4178_v8 = vld [vmem:[#allocation5 + $0x334] ss:$12 sps:$4 sm:$0xff]  }
  0x9f   : > { %1317 = vmatpush1.bf16.msra.mxu0 %v4081_v48  ;;  %1927 = vmatprep.mubr.bf16.mxu1 %v4628_v50  ;;  %v4742_v48 = vld [vmem:[#allocation5 + $0x2ec] ss:$12 sps:$4 sm:$0xff]  }
  0xa0   : > { %1318 = vmatprep.subr.bf16.mxu0 %v4082_v49  ;;  %3446 = vmatpush3.bf16.msra.mxu1 %v4137_v9  ;;  %v4165_v49 = vld [vmem:[#allocation5 + $0x2e8] ss:$12 sps:$4 sm:$0xff]   ;;  %v4176_v9 = vld [vmem:[#allocation5 + $0x330] ss:$12 sps:$4 sm:$0xff]  }
  0xa1   : > { %3447 = vmatprep.subr.bf16.mxu1 %v4146_v13  ;;  %v4185_v13 = vld [vmem:[#allocation5 + $0x360] ss:$12 sps:$4 sm:$0xff]  }
  0xa3   : > { %1319 = vmatpush1.bf16.msra.mxu0 %v4084_v51  ;;  %v4170_v51 = vld [vmem:[#allocation5 + $0x304] ss:$12 sps:$4 sm:$0xff]  }
  0xa4   : > { %1320 = vmatprep.subr.bf16.mxu0 %v4086_v52  ;;  %3448 = vmatpush3.bf16.msra.mxu1 %v4147_v14  ;;  %v4751_v52 = vld [vmem:[%s4593_s8 + $0x78] sm:$0xff]  }
  0xa5   : > { %3449 = vmatprep.subr.bf16.mxu1 %v4152_v19  ;;  %v4193_v14 = vld [vmem:[#allocation5 + $0x37c] ss:$12 sps:$4 sm:$0xff]   ;;  %v4203_v19 = vld [vmem:[#allocation5 + $0x3ac] ss:$12 sps:$4 sm:$0xff]  }
  0xa6   : > { %1928 = vmatmul.mubr.bf16.gmra.mrb[12].mxu1 %v4614_v37 }
  0xa7   : > { %1321 = vmatpush1.bf16.msra.mxu0 %v4088_v55  ;;  %1935 = vmatprep.mubr.bf16.mxu1 %v4633_v57  ;;  %v4175_v55 = vld [vmem:[#allocation5 + $0x320] ss:$12 sps:$4 sm:$0xff]  }
  0xa8   : > { %1322 = vmatprep.subr.bf16.mxu0 %v4089_v56  ;;  %3450 = vmatpush3.bf16.msra.mxu1 %v4153_v20  ;;  %v4179_v56 = vld [vmem:[#allocation5 + $0x338] ss:$12 sps:$4 sm:$0xff]  }
  0xa9   : > { %3451 = vmatprep.subr.bf16.mxu1 %v4154_v21  ;;  %v4823_v21 = vld [vmem:[%s4593_s8 + $0x90] sm:$0xff]  }
  0xab   : > { %1323 = vmatpush1.bf16.msra.mxu0 %v4091_v58  ;;  %v4183_v58 = vld [vmem:[#allocation5 + $0x350] ss:$12 sps:$4 sm:$0xff]  }
  0xac   : > { %1485 = vmatprep.subr.bf16.mxu0 %v4095_v61  ;;  %3452 = vmatpush3.bf16.msra.mxu1 %v4155_v22  ;;  %v4196_v61 = vld [vmem:[#allocation5 + $0x398] ss:$12 sps:$4 sm:$0xff]  }
  0xad   : > { %3719 = vmatprep.subr.bf16.mxu1 %v4696_v28 }
  0xae   : > { %1325 = vmatmul.mubr.bf16.vlgmr.msra.gmra.mrb[0].mxu0 %v4608_v34  ;;  %1936 = vmatmul.mubr.bf16.gmra.mrb[16].mxu1 %v4623_v43  ;;  %v4714_v34 = vld [vmem:[%s4593_s8 + $0x60] sm:$0xff]  }
  0xaf   : > { %1486 = vmatpush1.bf16.msra.mxu0 %v4637_v62  ;;  %1334 = vmatprep.mubr.bf16.mxu0 %v4614_v37 }
  0xb0   : > { %1943 = vmatprep.mubr.bf16.mxu1 %v4640_v63  ;;  %1487 = vmatprep.subr.bf16.mxu0 %v4642_v0 }
  0xb3   : > { %1488 = vmatpush1.bf16.msra.mxu0 %v4099_v3  ;;  %v4174_v3 = vld [vmem:[#allocation5 + $0x31c] ss:$12 sps:$4 sm:$0xff]  }
  0xb4   : > { %1489 = vmatprep.subr.bf16.mxu0 %v4649_v4 }
  0xb6   : > { %1335 = vmatmul.mubr.bf16.gmra.mrb[4].mxu0 %v4620_v40  ;;  %1944 = vmatmul.mubr.bf16.gmra.mrb[20].mxu1 %v4628_v50  ;;  %v4727_v40 = vld [vmem:[%s4593_s8 + $0x68] sm:$0xff]  }
  0xb7   : > { %1344 = vmatprep.mubr.bf16.mxu0 %v4623_v43  ;;  %1951 = vmatprep.mubr.bf16.mxu1 %v4653_v5 }
  0xb8   : > { %1490 = vmatpush1.bf16.msra.mxu0 %v4103_v6  ;;  %v4172_v6 = vld [vmem:[#allocation5 + $0x318] ss:$12 sps:$4 sm:$0xff]  }
  0xb9   : > { %1491 = vmatprep.subr.bf16.mxu0 %v4655_v7 }
  0xbc   : > { %1492 = vmatpush1.bf16.msra.mxu0 %v4109_v10  ;;  %v4182_v10 = vld [vmem:[#allocation5 + $0x34c] ss:$12 sps:$4 sm:$0xff]  }
  0xbd   : > { %1493 = vmatprep.subr.bf16.mxu0 %v4663_v11 }
  0xbe   : > { %1345 = vmatmul.mubr.bf16.gmra.mrb[8].mxu0 %v4604_v30  ;;  %1952 = vmatmul.mubr.bf16.gmra.mrb[24].mxu1 %v4633_v57  ;;  %v4133_v30 = vld [vmem:[#allocation5 + $0x240] ss:$12 sps:$4 sm:$0xff]  }
  0xbf   : > { %1354 = vmatprep.mubr.bf16.mxu0 %v4628_v50  ;;  %1959 = vmatprep.mubr.bf16.mxu1 %v4666_v12 }
  0xc0   : > { %1494 = vmatpush1.bf16.msra.mxu0 %v4113_v15  ;;  %v4200_v15 = vld [vmem:[#allocation5 + $0x394] ss:$12 sps:$4 sm:$0xff]  }
  0xc1   : > { %1495 = vmatprep.subr.bf16.mxu0 %v4669_v16 }
  0xc4   : > { %1496 = vmatpush1.bf16.msra.mxu0 %v4119_v17  ;;  %v4198_v17 = vld [vmem:[#allocation5 + $0x390] ss:$12 sps:$4 sm:$0xff]  }
  0xc5   : > { %1497 = vmatprep.subr.bf16.mxu0 %v4674_v18 }
  0xc6   : > { %1355 = vmatmul.mubr.bf16.gmra.mrb[12].mxu0 %v4614_v37  ;;  %1960 = vmatmul.mubr.bf16.gmra.mrb[28].mxu1 %v4640_v63  ;;  %v4716_v37 = vld [vmem:[#allocation5 + $0x28c] ss:$12 sps:$4 sm:$0xff]  }
  0xc7   : > { %1364 = vmatprep.mubr.bf16.mxu0 %v4633_v57  ;;  %1967 = vmatprep.mubr.bf16.mxu1 %v4679_v23 }
  0xc8   : > { %1498 = vmatpush1.bf16.msra.mxu0 %v4681_v24 }
  0xc9   : > { %1499 = vmatprep.subr.bf16.mxu0 %v4684_v25 }
  0xcc   : > { %1500 = vmatpush1.bf16.msra.mxu0 %v4691_v26 }
  0xcd   : > { %1501 = vmatprep.subr.bf16.mxu0 %v4693_v27 }
  0xce   : > { %1365 = vmatmul.mubr.bf16.gmra.mrb[16].mxu0 %v4623_v43  ;;  %1968 = vmatmul.mubr.bf16.gmra.mrb[32].mxu1 %v4653_v5 }
  0xcf   : > { %1374 = vmatprep.mubr.bf16.mxu0 %v4640_v63  ;;  %1975 = vmatprep.mubr.bf16.mxu1 %v4699_v29 }
  0xd0   : > { %1502 = vmatpush1.bf16.msra.mxu0 %v4133_v30 }
  0xd1   : > { %1503 = vmatprep.subr.bf16.mxu0 %v4703_v31 }
  0xd4   : > { %1504 = vmatpush1.bf16.msra.mxu0 %v4139_v32 }
  0xd5   : > { %1505 = vmatprep.subr.bf16.mxu0 %v4709_v33 }
  0xd6   : > { %1375 = vmatmul.mubr.bf16.gmra.mrb[20].mxu0 %v4628_v50  ;;  %1976 = vmatmul.mubr.bf16.gmra.mrb[36].mxu1 %v4666_v12 }
  0xd7   : > { %1384 = vmatprep.mubr.bf16.mxu0 %v4653_v5  ;;  %1983 = vmatprep.mubr.bf16.mxu1 %v4714_v34 }
  0xd8   : > { %1506 = vmatpush1.bf16.msra.mxu0 %v4143_v36 }
  0xd9   : > { %1507 = vmatprep.subr.bf16.mxu0 %v4716_v37 }
  0xdc   : > { %1508 = vmatpush1.bf16.msra.mxu0 %v4149_v38  ;;  %v4834_v38 = vld [vmem:[%s4593_s8 + $0x98] sm:$0xff]  }
  0xdd   : > { %1509 = vmatprep.subr.bf16.mxu0 %v4722_v39 }
  0xde   : > { %1385 = vmatmul.mubr.bf16.gmra.mrb[24].mxu0 %v4633_v57  ;;  %1984 = vmatmul.mubr.bf16.gmra.mrb[40].mxu1 %v4679_v23 }
  0xdf   : > { %1394 = vmatprep.mubr.bf16.mxu0 %v4666_v12  ;;  %1991 = vmatprep.mubr.bf16.mxu1 %v4727_v40 }
  0xe0   : > { %1510 = vmatpush1.bf16.msra.mxu0 %v4156_v41 }
  0xe1   : > { %1511 = vmatprep.subr.bf16.mxu0 %v4729_v42 }
  0xe4   : > { %1512 = vmatpush1.bf16.msra.mxu0 %v4159_v44 }
  0xe5   : > { %1513 = vmatprep.subr.bf16.mxu0 %v4735_v45 }
  0xe6   : > { %1395 = vmatmul.mubr.bf16.gmra.mrb[28].mxu0 %v4640_v63  ;;  %1992 = vmatmul.mubr.bf16.gmra.mrb[44].mxu1 %v4699_v29 }
  0xe7   : > { %1404 = vmatprep.mubr.bf16.mxu0 %v4679_v23  ;;  %1999 = vmatprep.mubr.bf16.mxu1 %v4740_v46 }
  0xe8   : > { %1514 = vmatpush1.bf16.msra.mxu0 %v4162_v47 }
  0xe9   : > { %1515 = vmatprep.subr.bf16.mxu0 %v4742_v48 }
  0xec   : > { %1516 = vmatpush1.bf16.msra.mxu0 %v4165_v49 }
  0xed   : > { %1678 = vmatprep.subr.bf16.mxu0 %v4170_v51 }
  0xee   : > { %1405 = vmatmul.mubr.bf16.gmra.mrb[32].mxu0 %v4653_v5  ;;  %2000 = vmatmul.mubr.bf16.gmra.mrb[48].mxu1 %v4714_v34 }
  0xef   : > { %1414 = vmatprep.mubr.bf16.mxu0 %v4699_v29  ;;  %2007 = vmatprep.mubr.bf16.mxu1 %v4751_v52 }
  0xf6   : > { %1415 = vmatmul.mubr.bf16.gmra.mrb[36].mxu0 %v4666_v12  ;;  %2008 = vmatmul.mubr.bf16.gmra.mrb[52].mxu1 %v4727_v40 }
  0xf7   : > { %1424 = vmatprep.mubr.bf16.mxu0 %v4714_v34  ;;  %2015 = vmatprep.mubr.bf16.mxu1 %v4758_v53 }
  0xfe   : > { %1425 = vmatmul.mubr.bf16.gmra.mrb[40].mxu0 %v4679_v23  ;;  %2016 = vmatmul.mubr.bf16.gmra.mrb[56].mxu1 %v4740_v46 }
  0xff   : > { %1434 = vmatprep.mubr.bf16.mxu0 %v4727_v40  ;;  %2023 = vmatprep.mubr.bf16.mxu1 %v4765_v54 }
 0x106   : > { %1435 = vmatmul.mubr.bf16.gmra.mrb[44].mxu0 %v4699_v29  ;;  %2024 = vmatmul.mubr.bf16.gmra.mrb[60].mxu1 %v4751_v52 }
 0x107   : > { %1444 = vmatprep.mubr.bf16.mxu0 %v4740_v46  ;;  %2064 = vmatprep.mubr.bf16.mxu1 %v4633_v57 }
 0x10e   : > { %1445 = vmatmul.mubr.bf16.gmra.mrb[48].mxu0 %v4714_v34  ;;  %2065 = vmatmul.mubr.bf16.vlgmr.msra.gmra.mrb[64].mxu1 %v4623_v43 }
 0x10f   : > { %1454 = vmatprep.mubr.bf16.mxu0 %v4751_v52  ;;  %2072 = vmatprep.mubr.bf16.mxu1 %v4640_v63 }
 0x110   : > { %3720 = vmatpush3.bf16.msra.mxu1 %v4696_v28 }
 0x111   : > { %3721 = vmatprep.subr.bf16.mxu1 %v4175_v55 }
 0x114   : > { %3722 = vmatpush3.bf16.msra.mxu1 %v4175_v55 }
 0x115   : > { %3723 = vmatprep.subr.bf16.mxu1 %v4179_v56 }
 0x116   : > { %1455 = vmatmul.mubr.bf16.gmra.mrb[52].mxu0 %v4727_v40  ;;  %2073 = vmatmul.mubr.bf16.gmra.mrb[68].mxu1 %v4628_v50 }
 0x117   : > { %1464 = vmatprep.mubr.bf16.mxu0 %v4758_v53  ;;  %2080 = vmatprep.mubr.bf16.mxu1 %v4653_v5 }
 0x118   : > { %3724 = vmatpush3.bf16.msra.mxu1 %v4179_v56  ;;  %v4845_v56 = vld [vmem:[%s4593_s8 + $0xa0] sm:$0xff]  }
 0x119   : > { %3725 = vmatprep.subr.bf16.mxu1 %v4183_v58 }
 0x11c   : > { %3726 = vmatpush3.bf16.msra.mxu1 %v4183_v58 }
 0x11d   : > { %3727 = vmatprep.subr.bf16.mxu1 %v4188_v59 }
 0x11e   : > { %1465 = vmatmul.mubr.bf16.gmra.mrb[56].mxu0 %v4740_v46  ;;  %2081 = vmatmul.mubr.bf16.gmra.mrb[72].mxu1 %v4633_v57 }
 0x11f   : > { %1474 = vmatprep.mubr.bf16.mxu0 %v4765_v54  ;;  %2088 = vmatprep.mubr.bf16.mxu1 %v4666_v12 }
 0x120   : > { %3728 = vmatpush3.bf16.msra.mxu1 %v4188_v59 }
 0x121   : > { %3729 = vmatprep.subr.bf16.mxu1 %v4194_v60 }
 0x124   : > { %3730 = vmatpush3.bf16.msra.mxu1 %v4194_v60 }
 0x125   : > { %3731 = vmatprep.subr.bf16.mxu1 %v4196_v61 }
 0x126   : > { %1475 = vmatmul.mubr.bf16.gmra.mrb[60].mxu0 %v4751_v52  ;;  %2089 = vmatmul.mubr.bf16.gmra.mrb[76].mxu1 %v4640_v63 }
 0x127   : > { %1517 = vmatprep.mubr.bf16.mxu0 %v4633_v57  ;;  %2096 = vmatprep.mubr.bf16.mxu1 %v4679_v23 }
 0x128   : > { %3732 = vmatpush3.bf16.msra.mxu1 %v4196_v61 }
 0x129   : > { %3733 = vmatprep.subr.bf16.mxu1 %v4197_v1 }
 0x12c   : > { %3734 = vmatpush3.bf16.msra.mxu1 %v4197_v1 }
 0x12d   : > { %3573 = vmatprep.subr.bf16.mxu1 %v4610_v35  ;;  %v4180_v35 = vld [vmem:[#allocation5 + $0x348] ss:$12 sps:$4 sm:$0xff]  }
 0x12e   : > { %1518 = vmatmul.mubr.bf16.vlgmr.msra.gmra.mrb[0].mxu0 %v4623_v43  ;;  %2097 = vmatmul.mubr.bf16.gmra.mrb[80].mxu1 %v4653_v5  ;;  %v4187_v43 = vld [vmem:[#allocation5 + $0x364] ss:$12 sps:$4 sm:$0xff]  }
 0x12f   : > { %1679 = vmatpush1.bf16.msra.mxu0 %v4168_v2  ;;  %1527 = vmatprep.mubr.bf16.mxu0 %v4640_v63 }
 0x130   : > { %2104 = vmatprep.mubr.bf16.mxu1 %v4699_v29  ;;  %1680 = vmatprep.subr.bf16.mxu0 %v4174_v3  ;;  %v4856_v3 = vld [vmem:[%s4593_s8 + $0xa8] sm:$0xff]  }
 0x133   : > { %1681 = vmatpush1.bf16.msra.mxu0 %v4172_v6 }
 0x134   : > { %1682 = vmatprep.subr.bf16.mxu0 %v4178_v8 }
 0x136   : > { %1528 = vmatmul.mubr.bf16.gmra.mrb[4].mxu0 %v4628_v50  ;;  %2105 = vmatmul.mubr.bf16.gmra.mrb[84].mxu1 %v4666_v12  ;;  %v4191_v50 = vld [vmem:[#allocation5 + $0x378] ss:$12 sps:$4 sm:$0xff]  }
 0x137   : > { %1537 = vmatprep.mubr.bf16.mxu0 %v4653_v5  ;;  %2112 = vmatprep.mubr.bf16.mxu1 %v4714_v34 }
 0x138   : > { %1683 = vmatpush1.bf16.msra.mxu0 %v4176_v9 }
 0x139   : > { %1684 = vmatprep.subr.bf16.mxu0 %v4182_v10 }
 0x13c   : > { %1685 = vmatpush1.bf16.msra.mxu0 %v4180_v35 }
 0x13d   : > { %1686 = vmatprep.subr.bf16.mxu0 %v4187_v43 }
 0x13e   : > { %1538 = vmatmul.mubr.bf16.gmra.mrb[8].mxu0 %v4633_v57  ;;  %2113 = vmatmul.mubr.bf16.gmra.mrb[88].mxu1 %v4679_v23  ;;  %v4201_v57 = vld [vmem:[#allocation5 + $0x3a8] ss:$12 sps:$4 sm:$0xff]  }
 0x13f   : > { %1547 = vmatprep.mubr.bf16.mxu0 %v4666_v12  ;;  %2120 = vmatprep.mubr.bf16.mxu1 %v4727_v40 }
 0x140   : > { %1687 = vmatpush1.bf16.msra.mxu0 %v4185_v13 }
 0x141   : > { %1688 = vmatprep.subr.bf16.mxu0 %v4193_v14 }
 0x144   : > { %1689 = vmatpush1.bf16.msra.mxu0 %v4191_v50 }
 0x145   : > { %1690 = vmatprep.subr.bf16.mxu0 %v4200_v15 }
 0x146   : > { %1548 = vmatmul.mubr.bf16.gmra.mrb[12].mxu0 %v4640_v63  ;;  %2121 = vmatmul.mubr.bf16.gmra.mrb[92].mxu1 %v4699_v29 }
 0x147   : > { %1557 = vmatprep.mubr.bf16.mxu0 %v4679_v23  ;;  %2128 = vmatprep.mubr.bf16.mxu1 %v4740_v46 }
 0x148   : > { %1691 = vmatpush1.bf16.msra.mxu0 %v4198_v17 }
 0x149   : > { %1692 = vmatprep.subr.bf16.mxu0 %v4203_v19 }
 0x14c   : > { %1693 = vmatpush1.bf16.msra.mxu0 %v4201_v57 }
 0x14d   : > { %3653 = vmatprep.subr.bf16.mxu0 %v4693_v27 }
 0x14e   : > { %1558 = vmatmul.mubr.bf16.gmra.mrb[16].mxu0 %v4653_v5  ;;  %2129 = vmatmul.mubr.bf16.gmra.mrb[96].mxu1 %v4714_v34 }
 0x14f   : > { %1567 = vmatprep.mubr.bf16.mxu0 %v4699_v29  ;;  %2136 = vmatprep.mubr.bf16.mxu1 %v4751_v52 }
 0x156   : > { %1568 = vmatmul.mubr.bf16.gmra.mrb[20].mxu0 %v4666_v12  ;;  %2137 = vmatmul.mubr.bf16.gmra.mrb[100].mxu1 %v4727_v40 }
 0x157   : > { %1577 = vmatprep.mubr.bf16.mxu0 %v4714_v34  ;;  %2144 = vmatprep.mubr.bf16.mxu1 %v4758_v53 }
 0x15e   : > { %1578 = vmatmul.mubr.bf16.gmra.mrb[24].mxu0 %v4679_v23  ;;  %2145 = vmatmul.mubr.bf16.gmra.mrb[104].mxu1 %v4740_v46 }
 0x15f   : > { %1587 = vmatprep.mubr.bf16.mxu0 %v4727_v40  ;;  %2152 = vmatprep.mubr.bf16.mxu1 %v4765_v54 }
 0x161   : > { %v3341_v63 = vpop.f32.mrb[0].mxu1 }
 0x162   : > { %v3342_v20 = vpop.f32.mrb[1].mxu1 }
 0x163   : > { %v4825_v22 = vadd.f32 %v3342_v20, %v3341_v63  ;;  %v3344_v27 = vpop.f32.mrb[2].mxu1 }
 0x164   : > { %v3345_v28 = vpop.f32.mrb[3].mxu1 }
 0x165   : > { %v4828_v30 = vadd.f32 %v3345_v28, %v3344_v27  ;;  %v4230_v28 = vld [vmem:[#allocation5] ss:$12 sps:$4 sm:$0xff]  }
 0x166   : > { %1588 = vmatmul.mubr.bf16.gmra.mrb[28].mxu0 %v4699_v29  ;;  %2153 = vmatmul.mubr.bf16.gmra.mrb[108].mxu1 %v4751_v52 }
 0x167   : > { %1597 = vmatprep.mubr.bf16.mxu0 %v4740_v46  ;;  %2160 = vmatprep.mubr.bf16.mxu1 %v4823_v21 }
 0x169   : > { %v3347_v32 = vpop.f32.mrb[4].mxu1 }
 0x16a   : > { %v3348_v36 = vpop.f32.mrb[5].mxu1 }
 0x16b   : > { %v4836_v41 = vadd.f32 %v3348_v36, %v3347_v32  ;;  %v3350_v44 = vpop.f32.mrb[6].mxu1  ;;  %v4231_v32 = vld [vmem:[#allocation5 + $0xd8] ss:$12 sps:$4 sm:$0xff]  }
 0x16c   : > { %v3351_v47 = vpop.f32.mrb[7].mxu1 }
 0x16d   : > { %v4839_v49 = vadd.f32 %v3351_v47, %v3350_v44 }
 0x16e   : > { %1598 = vmatmul.mubr.bf16.gmra.mrb[32].mxu0 %v4714_v34  ;;  %2161 = vmatmul.mubr.bf16.gmra.mrb[112].mxu1 %v4758_v53 }
 0x16f   : > { %1607 = vmatprep.mubr.bf16.mxu0 %v4751_v52  ;;  %2168 = vmatprep.mubr.bf16.mxu1 %v4834_v38 }
 0x171   : > { %v3353_v51 = vpop.f32.mrb[8].mxu1 }
 0x172   : > { %v3354_v55 = vpop.f32.mrb[9].mxu1 }
 0x173   : > { %v4847_v58 = vadd.f32 %v3354_v55, %v3353_v51  ;;  %v3356_v59 = vpop.f32.mrb[10].mxu1  ;;  %v4232_v55 = vld [vmem:[#allocation5 + $0x18] ss:$12 sps:$4 sm:$0xff]  }
 0x174   : > { %v3357_v60 = vpop.f32.mrb[11].mxu1 }
 0x175   : > { %v4850_v61 = vadd.f32 %v3357_v60, %v3356_v59  ;;  %v4233_v60 = vld [vmem:[#allocation5 + $0xf0] ss:$12 sps:$4 sm:$0xff]  }
 0x176   : > { %1608 = vmatmul.mubr.bf16.gmra.mrb[36].mxu0 %v4727_v40  ;;  %2169 = vmatmul.mubr.bf16.gmra.mrb[116].mxu1 %v4765_v54 }
 0x177   : > { %1617 = vmatprep.mubr.bf16.mxu0 %v4758_v53  ;;  %2176 = vmatprep.mubr.bf16.mxu1 %v4845_v56 }
 0x179   : > { %v3359_v1 = vpop.f32.mrb[12].mxu1 }
 0x17a   : > { %v3360_v2 = vpop.f32.mrb[13].mxu1 }
 0x17b   : > { %v4858_v6 = vadd.f32 %v3360_v2, %v3359_v1  ;;  %v3362_v8 = vpop.f32.mrb[14].mxu1  ;;  %v4234_v2 = vld [vmem:[#allocation5 + $0x30] ss:$12 sps:$4 sm:$0xff]  }
 0x17c   : > { %v3363_v9 = vpop.f32.mrb[15].mxu1 }
 0x17d   : > { %v4861_v10 = vadd.f32 %v3363_v9, %v3362_v8  ;;  %v4235_v8 = vld [vmem:[#allocation5 + $0x108] ss:$12 sps:$4 sm:$0xff]  }
 0x17e   : > { %1618 = vmatmul.mubr.bf16.gmra.mrb[40].mxu0 %v4740_v46  ;;  %2177 = vmatmul.mubr.bf16.gmra.mrb[120].mxu1 %v4823_v21 }
 0x17f   : > { %1627 = vmatprep.mubr.bf16.mxu0 %v4765_v54  ;;  %2184 = vmatprep.mubr.bf16.mxu1 %v4856_v3 }
 0x181   : > { %v3365_v35 = vpop.f32.mrb[16].mxu1 }
 0x182   : > { %v3366_v43 = vpop.f32.mrb[17].mxu1 }
 0x183   : > { %v4866_v13 = vadd.f32 %v3366_v43, %v3365_v35  ;;  %v3368_v14 = vpop.f32.mrb[18].mxu1 }
 0x184   : > { %v3369_v50 = vpop.f32.mrb[19].mxu1 }
 0x185   : > { %v4869_v15 = vadd.f32 %v3369_v50, %v3368_v14  ;;  %v4236_v50 = vld [vmem:[#allocation5 + $0x48] ss:$12 sps:$4 sm:$0xff]  }
 0x186   : > { %1628 = vmatmul.mubr.bf16.gmra.mrb[44].mxu0 %v4751_v52  ;;  %2185 = vmatmul.mubr.bf16.gmra.mrb[124].mxu1 %v4834_v38 }
 0x187   : > { %1637 = vmatprep.mubr.bf16.mxu0 %v4823_v21  ;;  %3735 = vmatprep.mubr.bf16.mxu1 %v4653_v5 }
 0x189   : > { %v3371_v17 = vpop.f32.mrb[20].mxu1 }
 0x18a   : > { %v3372_v19 = vpop.f32.mrb[21].mxu1 }
 0x18b   : > { %v4874_v57 = vadd.f32 %v3372_v19, %v3371_v17  ;;  %v3374_v63 = vpop.f32.mrb[22].mxu1  ;;  %v4237_v19 = vld [vmem:[#allocation5 + $0x120] ss:$12 sps:$4 sm:$0xff]  }
 0x18c   : > { %v3375_v20 = vpop.f32.mrb[23].mxu1 }
 0x18d   : > { %v4877_v27 = vadd.f32 %v3375_v20, %v3374_v63  ;;  %v4238_v20 = vld [vmem:[#allocation5 + $0x60] ss:$12 sps:$4 sm:$0xff]  }
 0x18e   : > { %1638 = vmatmul.mubr.bf16.gmra.mrb[48].mxu0 %v4758_v53  ;;  %3736 = vmatmul.mubr.bf16.vlgmr.msra.gmra.mrb[128].mxu1 %v4666_v12 }
 0x18f   : > { %1647 = vmatprep.mubr.bf16.mxu0 %v4834_v38  ;;  %3739 = vmatprep.mubr.bf16.mxu1 %v4679_v23 }
 0x190   : > { %3574 = vmatpush3.bf16.msra.mxu1 %v4230_v28  ;;  %v4239_v28 = vld [vmem:[#allocation5 + $0x138] ss:$12 sps:$4 sm:$0xff]  }
 0x191   : > { %3575 = vmatprep.subr.bf16.mxu1 %v4231_v32  ;;  %v3377_v36 = vpop.f32.mrb[24].mxu1 }
 0x192   : > { %v3378_v44 = vpop.f32.mrb[25].mxu1 }
 0x193   : > { %v4882_v47 = vadd.f32 %v3378_v44, %v3377_v36  ;;  %v3380_v51 = vpop.f32.mrb[26].mxu1 }
 0x194   : > { %3576 = vmatpush3.bf16.msra.mxu1 %v4232_v55  ;;  %v3381_v59 = vpop.f32.mrb[27].mxu1  ;;  %v4240_v55 = vld [vmem:[#allocation5 + $0x78] ss:$12 sps:$4 sm:$0xff]  }
 0x195   : > { %3577 = vmatprep.subr.bf16.mxu1 %v4233_v60  ;;  %v4885_v1 = vadd.f32 %v3381_v59, %v3380_v51  ;;  %v4241_v60 = vld [vmem:[#allocation5 + $0x150] ss:$12 sps:$4 sm:$0xff]  }
 0x196   : > { %1648 = vmatmul.mubr.bf16.gmra.mrb[52].mxu0 %v4765_v54  ;;  %3740 = vmatmul.mubr.bf16.gmra.mrb[132].mxu1 %v4699_v29 }
 0x197   : > { %1657 = vmatprep.mubr.bf16.mxu0 %v4845_v56  ;;  %3743 = vmatprep.mubr.bf16.mxu1 %v4714_v34 }
 0x198   : > { %3578 = vmatpush3.bf16.msra.mxu1 %v4234_v2 }
 0x199   : > { %3579 = vmatprep.subr.bf16.mxu1 %v4235_v8  ;;  %v3383_v9 = vpop.f32.mrb[28].mxu1  ;;  %v4407_v8 = vmov 0  }
 0x19a   : > { %v3384_v35 = vpop.f32.mrb[29].mxu1 }
 0x19b   : > { %v4890_v43 = vadd.f32 %v3384_v35, %v3383_v9  ;;  %v3386_v14 = vpop.f32.mrb[30].mxu1  ;;  %v4242_v9 = vld [vmem:[#allocation5 + $0x90] ss:$12 sps:$4 sm:$0xff]   ;;  %v4243_v35 = vld [vmem:[#allocation5 + $0x168] ss:$12 sps:$4 sm:$0xff]  }
 0x19c   : > { %3580 = vmatpush3.bf16.msra.mxu1 %v4236_v50  ;;  %v3387_v17 = vpop.f32.mrb[31].mxu1 }
 0x19d   : > { %3581 = vmatprep.subr.bf16.mxu1 %v4237_v19  ;;  %v4893_v63 = vadd.f32 %v3387_v17, %v3386_v14 }
 0x19e   : > { %1658 = vmatmul.mubr.bf16.gmra.mrb[56].mxu0 %v4823_v21  ;;  %3744 = vmatmul.mubr.bf16.gmra.mrb[136].mxu1 %v4727_v40 }
 0x19f   : > { %1667 = vmatprep.mubr.bf16.mxu0 %v4856_v3  ;;  %3747 = vmatprep.mubr.bf16.mxu1 %v4740_v46 }
 0x1a0   : > { %3582 = vmatpush3.bf16.msra.mxu1 %v4238_v20  ;;  %v4244_v20 = vld [vmem:[#allocation5 + $0xa8] ss:$12 sps:$4 sm:$0xff]  }
 0x1a1   : > { %3583 = vmatprep.subr.bf16.mxu1 %v4239_v28  ;;  %v3389_v32 = vpop.f32.mrb[32].mxu1 }
 0x1a2   : > { %v3390_v36 = vpop.f32.mrb[33].mxu1 }
 0x1a3   : > { %v4898_v44 = vadd.f32 %v3390_v36, %v3389_v32  ;;  %v3392_v51 = vpop.f32.mrb[34].mxu1  ;;  %v4245_v36 = vld [vmem:[#allocation5 + $0x184] ss:$12 sps:$4 sm:$0xff]  }
 0x1a4   : > { %3584 = vmatpush3.bf16.msra.mxu1 %v4240_v55  ;;  %v3393_v59 = vpop.f32.mrb[35].mxu1 }
 0x1a5   : > { %3585 = vmatprep.subr.bf16.mxu1 %v4241_v60  ;;  %v4901_v2 = vadd.f32 %v3393_v59, %v3392_v51 }
 0x1a6   : > { %1668 = vmatmul.mubr.bf16.gmra.mrb[60].mxu0 %v4834_v38  ;;  %3748 = vmatmul.mubr.bf16.gmra.mrb[140].mxu1 %v4751_v52 }
 0x1a7   : > { %1710 = vmatprep.mubr.bf16.mxu0 %v4407_v8  ;;  %3751 = vmatprep.mubr.bf16.mxu1 %v4758_v53 }
 0x1a8   : > { %3586 = vmatpush3.bf16.msra.mxu1 %v4242_v9  ;;  %v4929_v9 = vld [vmem:[%s4593_s8 + $0xb0] sm:$0xff]  }
 0x1a9   : > { %3587 = vmatprep.subr.bf16.mxu1 %v4243_v35  ;;  %v3395_v14 = vpop.f32.mrb[36].mxu1 }
 0x1aa   : > { %v3396_v50 = vpop.f32.mrb[37].mxu1 }
 0x1ab   : > { %v4906_v17 = vadd.f32 %v3396_v50, %v3395_v14  ;;  %v3398_v19 = vpop.f32.mrb[38].mxu1 }
 0x1ac   : > { %3588 = vmatpush3.bf16.msra.mxu1 %v4244_v20  ;;  %v3399_v28 = vpop.f32.mrb[39].mxu1 }
 0x1ad   : > { %3767 = vmatprep.subr.bf16.mxu1 %v4637_v62  ;;  %v4910_v32 = vadd.f32 %v3399_v28, %v3398_v19  ;;  %v4246_v28 = vld [vmem:[#allocation5 + $0x180] ss:$12 sps:$4 sm:$0xff]  }
 0x1ae   : > { %1711 = vmatmul.mubr.bf16.vlgmr.msra.gmra.mrb[0].mxu0 %v4653_v5  ;;  %3752 = vmatmul.mubr.bf16.gmra.mrb[144].mxu1 %v4765_v54 }
 0x1af   : > { %3654 = vmatpush3.bf16.msra.mxu0 %v4245_v36  ;;  %1720 = vmatprep.mubr.bf16.mxu0 %v4407_v8 }
 0x1b0   : > { %3755 = vmatprep.mubr.bf16.mxu1 %v4823_v21  ;;  %3655 = vmatprep.subr.bf16.mxu0 %v4703_v31 }
 0x1b1   : > { %v3401_v51 = vpop.f32.mrb[40].mxu1 }
 0x1b2   : > { %v3402_v55 = vpop.f32.mrb[41].mxu1 }
 0x1b3   : > { %3656 = vmatpush3.bf16.msra.mxu0 %v4642_v0  ;;  %v4917_v62 = vadd.f32 %v3402_v55, %v3401_v51  ;;  %v3404_v5 = vpop.f32.mrb[42].mxu1  ;;  %v4248_v55 = vld [vmem:[#allocation5 + $0x1b0] ss:$12 sps:$4 sm:$0xff]  }
 0x1b4   : > { %3657 = vmatprep.subr.bf16.mxu0 %v4709_v33  ;;  %v3405_v59 = vpop.f32.mrb[43].mxu1 }
 0x1b5   : > { %v4921_v60 = vadd.f32 %v3405_v59, %v3404_v5  ;;  %v4249_v59 = vld [vmem:[#allocation5 + $0x1c8] ss:$12 sps:$4 sm:$0xff]  }
 0x1b6   : > { %1721 = vmatmul.mubr.bf16.gmra.mrb[4].mxu0 %v4666_v12  ;;  %3756 = vmatmul.mubr.bf16.gmra.mrb[148].mxu1 %v4834_v38 }
 0x1b7   : > { %1730 = vmatprep.mubr.bf16.mxu0 %v4407_v8  ;;  %3759 = vmatprep.mubr.bf16.mxu1 %v4845_v56 }
 0x1b8   : > { %3658 = vmatpush3.bf16.msra.mxu0 %v4649_v4 }
 0x1b9   : > { %3659 = vmatprep.subr.bf16.mxu0 %v4716_v37  ;;  %v3407_v0 = vpop.f32.mrb[44].mxu1  ;;  %v4944_v37 = vld [vmem:[%s4593_s8 + $0xb8] sm:$0xff]  }
 0x1ba   : > { %v3408_v31 = vpop.f32.mrb[45].mxu1 }
 0x1bb   : > { %v4931_v33 = vadd.f32 %v3408_v31, %v3407_v0  ;;  %v3410_v12 = vpop.f32.mrb[46].mxu1 }
 0x1bc   : > { %3660 = vmatpush3.bf16.msra.mxu0 %v4655_v7  ;;  %v3411_v35 = vpop.f32.mrb[47].mxu1 }
 0x1bd   : > { %3661 = vmatprep.subr.bf16.mxu0 %v4722_v39  ;;  %v4936_v14 = vadd.f32 %v3411_v35, %v3410_v12 }
 0x1be   : > { %1731 = vmatmul.mubr.bf16.gmra.mrb[8].mxu0 %v4679_v23  ;;  %3760 = vmatmul.mubr.bf16.gmra.mrb[152].mxu1 %v4856_v3 }
 0x1bf   : > { %1740 = vmatprep.mubr.bf16.mxu0 %v4407_v8  ;;  %3763 = vmatprep.mubr.bf16.mxu1 %v4929_v9 }
 0x1c0   : > { %3662 = vmatpush3.bf16.msra.mxu0 %v4663_v11 }
 0x1c1   : > { %3663 = vmatprep.subr.bf16.mxu0 %v4729_v42  ;;  %v3413_v4 = vpop.f32.mrb[48].mxu1 }
 0x1c2   : > { %v3414_v7 = vpop.f32.mrb[49].mxu1 }
 0x1c3   : > { %v4946_v50 = vadd.f32 %v3414_v7, %v3413_v4  ;;  %v3416_v39 = vpop.f32.mrb[50].mxu1  ;;  %v4250_v4 = vld [vmem:[#allocation5 + $0x1e0] ss:$12 sps:$4 sm:$0xff]  }
 0x1c4   : > { %3664 = vmatpush3.bf16.msra.mxu0 %v4669_v16  ;;  %v3417_v23 = vpop.f32.mrb[51].mxu1 }
 0x1c5   : > { %3665 = vmatprep.subr.bf16.mxu0 %v4735_v45  ;;  %v4951_v19 = vadd.f32 %v3417_v23, %v3416_v39  ;;  %v4251_v39 = vld [vmem:[#allocation5 + $0x1f8] ss:$12 sps:$4 sm:$0xff]  }
 0x1c6   : > { %1741 = vmatmul.mubr.bf16.gmra.mrb[12].mxu0 %v4699_v29  ;;  %3764 = vmatmul.mubr.bf16.gmra.mrb[156].mxu1 %v4944_v37 }
 0x1c7   : > { %1750 = vmatprep.mubr.bf16.mxu0 %v4407_v8  ;;  %2470 = vmatprep.mubr.bf16.mxu1 %v4823_v21 }
 0x1c8   : > { %3666 = vmatpush3.bf16.msra.mxu0 %v4674_v18  ;;  %v4247_v18 = vld [vmem:[#allocation5 + $0x198] ss:$12 sps:$4 sm:$0xff]  }
 0x1c9   : > { %3667 = vmatprep.subr.bf16.mxu0 %v4742_v48  ;;  %v3419_v11 = vpop.f32.mrb[52].mxu1 }
 0x1ca   : > { %v3420_v42 = vpop.f32.mrb[53].mxu1 }
 0x1cb   : > { %v4958_v16 = vadd.f32 %v3420_v42, %v3419_v11  ;;  %v3422_v20 = vpop.f32.mrb[54].mxu1 }
 0x1cc   : > { %3668 = vmatpush3.bf16.msra.mxu0 %v4684_v25  ;;  %v3423_v29 = vpop.f32.mrb[55].mxu1 }
 0x1cd   : > { %v4962_v45 = vadd.f32 %v3423_v29, %v3422_v20 }
 0x1ce   : > { %1751 = vmatmul.mubr.bf16.gmra.mrb[16].mxu0 %v4714_v34  ;;  %2471 = vmatmul.mubr.bf16.vlgmr.msra.gmra.mrb[160].mxu1 %v4758_v53 }
 0x1cf   : > { %1760 = vmatprep.mubr.bf16.mxu0 %v4407_v8  ;;  %3768 = vmatpush3.bf16.msra.mxu1 %v4246_v28 }
 0x1d0   : > { %2478 = vmatprep.mubr.bf16.mxu1 %v4834_v38  ;;  %3769 = vmatprep.subr.bf16.mxu1 %v4247_v18 }
 0x1d1   : > { %v3425_v48 = vpop.f32.mrb[56].mxu1 }
 0x1d2   : > { %v3426_v36 = vpop.f32.mrb[57].mxu1 }
 0x1d3   : > { %3770 = vmatpush3.bf16.msra.mxu1 %v4247_v18  ;;  %v4967_v51 = vadd.f32 %v3426_v36, %v3425_v48  ;;  %v3428_v25 = vpop.f32.mrb[58].mxu1 }
 0x1d4   : > { %3771 = vmatprep.subr.bf16.mxu1 %v4248_v55  ;;  %v3429_v34 = vpop.f32.mrb[59].mxu1 }
 0x1d5   : > { %v4970_v5 = vadd.f32 %v3429_v34, %v3428_v25 }
 0x1d6   : > { %1761 = vmatmul.mubr.bf16.gmra.mrb[20].mxu0 %v4727_v40  ;;  %2479 = vmatmul.mubr.bf16.gmra.mrb[164].mxu1 %v4765_v54 }
 0x1d7   : > { %1770 = vmatprep.mubr.bf16.mxu0 %v4407_v8  ;;  %3772 = vmatpush3.bf16.msra.mxu1 %v4248_v55  ;;  %v4252_v55 = vld [vmem:[#allocation5 + $0xc4] ss:$12 sps:$4 sm:$0xff]  }
 0x1d8   : > { %2486 = vmatprep.mubr.bf16.mxu1 %v4845_v56  ;;  %3773 = vmatprep.subr.bf16.mxu1 %v4249_v59 }
 0x1d9   : > { %v3431_v0 = vpop.f32.mrb[60].mxu1 }
 0x1da   : > { %v3432_v31 = vpop.f32.mrb[61].mxu1 }
 0x1db   : > { %3774 = vmatpush3.bf16.msra.mxu1 %v4249_v59  ;;  %v4975_v12 = vadd.f32 %v3432_v31, %v3431_v0  ;;  %v3434_v35 = vpop.f32.mrb[62].mxu1 }
 0x1dc   : > { %3775 = vmatprep.subr.bf16.mxu1 %v4250_v4  ;;  %v3435_v40 = vpop.f32.mrb[63].mxu1 }
 0x1dd   : > { %v4978_v7 = vadd.f32 %v3435_v40, %v3434_v35  ;;  %v4255_v40 = vld [vmem:[#allocation5 + $0x1c] ss:$12 sps:$4 sm:$0xff]  }
 0x1de   : > { %1771 = vmatmul.mubr.bf16.gmra.mrb[24].mxu0 %v4740_v46  ;;  %2487 = vmatmul.mubr.bf16.gmra.mrb[168].mxu1 %v4823_v21 }
 0x1df   : > { %1780 = vmatprep.mubr.bf16.mxu0 %v4407_v8  ;;  %3776 = vmatpush3.bf16.msra.mxu1 %v4250_v4 }
 0x1e0   : > { %2494 = vmatprep.mubr.bf16.mxu1 %v4856_v3  ;;  %3777 = vmatprep.subr.bf16.mxu1 %v4251_v39 }
 0x1e1   : > { %v3453_v23 = vpop.f32.mrb[64].mxu1 }
 0x1e2   : > { %v3454_v11 = vpop.f32.mrb[65].mxu1 }
 0x1e3   : > { %v3455_v42 = vadd.f32 %v3454_v11, %v3453_v23  ;;  %v3456_v20 = vpop.f32.mrb[66].mxu1  ;;  %3778 = vmatpush3.bf16.msra.mxu1 %v4251_v39  ;;  %v4256_v39 = vld [vmem:[#allocation5 + $0xf4] ss:$12 sps:$4 sm:$0xff]  }
 0x1e4   : > { %v3457_v29 = vpop.f32.mrb[67].mxu1  ;;  %3779 = vmatprep.subr.bf16.mxu1 %v4681_v24 }
 0x1e5   : > { %v3458_v46 = vadd.f32 %v3457_v29, %v3456_v20  ;;  %v4986_v28 = vadd.f32 %v3455_v42, %v4825_v22  ;;  %v4258_v20 = vld [vmem:[#allocation5 + $0x10c] ss:$12 sps:$4 sm:$0xff]  }
 0x1e6   : > { %1781 = vmatmul.mubr.bf16.gmra.mrb[28].mxu0 %v4751_v52  ;;  %2495 = vmatmul.mubr.bf16.gmra.mrb[172].mxu1 %v4834_v38 }
 0x1e7   : > { %1790 = vmatprep.mubr.bf16.mxu0 %v4407_v8  ;;  %3780 = vmatpush3.bf16.msra.mxu1 %v4681_v24  ;;  %v4993_v18 = vadd.f32 %v3458_v46, %v4828_v30  ;;  %v4253_v30 = vld [vmem:[#allocation5 + $0x4] ss:$12 sps:$4 sm:$0xff]  }
 0x1e8   : > { %3783 = vmatprep.mubr.bf16.mxu1 %v4845_v56  ;;  %3781 = vmatprep.subr.bf16.mxu1 %v4691_v26 }
 0x1e9   : > { %v3459_v48 = vpop.f32.mrb[68].mxu1 }
 0x1ea   : > { %v3460_v36 = vpop.f32.mrb[69].mxu1 }
 0x1eb   : > { %v3461_v25 = vadd.f32 %v3460_v36, %v3459_v48  ;;  %v3462_v52 = vpop.f32.mrb[70].mxu1  ;;  %3782 = vmatpush3.bf16.msra.mxu1 %v4691_v26  ;;  %v4254_v26 = vld [vmem:[#allocation5 + $0xdc] ss:$12 sps:$4 sm:$0xff]  }
 0x1ec   : > { %v3463_v22 = vpop.f32.mrb[71].mxu1  ;;  %3625 = vmatprep.subr.bf16.mxu1 %v4252_v55 }
 0x1ed   : > { %v3464_v34 = vadd.f32 %v3463_v22, %v3462_v52  ;;  %v4999_v24 = vadd.f32 %v3461_v25, %v4836_v41  ;;  %v4259_v25 = vld [vmem:[#allocation5 + $0x4c] ss:$12 sps:$4 sm:$0xff]   ;;  %v4260_v52 = vld [vmem:[#allocation5 + $0x124] ss:$12 sps:$4 sm:$0xff]  }
 0x1ee   : > { %1791 = vmatmul.mubr.bf16.gmra.mrb[32].mxu0 %v4758_v53  ;;  %3784 = vmatmul.mubr.bf16.vlgmr.msra.gmra.mrb[176].mxu1 %v4856_v3 }
 0x1ef   : > { %1800 = vmatprep.mubr.bf16.mxu0 %v4407_v8  ;;  %3787 = vmatprep.mubr.bf16.mxu1 %v4929_v9  ;;  %v5005_v59 = vadd.f32 %v3464_v34, %v4839_v49  ;;  %v4257_v49 = vld [vmem:[#allocation5 + $0x34] ss:$12 sps:$4 sm:$0xff]  }
 0x1f0   : > { %3626 = vmatpush3.bf16.msra.mxu1 %v4253_v30  ;;  %v4262_v30 = vld [vmem:[#allocation5 + $0x13c] ss:$12 sps:$4 sm:$0xff]  }
 0x1f1   : > { %3627 = vmatprep.subr.bf16.mxu1 %v4254_v26  ;;  %v3465_v0 = vpop.f32.mrb[72].mxu1 }
 0x1f2   : > { %v3466_v31 = vpop.f32.mrb[73].mxu1 }
 0x1f3   : > { %v3467_v35 = vadd.f32 %v3466_v31, %v3465_v0  ;;  %v3468_v4 = vpop.f32.mrb[74].mxu1 }
 0x1f4   : > { %3628 = vmatpush3.bf16.msra.mxu1 %v4255_v40  ;;  %v3469_v41 = vpop.f32.mrb[75].mxu1 }
 0x1f5   : > { %3629 = vmatprep.subr.bf16.mxu1 %v4256_v39  ;;  %v3470_v23 = vadd.f32 %v3469_v41, %v3468_v4  ;;  %v5009_v11 = vadd.f32 %v3467_v35, %v4847_v58  ;;  %v4263_v4 = vld [vmem:[#allocation5 + $0x7c] ss:$12 sps:$4 sm:$0xff]   ;;  %v4265_v39 = vld [vmem:[#allocation5 + $0x94] ss:$12 sps:$4 sm:$0xff]  }
 0x1f6   : > { %1801 = vmatmul.mubr.bf16.gmra.mrb[36].mxu0 %v4765_v54  ;;  %3788 = vmatmul.mubr.bf16.gmra.mrb[180].mxu1 %v4944_v37 }
 0x1f7   : > { %1810 = vmatprep.mubr.bf16.mxu0 %v4407_v8  ;;  %2608 = vmatprep.mubr.bf16.mxu1 %v4823_v21  ;;  %v5015_v42 = vadd.f32 %v3470_v23, %v4850_v61  ;;  %v4261_v61 = vld [vmem:[#allocation5 + $0x64] ss:$12 sps:$4 sm:$0xff]  }
 0x1f8   : > { %3630 = vmatpush3.bf16.msra.mxu1 %v4257_v49  ;;  %v4266_v49 = vld [vmem:[#allocation5 + $0x16c] ss:$12 sps:$4 sm:$0xff]  }
 0x1f9   : > { %3631 = vmatprep.subr.bf16.mxu1 %v4258_v20  ;;  %v3471_v29 = vpop.f32.mrb[76].mxu1 }
 0x1fa   : > { %v3472_v46 = vpop.f32.mrb[77].mxu1 }
 0x1fb   : > { %v3473_v48 = vadd.f32 %v3472_v46, %v3471_v29  ;;  %v3474_v36 = vpop.f32.mrb[78].mxu1 }
 0x1fc   : > { %3632 = vmatpush3.bf16.msra.mxu1 %v4259_v25  ;;  %v3475_v58 = vpop.f32.mrb[79].mxu1 }
 0x1fd   : > { %3633 = vmatprep.subr.bf16.mxu1 %v4260_v52  ;;  %v3476_v22 = vadd.f32 %v3475_v58, %v3474_v36  ;;  %v5019_v55 = vadd.f32 %v3473_v48, %v4858_v6  ;;  %v4267_v36 = vld [vmem:[#allocation5 + $0xac] ss:$12 sps:$4 sm:$0xff]  }
 0x1fe   : > { %1811 = vmatmul.mubr.bf16.gmra.mrb[40].mxu0 %v4823_v21  ;;  %v4264_v21 = vld [vmem:[#allocation5 + $0x154] ss:$12 sps:$4 sm:$0xff]  }
 0x1ff   : > { %1820 = vmatprep.mubr.bf16.mxu0 %v4407_v8  ;;  %v5023_v34 = vadd.f32 %v3476_v22, %v4861_v10  ;;  %v4206_v10 = vld [vmem:[#allocation7 + $0x80] sm:$0xff]  }
 0x200   : > { %3634 = vmatpush3.bf16.msra.mxu1 %v4261_v61  ;;  %3791 = vmatprep.subr.bf16.mxu0 %v4206_v10 }
 0x201   : > { %3635 = vmatprep.subr.bf16.mxu1 %v4262_v30  ;;  %v3477_v26 = vpop.f32.mrb[80].mxu1 }
 0x202   : > { %v3478_v0 = vpop.f32.mrb[81].mxu1 }
 0x203   : > { %v3479_v31 = vadd.f32 %v3478_v0, %v3477_v26  ;;  %v3480_v35 = vpop.f32.mrb[82].mxu1 }
 0x204   : > { %3636 = vmatpush3.bf16.msra.mxu1 %v4263_v4  ;;  %v3481_v40 = vpop.f32.mrb[83].mxu1 }
 0x205   : > { %3637 = vmatprep.subr.bf16.mxu1 %v4264_v21  ;;  %v3482_v6 = vadd.f32 %v3481_v40, %v3480_v35  ;;  %v5027_v41 = vadd.f32 %v3479_v31, %v4866_v13 }
 0x206   : > { %1821 = vmatmul.mubr.bf16.gmra.mrb[44].mxu0 %v4834_v38 }
 0x207   : > { %1830 = vmatprep.mubr.bf16.mxu0 %v4407_v8  ;;  %v5031_v23 = vadd.f32 %v3482_v6, %v4869_v15 }
 0x208   : > { %3638 = vmatpush3.bf16.msra.mxu1 %v4265_v39 }
 0x209   : > { %3639 = vmatprep.subr.bf16.mxu1 %v4266_v49  ;;  %v3483_v20 = vpop.f32.mrb[84].mxu1 }
 0x20a   : > { %v3484_v29 = vpop.f32.mrb[85].mxu1 }
 0x20b   : > { %v3485_v46 = vadd.f32 %v3484_v29, %v3483_v20  ;;  %v3486_v48 = vpop.f32.mrb[86].mxu1 }
 0x20c   : > { %3640 = vmatpush3.bf16.msra.mxu1 %v4267_v36  ;;  %v3487_v25 = vpop.f32.mrb[87].mxu1  ;;  %v4207_v36 = vld [vmem:[#allocation7 + $0x88] sm:$0xff]  }
 0x20d   : > { %v3488_v13 = vadd.f32 %v3487_v25, %v3486_v48  ;;  %v5035_v58 = vadd.f32 %v3485_v46, %v4874_v57 }
 0x20e   : > { %1831 = vmatmul.mubr.bf16.gmra.mrb[48].mxu0 %v4845_v56 }
 0x20f   : > { %1840 = vmatprep.mubr.bf16.mxu0 %v4407_v8  ;;  %2609 = vmatmul.mubr.bf16.vlgmr.msra.gmra.mrb[184].mxu1 %v4758_v53  ;;  %v5041_v15 = vadd.f32 %v3488_v13, %v4877_v27 }
 0x210   : > { %2616 = vmatprep.mubr.bf16.mxu1 %v4834_v38 }
 0x211   : > { %v3489_v52 = vpop.f32.mrb[88].mxu1 }
 0x212   : > { %v3490_v22 = vpop.f32.mrb[89].mxu1 }
 0x213   : > { %v3491_v61 = vadd.f32 %v3490_v22, %v3489_v52  ;;  %v3492_v30 = vpop.f32.mrb[90].mxu1 }
 0x214   : > { %v3493_v26 = vpop.f32.mrb[91].mxu1 }
 0x215   : > { %v3494_v0 = vadd.f32 %v3493_v26, %v3492_v30  ;;  %v5045_v57 = vadd.f32 %v3491_v61, %v4882_v47  ;;  %v4209_v26 = vld [vmem:[#allocation7 + $0x98] sm:$0xff]  }
 0x216   : > { %1841 = vmatmul.mubr.bf16.gmra.mrb[52].mxu0 %v4856_v3 }
 0x217   : > { %1850 = vmatprep.mubr.bf16.mxu0 %v4407_v8  ;;  %2617 = vmatmul.mubr.bf16.gmra.mrb[188].mxu1 %v4765_v54  ;;  %v5050_v53 = vadd.f32 %v3494_v0, %v4885_v1 }
 0x219   : > { %v3495_v38 = vpop.f32.mrb[92].mxu1 }
 0x21a   : > { %v3496_v27 = vpop.f32.mrb[93].mxu1 }
 0x21b   : > { %v3497_v31 = vadd.f32 %v3496_v27, %v3495_v38  ;;  %v3498_v35 = vpop.f32.mrb[94].mxu1 }
 0x21c   : > { %v3499_v4 = vpop.f32.mrb[95].mxu1 }
 0x21d   : > { %v3500_v40 = vadd.f32 %v3499_v4, %v3498_v35  ;;  %v5054_v21 = vadd.f32 %v3497_v31, %v4890_v43  ;;  %v4211_v35 = vld [vmem:[#allocation7 + $0xa8] sm:$0xff]  }
 0x21e   : > { %1851 = vmatmul.mubr.bf16.gmra.mrb[56].mxu0 %v4929_v9 }
 0x21f   : > { %1860 = vmatprep.mubr.bf16.mxu0 %v4407_v8  ;;  %v5058_v47 = vadd.f32 %v3500_v40, %v4893_v63 }
 0x221   : > { %v3501_v54 = vpop.f32.mrb[96].mxu1 }
 0x222   : > { %v3502_v6 = vpop.f32.mrb[97].mxu1 }
 0x223   : > { %v3503_v1 = vadd.f32 %v3502_v6, %v3501_v54  ;;  %v3504_v39 = vpop.f32.mrb[98].mxu1 }
 0x224   : > { %v3505_v49 = vpop.f32.mrb[99].mxu1 }
 0x225   : > { %v3506_v20 = vadd.f32 %v3505_v49, %v3504_v39  ;;  %v5062_v29 = vadd.f32 %v3503_v1, %v4898_v44  ;;  %v4213_v49 = vld [vmem:[#allocation7 + $0xb8] sm:$0xff]  }
 0x226   : > { %1861 = vmatmul.mubr.bf16.gmra.mrb[60].mxu0 %v4944_v37 }
 0x227   : > { %2657 = vmatprep.mubr.bf16.mxu0 %v4929_v9  ;;  %v5066_v43 = vadd.f32 %v3506_v20, %v4901_v2  ;;  %v4208_v2 = vld [vmem:[#allocation7 + $0x90] sm:$0xff]  }
 0x229   : > { %v3507_v8 = vpop.f32.mrb[100].mxu1 }
 0x22a   : > { %v3508_v46 = vpop.f32.mrb[101].mxu1 }
 0x22b   : > { %v3509_v63 = vadd.f32 %v3508_v46, %v3507_v8  ;;  %v3510_v48 = vpop.f32.mrb[102].mxu1 }
 0x22c   : > { %v3511_v25 = vpop.f32.mrb[103].mxu1 }
 0x22d   : > { %v3512_v13 = vadd.f32 %v3511_v25, %v3510_v48  ;;  %v5070_v52 = vadd.f32 %v3509_v63, %v4906_v17 }
 0x22e   : > { %2658 = vmatmul.mubr.bf16.vlgmr.msra.gmra.mrb[64].mxu0 %v4845_v56 }
 0x22f   : > { %2665 = vmatprep.mubr.bf16.mxu0 %v4944_v37  ;;  %3792 = vmatpush3.bf16.msra.mxu0 %v4206_v10  ;;  %v5074_v44 = vadd.f32 %v3512_v13, %v4910_v32  ;;  %v4210_v37 = vld [vmem:[#allocation7 + $0xa0] sm:$0xff]  }
 0x230   : > { %3793 = vmatprep.subr.bf16.mxu0 %v4207_v36 }
 0x231   : > { %v3513_v9 = vpop.f32.mrb[104].mxu1 }
 0x232   : > { %v3514_v22 = vpop.f32.mrb[105].mxu1 }
 0x233   : > { %3794 = vmatpush3.bf16.msra.mxu0 %v4207_v36  ;;  %v3515_v61 = vadd.f32 %v3514_v22, %v3513_v9  ;;  %v3516_v30 = vpop.f32.mrb[106].mxu1 }
 0x234   : > { %3795 = vmatprep.subr.bf16.mxu0 %v4208_v2  ;;  %v3517_v0 = vpop.f32.mrb[107].mxu1 }
 0x235   : > { %v3518_v56 = vadd.f32 %v3517_v0, %v3516_v30  ;;  %v5078_v17 = vadd.f32 %v3515_v61, %v4917_v62 }
 0x236   : > { %2666 = vmatmul.mubr.bf16.gmra.mrb[68].mxu0 %v4856_v3 }
 0x237   : > { %3796 = vmatpush3.bf16.msra.mxu0 %v4208_v2  ;;  %v5081_v32 = vadd.f32 %v3518_v56, %v4921_v60  ;;  %v4212_v60 = vld [vmem:[#allocation7 + $0xb0] sm:$0xff]  }
 0x238   : > { %3797 = vmatprep.subr.bf16.mxu0 %v4209_v26 }
 0x239   : > { %v3519_v10 = vpop.f32.mrb[108].mxu1 }
 0x23a   : > { %v3520_v38 = vpop.f32.mrb[109].mxu1 }
 0x23b   : > { %3798 = vmatpush3.bf16.msra.mxu0 %v4209_v26  ;;  %v3521_v27 = vadd.f32 %v3520_v38, %v3519_v10  ;;  %v3522_v31 = vpop.f32.mrb[110].mxu1 }
 0x23c   : > { %3799 = vmatprep.subr.bf16.mxu0 %v4210_v37  ;;  %v3523_v4 = vpop.f32.mrb[111].mxu1 }
 0x23d   : > { %v3524_v40 = vadd.f32 %v3523_v4, %v3522_v31  ;;  %v5084_v3 = vadd.f32 %v3521_v27, %v4931_v33 }
 0x23f   : > { %3800 = vmatpush3.bf16.msra.mxu0 %v4210_v37  ;;  %v5087_v62 = vadd.f32 %v3524_v40, %v4936_v14 }
 0x240   : > { %3801 = vmatprep.subr.bf16.mxu0 %v4211_v35 }
 0x241   : > { %v3525_v54 = vpop.f32.mrb[112].mxu1 }
 0x242   : > { %v3526_v6 = vpop.f32.mrb[113].mxu1 }
 0x243   : > { %3802 = vmatpush3.bf16.msra.mxu0 %v4211_v35  ;;  %v3527_v1 = vadd.f32 %v3526_v6, %v3525_v54  ;;  %v3528_v39 = vpop.f32.mrb[114].mxu1 }
 0x244   : > { %3803 = vmatprep.subr.bf16.mxu0 %v4212_v60  ;;  %v3529_v20 = vpop.f32.mrb[115].mxu1 }
 0x245   : > { %v3530_v8 = vadd.f32 %v3529_v20, %v3528_v39  ;;  %v5090_v46 = vadd.f32 %v3527_v1, %v4946_v50 }
 0x247   : > { %3804 = vmatpush3.bf16.msra.mxu0 %v4212_v60  ;;  %v5093_v33 = vadd.f32 %v3530_v8, %v4951_v19 }
 0x248   : > { %3805 = vmatprep.subr.bf16.mxu0 %v4213_v49 }
 0x249   : > { %v3531_v14 = vpop.f32.mrb[116].mxu1 }
 0x24a   : > { %v3532_v63 = vpop.f32.mrb[117].mxu1 }
 0x24b   : > { %3806 = vmatpush3.bf16.msra.mxu0 %v4213_v49  ;;  %v3533_v48 = vadd.f32 %v3532_v63, %v3531_v14  ;;  %v3534_v36 = vpop.f32.mrb[118].mxu1 }
 0x24c   : > { %v3535_v25 = vpop.f32.mrb[119].mxu1 }
 0x24d   : > { %v3536_v13 = vadd.f32 %v3535_v25, %v3534_v36  ;;  %v5096_v2 = vadd.f32 %v3533_v48, %v4958_v16 }
 0x24f   : > { %v5099_v9 = vadd.f32 %v3536_v13, %v4962_v45  ;;  %v4215_v13 = vld [vmem:[#allocation7] sm:$0xff]  }
 0x251   : > { %v3537_v50 = vpop.f32.mrb[120].mxu1 }
 0x252   : > { %v3538_v22 = vpop.f32.mrb[121].mxu1 }
 0x253   : > { %v3539_v61 = vadd.f32 %v3538_v22, %v3537_v50  ;;  %v3540_v30 = vpop.f32.mrb[122].mxu1 }
 0x254   : > { %v3541_v19 = vpop.f32.mrb[123].mxu1 }
 0x255   : > { %v3542_v26 = vadd.f32 %v3541_v19, %v3540_v30  ;;  %v5102_v0 = vadd.f32 %v3539_v61, %v4967_v51  ;;  %v4216_v30 = vld [vmem:[#allocation7 + $0x48] sm:$0xff]  }
 0x257   : > { %v5105_v56 = vadd.f32 %v3542_v26, %v4970_v5  ;;  %v4217_v26 = vld [vmem:[#allocation7 + $0x8] sm:$0xff]  }
 0x259   : > { %v3543_v37 = vpop.f32.mrb[124].mxu1 }
 0x25a   : > { %v3544_v10 = vpop.f32.mrb[125].mxu1 }
 0x25b   : > { %v3545_v38 = vadd.f32 %v3544_v10, %v3543_v37  ;;  %v3546_v16 = vpop.f32.mrb[126].mxu1 }
 0x25c   : > { %v3547_v27 = vpop.f32.mrb[127].mxu1 }
 0x25d   : > { %v3548_v31 = vadd.f32 %v3547_v27, %v3546_v16  ;;  %v5108_v45 = vadd.f32 %v3545_v38, %v4975_v12  ;;  %v4219_v16 = vld [vmem:[#allocation7 + $0x10] sm:$0xff]  }
 0x25f   : > { %v5111_v35 = vadd.f32 %v3548_v31, %v4978_v7 }
 0x261   : > { %v3737_v4 = vpop.f32.mrb[128].mxu1 }
 0x262   : > { %v2236_v40 = vadd.f32 %v3737_v4, %v4999_v24  ;;  %v2227_v51 = vpop.f32.mrb[129].mxu1 }
 0x263   : > { %v2228_v60 = vadd.f32 %v2227_v51, %v4986_v28  ;;  %v3738_v5 = vpop.f32.mrb[130].mxu1  ;;  %v4220_v51 = vld [vmem:[#allocation7 + $0x58] sm:$0xff]  }
 0x264   : > { %v2239_v54 = vadd.f32 %v3738_v5, %v5005_v59  ;;  %v2230_v6 = vpop.f32.mrb[131].mxu1  ;;  %v4214_v59 = vld [vmem:[#allocation7 + $0x40] sm:$0xff]  }
 0x265   : > { %v2231_v1 = vadd.f32 %v2230_v6, %v4993_v18  ;;  %3681 = vmatprep.subr.bf16.mxu1 %v4214_v59 }
 0x266   : > { %3682 = vmatpush3.bf16.msra.mxu1 %v4215_v13 }
 0x267   : > { %3683 = vmatprep.subr.bf16.mxu1 %v4216_v30 }
 0x269   : > { %v3741_v39 = vpop.f32.mrb[132].mxu1 }
 0x26a   : > { %v2252_v49 = vadd.f32 %v3741_v39, %v5019_v55  ;;  %v2243_v12 = vpop.f32.mrb[133].mxu1  ;;  %3684 = vmatpush3.bf16.msra.mxu1 %v4217_v26  ;;  %v4222_v39 = vld [vmem:[#allocation7 + $0x60] sm:$0xff]  }
 0x26b   : > { %v2244_v20 = vadd.f32 %v2243_v12, %v5009_v11  ;;  %v3742_v7 = vpop.f32.mrb[134].mxu1  ;;  %v4223_v12 = vld [vmem:[#allocation7 + $0x20] sm:$0xff]  }
 0x26c   : > { %v2410_v8 = vmax.f32 %v2236_v40, %v2252_v49  ;;  %v2255_v14 = vadd.f32 %v3742_v7, %v5023_v34  ;;  %v2246_v24 = vpop.f32.mrb[135].mxu1 }
 0x26d   : > { %v2368_v63 = vmax.f32 %v2228_v60, %v2244_v20  ;;  %v2247_v28 = vadd.f32 %v2246_v24, %v5015_v42 }
 0x26e   : > { %v2431_v48 = vmax.f32 %v2239_v54, %v2255_v14  ;;  %v4221_v54 = vld [vmem:[#allocation7 + $0x18] sm:$0xff]  }
 0x26f   : > { %v2389_v36 = vmax.f32 %v2231_v1, %v2247_v28 }
 0x271   : > { %v3745_v25 = vpop.f32.mrb[136].mxu1 }
 0x272   : > { %v2268_v18 = vadd.f32 %v3745_v25, %v5035_v58  ;;  %v2259_v50 = vpop.f32.mrb[137].mxu1  ;;  %v4218_v58 = vld [vmem:[#allocation7 + $0x50] sm:$0xff]   ;;  %v4225_v25 = vld [vmem:[#allocation7 + $0x28] sm:$0xff]  }
 0x273   : > { %v2260_v55 = vadd.f32 %v2259_v50, %v5027_v41  ;;  %v3746_v11 = vpop.f32.mrb[138].mxu1  ;;  %3685 = vmatprep.subr.bf16.mxu1 %v4218_v58 }
 0x274   : > { %v2411_v22 = vmax.f32 %v2410_v8, %v2268_v18  ;;  %v2271_v34 = vadd.f32 %v3746_v11, %v5041_v15  ;;  %v2262_v61 = vpop.f32.mrb[139].mxu1  ;;  %3686 = vmatpush3.bf16.msra.mxu1 %v4219_v16  ;;  %v4227_v11 = vld [vmem:[#allocation7 + $0x30] sm:$0xff]   ;;  %v2680_v16 = vlaneseq }
 0x275   : > { %v2369_v19 = vmax.f32 %v2368_v63, %v2260_v55  ;;  %v2263_v42 = vadd.f32 %v2262_v61, %v5031_v23  ;;  %3687 = vmatprep.subr.bf16.mxu1 %v4220_v51 }
 0x276   : > { %v2432_v37 = vmax.f32 %v2431_v48, %v2271_v34  ;;  %v4224_v48 = vld [vmem:[#allocation7 + $0x68] sm:$0xff]   ;;  %v5156_v51 = vshrl.u32 %v2680_v16, 7 }
 0x277   : > { %v2390_v10 = vmax.f32 %v2389_v36, %v2263_v42 }
 0x278   : > { %3688 = vmatpush3.bf16.msra.mxu1 %v4221_v54 }
 0x279   : > { %v3749_v38 = vpop.f32.mrb[140].mxu1  ;;  %3689 = vmatprep.subr.bf16.mxu1 %v4222_v39 }
 0x27a   : > { %v2284_v41 = vadd.f32 %v3749_v38, %v5054_v21  ;;  %v2275_v27 = vpop.f32.mrb[141].mxu1  ;;  %v4229_v38 = vld [vmem:[#allocation7 + $0x38] sm:$0xff]  }
 0x27b   : > { %v2276_v31 = vadd.f32 %v2275_v27, %v5045_v57  ;;  %v3750_v15 = vpop.f32.mrb[142].mxu1 }
 0x27c   : > { %v2412_v4 = vmax.f32 %v2411_v22, %v2284_v41  ;;  %v2287_v40 = vadd.f32 %v3750_v15, %v5058_v47  ;;  %v2278_v23 = vpop.f32.mrb[143].mxu1  ;;  %3690 = vmatpush3.bf16.msra.mxu1 %v4223_v12  ;;  %v2690_v12 = vsub.s32 2, %v5156_v51 }
 0x27d   : > { %v2370_v60 = vmax.f32 %v2369_v19, %v2276_v31  ;;  %v2279_v5 = vadd.f32 %v2278_v23, %v5050_v53  ;;  %3691 = vmatprep.subr.bf16.mxu1 %v4224_v48 }
 0x27e   : > { %v2433_v6 = vmax.f32 %v2432_v37, %v2287_v40  ;;  %v4228_v37 = vld [vmem:[#allocation7 + $0x78] sm:$0xff]  }
 0x27f   : > { %v2391_v1 = vmax.f32 %v2390_v10, %v2279_v5 }
 0x280   : > { %3692 = vmatpush3.bf16.msra.mxu1 %v4225_v25 }
 0x281   : > { %v5129_v21 = vpop.f32.mrb[0].mxu0  ;;  %v3753_v49 = vpop.f32.mrb[144].mxu1 }
 0x282   : > { %v5131_v57 = vpop.f32.mrb[1].mxu0  ;;  %v2300_v20 = vadd.f32 %v3753_v49, %v5070_v52  ;;  %v2291_v47 = vpop.f32.mrb[145].mxu1 }
 0x283   : > { %v5134_v7 = vpop.f32.mrb[2].mxu0  ;;  %v2292_v53 = vadd.f32 %v2291_v47, %v5062_v29  ;;  %v3754_v8 = vpop.f32.mrb[146].mxu1  ;;  %v4226_v29 = vld [vmem:[#allocation7 + $0x70] sm:$0xff]  }
 0x284   : > { %v5137_v14 = vpop.f32.mrb[3].mxu0  ;;  %v2413_v24 = vmax.f32 %v2412_v4, %v2300_v20  ;;  %v2303_v63 = vadd.f32 %v3754_v8, %v5074_v44  ;;  %v2294_v28 = vpop.f32.mrb[147].mxu1  ;;  %3693 = vmatprep.subr.bf16.mxu1 %v4226_v29 }
 0x285   : > { %v2371_v36 = vmax.f32 %v2370_v60, %v2292_v53  ;;  %v2295_v59 = vadd.f32 %v2294_v28, %v5066_v43  ;;  %3694 = vmatpush3.bf16.msra.mxu1 %v4227_v11 }
 0x286   : > { %v2434_v52 = vmax.f32 %v2433_v6, %v2303_v63  ;;  %3695 = vmatprep.subr.bf16.mxu1 %v4228_v37 }
 0x287   : > { %v2392_v13 = vmax.f32 %v2391_v1, %v2295_v59 }
 0x289   : > { %v5141_v18 = vpop.f32.mrb[4].mxu0  ;;  %v3757_v50 = vpop.f32.mrb[148].mxu1  ;;  %3696 = vmatpush3.bf16.msra.mxu1 %v4229_v38 }
 0x28a   : > { %v5143_v55 = vpop.f32.mrb[5].mxu0  ;;  %v2316_v22 = vadd.f32 %v3757_v50, %v5084_v3  ;;  %v2307_v44 = vpop.f32.mrb[149].mxu1 }
 0x28b   : > { %v5146_v34 = vpop.f32.mrb[6].mxu0  ;;  %v2308_v43 = vadd.f32 %v2307_v44, %v5078_v17  ;;  %v3758_v61 = vpop.f32.mrb[150].mxu1 }
 0x28c   : > { %v5149_v30 = vpop.f32.mrb[7].mxu0  ;;  %v2414_v19 = vmax.f32 %v2413_v24, %v2316_v22  ;;  %v2319_v42 = vadd.f32 %v3758_v61, %v5087_v62  ;;  %v2310_v26 = vpop.f32.mrb[151].mxu1 }
 0x28d   : > { %v2372_v10 = vmax.f32 %v2371_v36, %v2308_v43  ;;  %v2311_v58 = vadd.f32 %v2310_v26, %v5081_v32 }
 0x28e   : > { %v2435_v3 = vmax.f32 %v2434_v52, %v2319_v42 }
 0x28f   : > { %v2393_v41 = vmax.f32 %v2392_v13, %v2311_v58 }
 0x291   : > { %v1732_v27 = vpop.f32.mrb[8].mxu0  ;;  %v3761_v31 = vpop.f32.mrb[152].mxu1 }
 0x292   : > { %v2354_v17 = vmax.f32 %v5129_v21, %v1732_v27  ;;  %v1734_v15 = vpop.f32.mrb[9].mxu0  ;;  %v2332_v4 = vadd.f32 %v3761_v31, %v5096_v2  ;;  %v2323_v40 = vpop.f32.mrb[153].mxu1 }
 0x293   : > { %v2361_v62 = vmax.f32 %v5131_v57, %v1734_v15  ;;  %v1736_v23 = vpop.f32.mrb[10].mxu0  ;;  %v2324_v32 = vadd.f32 %v2323_v40, %v5090_v46  ;;  %v3762_v5 = vpop.f32.mrb[154].mxu1  ;;  %v5167_v46 = vld [vmem:[%s5277_s2] sm:$0x7] }
 0x294   : > { %v2375_v60 = vmax.f32 %v5134_v7, %v1736_v23  ;;  %v1738_v54 = vpop.f32.mrb[11].mxu0  ;;  %v2415_v6 = vmax.f32 %v2414_v19, %v2332_v4  ;;  %v2335_v1 = vadd.f32 %v3762_v5, %v5099_v9  ;;  %v2326_v39 = vpop.f32.mrb[155].mxu1 }
 0x295   : > { %v2382_v21 = vmax.f32 %v5137_v14, %v1738_v54  ;;  %v2373_v49 = vmax.f32 %v2372_v10, %v2324_v32  ;;  %v2327_v2 = vadd.f32 %v2326_v39, %v5093_v33  ;;  %v2691_v14 = vrot.slane %v5167_v46, %v2690_v12 }
 0x296   : > { %v2436_v57 = vmax.f32 %v2435_v3, %v2335_v1 }
 0x297   : > { %v2394_v20 = vmax.f32 %v2393_v41, %v2327_v2 }
 0x299   : > { %v1742_v47 = vpop.f32.mrb[12].mxu0  ;;  %v3765_v53 = vpop.f32.mrb[156].mxu1 }
 0x29a   : > { %v2396_v7 = vmax.f32 %v5141_v18, %v1742_v47  ;;  %v1744_v9 = vpop.f32.mrb[13].mxu0  ;;  %v2348_v8 = vadd.f32 %v3765_v53, %v5108_v45  ;;  %v2339_v24 = vpop.f32.mrb[157].mxu1 }
 0x29b   : > { %v2403_v33 = vmax.f32 %v5143_v55, %v1744_v9  ;;  %v1746_v63 = vpop.f32.mrb[14].mxu0  ;;  %v2340_v28 = vadd.f32 %v2339_v24, %v5102_v0  ;;  %v3766_v36 = vpop.f32.mrb[158].mxu1 }
 0x29c   : > { %v2417_v48 = vmax.f32 %v5146_v34, %v1746_v63  ;;  %v1748_v59 = vpop.f32.mrb[15].mxu0  ;;  %v2416_v25 = vmax.f32 %v2415_v6, %v2348_v8  ;;  %v2351_v52 = vadd.f32 %v3766_v36, %v5111_v35  ;;  %v2342_v18 = vpop.f32.mrb[159].mxu1 }
 0x29d   : > { %v2424_v13 = vmax.f32 %v5149_v30, %v1748_v59  ;;  %v2374_v29 = vmax.f32 %v2373_v49, %v2340_v28  ;;  %v2343_v45 = vadd.f32 %v2342_v18, %v5105_v56 }
 0x29e   : > { %v2703_v50 = vadd.f32 %v2691_v14, %v2416_v25  ;;  %v2437_v11 = vmax.f32 %v2436_v57, %v2351_v52 }
 0x29f   : > { %v2697_v55 = vadd.f32 %v2691_v14, %v2374_v29  ;;  %v2395_v22 = vmax.f32 %v2394_v20, %v2343_v45 }
 0x2a0   : > { %v2706_v44 = vadd.f32 %v2691_v14, %v2437_v11  ;;  %v2715_v42 = vmax.f32 %v2703_v50, 0.0 }
 0x2a1   : > { %v1752_v43 = vpop.f32.mrb[16].mxu0  ;;  %v2700_v0 = vadd.f32 %v2691_v14, %v2395_v22  ;;  %v3589_v19 = vpop.f32.mrb[160].mxu1  ;;  %v2709_v10 = vmax.f32 %v2697_v55, 0.0 }
 0x2a2   : > { %v5178_v61 = vmax.f32 %v2354_v17, %v1752_v43  ;;  %v1754_v34 = vpop.f32.mrb[17].mxu0  ;;  %v2718_v26 = vmax.f32 %v2706_v44, 0.0  ;;  %v3590_v37 = vpop.f32.mrb[161].mxu1 }
 0x2a3   : > { %v5180_v35 = vmax.f32 %v2361_v62, %v1754_v34  ;;  %v1756_v30 = vpop.f32.mrb[18].mxu0  ;;  %v2712_v58 = vmax.f32 %v2700_v0, 0.0  ;;  %v3591_v3 = vadd.f32 %v3590_v37, %v3589_v19  ;;  %v3592_v16 = vpop.f32.mrb[162].mxu1 }
 0x2a4   : > { %v2376_v56 = vmax.f32 %v2375_v60, %v1756_v30  ;;  %v1758_v38 = vpop.f32.mrb[19].mxu0  ;;  %v2724_v41 = vpack.c.bf16 %v2718_v26, %v2715_v42  ;;  %v3593_v31 = vpop.f32.mrb[163].mxu1 }
 0x2a5   : > { %v2383_v27 = vmax.f32 %v2382_v21, %v1758_v38  ;;  %v2721_v15 = vpack.c.bf16 %v2712_v58, %v2709_v10  ;;  %v3594_v17 = vadd.f32 %v3593_v31, %v3592_v16 }
 0x2a7   : > { %3807 = vmatprep.mubr.bf16.mxu0 %v2721_v15 }
 0x2a8   : > { %3808 = vmatmul.mubr.bf16.vlgmr.msra.gmra.mrb[72].mxu0 %v2724_v41 }
 0x2a9   : > { %v1762_v4 = vpop.f32.mrb[20].mxu0  ;;  %v3595_v62 = vpop.f32.mrb[164].mxu1 }
 0x2aa   : > { %v2397_v40 = vmax.f32 %v2396_v7, %v1762_v4  ;;  %v1764_v23 = vpop.f32.mrb[21].mxu0  ;;  %v3596_v54 = vpop.f32.mrb[165].mxu1 }
 0x2ab   : > { %v2404_v32 = vmax.f32 %v2403_v33, %v1764_v23  ;;  %v1766_v5 = vpop.f32.mrb[22].mxu0  ;;  %v3597_v60 = vadd.f32 %v3596_v54, %v3595_v62  ;;  %v3598_v39 = vpop.f32.mrb[166].mxu1 }
 0x2ac   : > { %v2418_v6 = vmax.f32 %v2417_v48, %v1766_v5  ;;  %v1768_v1 = vpop.f32.mrb[23].mxu0  ;;  %v3599_v2 = vpop.f32.mrb[167].mxu1 }
 0x2ad   : > { %v2425_v49 = vmax.f32 %v2424_v13, %v1768_v1  ;;  %v3600_v57 = vadd.f32 %v3599_v2, %v3598_v39 }
 0x2b1   : > { %v1772_v21 = vpop.f32.mrb[24].mxu0  ;;  %v3601_v47 = vpop.f32.mrb[168].mxu1 }
 0x2b2   : > { %v2356_v12 = vmax.f32 %v5178_v61, %v1772_v21  ;;  %v1774_v20 = vpop.f32.mrb[25].mxu0  ;;  %v3602_v9 = vpop.f32.mrb[169].mxu1 }
 0x2b3   : > { %v2363_v53 = vmax.f32 %v5180_v35, %v1774_v20  ;;  %v1776_v7 = vpop.f32.mrb[26].mxu0  ;;  %v3603_v33 = vadd.f32 %v3602_v9, %v3601_v47  ;;  %v3604_v24 = vpop.f32.mrb[170].mxu1 }
 0x2b4   : > { %v2377_v8 = vmax.f32 %v2376_v56, %v1776_v7  ;;  %v1778_v14 = vpop.f32.mrb[27].mxu0  ;;  %v3605_v28 = vpop.f32.mrb[171].mxu1 }
 0x2b5   : > { %v2384_v63 = vmax.f32 %v2383_v27, %v1778_v14  ;;  %v3606_v48 = vadd.f32 %v3605_v28, %v3604_v24 }
 0x2b9   : > { %v1782_v36 = vpop.f32.mrb[28].mxu0  ;;  %v3607_v52 = vpop.f32.mrb[172].mxu1 }
 0x2ba   : > { %v2398_v59 = vmax.f32 %v2397_v40, %v1782_v36  ;;  %v1784_v25 = vpop.f32.mrb[29].mxu0  ;;  %v3608_v29 = vpop.f32.mrb[173].mxu1 }
 0x2bb   : > { %v2405_v13 = vmax.f32 %v2404_v32, %v1784_v25  ;;  %v1786_v18 = vpop.f32.mrb[30].mxu0  ;;  %v3609_v11 = vadd.f32 %v3608_v29, %v3607_v52  ;;  %v3610_v55 = vpop.f32.mrb[174].mxu1 }
 0x2bc   : > { %v2419_v45 = vmax.f32 %v2418_v6, %v1786_v18  ;;  %v1788_v50 = vpop.f32.mrb[31].mxu0  ;;  %v3611_v44 = vpop.f32.mrb[175].mxu1 }
 0x2bd   : > { %v2426_v22 = vmax.f32 %v2425_v49, %v1788_v50  ;;  %v3612_v43 = vadd.f32 %v3611_v44, %v3610_v55 }
 0x2c1   : > { %v1792_v0 = vpop.f32.mrb[32].mxu0  ;;  %v3785_v19 = vpop.f32.mrb[176].mxu1 }
 0x2c2   : > { %v2357_v61 = vmax.f32 %v2356_v12, %v1792_v0  ;;  %v1794_v34 = vpop.f32.mrb[33].mxu0  ;;  %v5184_v26 = vadd.f32 %v3785_v19, %v3597_v60  ;;  %v2537_v30 = vpop.f32.mrb[177].mxu1 }
 0x2c3   : > { %v2364_v42 = vmax.f32 %v2363_v53, %v1794_v34  ;;  %v1796_v35 = vpop.f32.mrb[34].mxu0  ;;  %v5186_v10 = vadd.f32 %v3591_v3, %v2537_v30  ;;  %v3786_v56 = vpop.f32.mrb[178].mxu1 }
 0x2c4   : > { %v2378_v37 = vmax.f32 %v2377_v8, %v1796_v35  ;;  %v1798_v58 = vpop.f32.mrb[35].mxu0  ;;  %v5188_v16 = vadd.f32 %v3786_v56, %v3600_v57  ;;  %v2540_v41 = vpop.f32.mrb[179].mxu1 }
 0x2c5   : > { %v2385_v38 = vmax.f32 %v2384_v63, %v1798_v58  ;;  %v5190_v27 = vadd.f32 %v3594_v17, %v2540_v41 }
 0x2c9   : > { %v1802_v31 = vpop.f32.mrb[36].mxu0  ;;  %v3789_v4 = vpop.f32.mrb[180].mxu1 }
 0x2ca   : > { %v2399_v15 = vmax.f32 %v2398_v59, %v1802_v31  ;;  %v1804_v40 = vpop.f32.mrb[37].mxu0  ;;  %v5192_v23 = vadd.f32 %v3789_v4, %v3609_v11  ;;  %v2553_v32 = vpop.f32.mrb[181].mxu1 }
 0x2cb   : > { %v2406_v62 = vmax.f32 %v2405_v13, %v1804_v40  ;;  %v1806_v5 = vpop.f32.mrb[38].mxu0  ;;  %v5194_v54 = vadd.f32 %v3603_v33, %v2553_v32  ;;  %v3790_v6 = vpop.f32.mrb[182].mxu1  ;;  %v2682_v40 = vsub.s32 0, %v5156_v51 }
 0x2cc   : > { %v2420_v3 = vmax.f32 %v2419_v45, %v1806_v5  ;;  %v1808_v1 = vpop.f32.mrb[39].mxu0  ;;  %v2570_v60 = vmax.f32 %v5184_v26, %v5192_v23  ;;  %v5198_v39 = vadd.f32 %v3790_v6, %v3612_v43  ;;  %v2556_v49 = vpop.f32.mrb[183].mxu1 }
 0x2cd   : > { %v2427_v17 = vmax.f32 %v2426_v22, %v1808_v1  ;;  %v2568_v2 = vmax.f32 %v5186_v10, %v5194_v54  ;;  %v2557_v57 = vadd.f32 %v3606_v48, %v2556_v49  ;;  %v2683_v54 = vrot.slane %v5167_v46, %v2682_v40 }
 0x2ce   : > { %v2571_v21 = vmax.f32 %v5188_v16, %v5198_v39 }
 0x2cf   : > { %v2569_v12 = vmax.f32 %v5190_v27, %v2557_v57 }
 0x2d1   : > { %v1812_v20 = vpop.f32.mrb[40].mxu0 }
 0x2d2   : > { %v2358_v47 = vmax.f32 %v2357_v61, %v1812_v20  ;;  %v1814_v53 = vpop.f32.mrb[41].mxu0 }
 0x2d3   : > { %v2365_v7 = vmax.f32 %v2364_v42, %v1814_v53  ;;  %v1816_v9 = vpop.f32.mrb[42].mxu0 }
 0x2d4   : > { %v2379_v8 = vmax.f32 %v2378_v37, %v1816_v9  ;;  %v1818_v14 = vpop.f32.mrb[43].mxu0 }
 0x2d5   : > { %v2386_v33 = vmax.f32 %v2385_v38, %v1818_v14 }
 0x2d9   : > { %v1822_v24 = vpop.f32.mrb[44].mxu0 }
 0x2da   : > { %v2400_v63 = vmax.f32 %v2399_v15, %v1822_v24  ;;  %v1824_v28 = vpop.f32.mrb[45].mxu0 }
 0x2db   : > { %v2407_v36 = vmax.f32 %v2406_v62, %v1824_v28  ;;  %v1826_v59 = vpop.f32.mrb[46].mxu0 }
 0x2dc   : > { %v2421_v25 = vmax.f32 %v2420_v3, %v1826_v59  ;;  %v1828_v48 = vpop.f32.mrb[47].mxu0 }
 0x2dd   : > { %v2428_v52 = vmax.f32 %v2427_v17, %v1828_v48 }
 0x2e1   : > { %v1832_v13 = vpop.f32.mrb[48].mxu0 }
 0x2e2   : > { %v2359_v18 = vmax.f32 %v2358_v47, %v1832_v13  ;;  %v1834_v29 = vpop.f32.mrb[49].mxu0  ;;  %v3641_v45 = vpop.f32.mrb[184].mxu1 }
 0x2e3   : > { %v5205_v50 = vmax.f32 %v2365_v7, %v1834_v29  ;;  %v1836_v11 = vpop.f32.mrb[50].mxu0  ;;  %v3642_v55 = vpop.f32.mrb[185].mxu1  ;;  %v2686_v29 = vsub.s32 1, %v5156_v51 }
 0x2e4   : > { %v2380_v22 = vmax.f32 %v2379_v8, %v1836_v11  ;;  %v1838_v44 = vpop.f32.mrb[51].mxu0  ;;  %v3643_v43 = vadd.f32 %v3642_v55, %v3641_v45  ;;  %v3644_v0 = vpop.f32.mrb[186].mxu1 }
 0x2e5   : > { %v2387_v61 = vmax.f32 %v2386_v33, %v1838_v44  ;;  %v3645_v34 = vpop.f32.mrb[187].mxu1 }
 0x2e6   : > { %v3646_v19 = vadd.f32 %v3645_v34, %v3644_v0  ;;  %v2687_v0 = vrot.slane %v5167_v46, %v2686_v29 }
 0x2e9   : > { %v1842_v42 = vpop.f32.mrb[52].mxu0 }
 0x2ea   : > { %v2401_v35 = vmax.f32 %v2400_v63, %v1842_v42  ;;  %v1844_v30 = vpop.f32.mrb[53].mxu0  ;;  %v3647_v37 = vpop.f32.mrb[188].mxu1 }
 0x2eb   : > { %v5207_v10 = vmax.f32 %v2407_v36, %v1844_v30  ;;  %v1846_v58 = vpop.f32.mrb[54].mxu0  ;;  %v3648_v56 = vpop.f32.mrb[189].mxu1 }
 0x2ec   : > { %v2422_v38 = vmax.f32 %v2421_v25, %v1846_v58  ;;  %v1848_v41 = vpop.f32.mrb[55].mxu0  ;;  %v3649_v27 = vadd.f32 %v3648_v56, %v3647_v37  ;;  %v3650_v31 = vpop.f32.mrb[190].mxu1 }
 0x2ed   : > { %v2429_v15 = vmax.f32 %v2428_v52, %v1848_v41  ;;  %v3651_v4 = vpop.f32.mrb[191].mxu1 }
 0x2ee   : > { %v3652_v62 = vadd.f32 %v3651_v4, %v3650_v31 }
 0x2f1   : > { %v1852_v32 = vpop.f32.mrb[56].mxu0 }
 0x2f2   : > { %v2360_v5 = vmax.f32 %v2359_v18, %v1852_v32  ;;  %v1854_v3 = vpop.f32.mrb[57].mxu0 }
 0x2f3   : > { %v2367_v6 = vmax.f32 %v5205_v50, %v1854_v3  ;;  %v1856_v1 = vpop.f32.mrb[58].mxu0 }
 0x2f4   : > { %v2572_v17 = vmax.f32 %v2360_v5, %v2568_v2  ;;  %v2381_v49 = vmax.f32 %v2380_v22, %v1856_v1  ;;  %v1858_v57 = vpop.f32.mrb[59].mxu0 }
 0x2f5   : > { %v2388_v20 = vmax.f32 %v2387_v61, %v1858_v57 }
 0x2f6   : > { %v2695_v47 = vadd.f32 %v2683_v54, %v2572_v17  ;;  %v2573_v53 = vmax.f32 %v2381_v49, %v2569_v12 }
 0x2f8   : > { %v2698_v7 = vadd.f32 %v2683_v54, %v2573_v53  ;;  %v2707_v8 = vmax.f32 %v2695_v47, 0.0 }
 0x2f9   : > { %v1862_v9 = vpop.f32.mrb[60].mxu0 }
 0x2fa   : > { %v2710_v14 = vmax.f32 %v2698_v7, 0.0  ;;  %v2402_v33 = vmax.f32 %v2401_v35, %v1862_v9  ;;  %v1864_v24 = vpop.f32.mrb[61].mxu0 }
 0x2fb   : > { %v2409_v63 = vmax.f32 %v5207_v10, %v1864_v24  ;;  %v1866_v28 = vpop.f32.mrb[62].mxu0 }
 0x2fc   : > { %v2719_v36 = vpack.c.bf16 %v2710_v14, %v2707_v8  ;;  %v2574_v59 = vmax.f32 %v2402_v33, %v2570_v60  ;;  %v2423_v2 = vmax.f32 %v2422_v38, %v1866_v28  ;;  %v1868_v25 = vpop.f32.mrb[63].mxu0 }
 0x2fd   : > { %v2430_v48 = vmax.f32 %v2429_v15, %v1868_v25 }
 0x2fe   : > { %v2701_v52 = vadd.f32 %v2683_v54, %v2574_v59  ;;  %v2575_v12 = vmax.f32 %v2423_v2, %v2571_v21 }
 0x300   : > { %v2704_v13 = vadd.f32 %v2683_v54, %v2575_v12  ;;  %v2713_v45 = vmax.f32 %v2701_v52, 0.0 }
 0x301   : > { %v3669_v18 = vpop.f32.mrb[64].mxu0 }
 0x302   : > { %v2716_v50 = vmax.f32 %v2704_v13, 0.0  ;;  %v3670_v11 = vpop.f32.mrb[65].mxu0 }
 0x303   : > { %v3671_v55 = vadd.f32 %v3670_v11, %v3669_v18  ;;  %v3672_v22 = vpop.f32.mrb[66].mxu0 }
 0x304   : > { %v3673_v44 = vpop.f32.mrb[67].mxu0  ;;  %v2722_v26 = vpack.c.bf16 %v2716_v50, %v2713_v45 }
 0x305   : > { %v2660_v23 = vadd.f32 %v3671_v55, %v3643_v43  ;;  %v3674_v60 = vadd.f32 %v3673_v44, %v3672_v22 }
 0x307   : > { %v2674_v61 = vmax.f32 %v2367_v6, %v2660_v23  ;;  %v2663_v34 = vadd.f32 %v3674_v60, %v3646_v19 }
 0x309   : > { %v2675_v42 = vmax.f32 %v2388_v20, %v2663_v34  ;;  %v3675_v16 = vpop.f32.mrb[68].mxu0  ;;  %v2696_v39 = vadd.f32 %v2687_v0, %v2674_v61 }
 0x30a   : > { %v3676_v21 = vpop.f32.mrb[69].mxu0 }
 0x30b   : > { %v3677_v35 = vadd.f32 %v3676_v21, %v3675_v16  ;;  %v3678_v30 = vpop.f32.mrb[70].mxu0  ;;  %v2699_v51 = vadd.f32 %v2687_v0, %v2675_v42  ;;  %v2708_v56 = vmax.f32 %v2696_v39, 0.0 }
 0x30c   : > { %v3679_v37 = vpop.f32.mrb[71].mxu0 }
 0x30d   : > { %v2668_v10 = vadd.f32 %v3677_v35, %v3649_v27  ;;  %v3680_v58 = vadd.f32 %v3679_v37, %v3678_v30  ;;  %v2711_v38 = vmax.f32 %v2699_v51, 0.0 }
 0x30f   : > { %v2676_v41 = vmax.f32 %v2409_v63, %v2668_v10  ;;  %v2671_v31 = vadd.f32 %v3680_v58, %v3652_v62  ;;  %v2720_v43 = vpack.c.bf16 %v2711_v38, %v2708_v56  ;;  %v3293_v62 = vld [vmem:[%s5279_s4] ss:$0 sm:$0xff] }
 0x311   : > { %v2677_v15 = vmax.f32 %v2430_v48, %v2671_v31  ;;  %2956 = vmatprep.mubr.bf16.mxu1 %v2720_v43  ;;  %v2702_v46 = vadd.f32 %v2687_v0, %v2676_v41 }
 0x312   : > { %2957 = vmatmul.mubr.bf16.vlgmr.msra.gmra.mrb[192].mxu1 %v2719_v36 }
 0x313   : > { %v2705_v19 = vadd.f32 %v2687_v0, %v2677_v15  ;;  %v2714_v4 = vmax.f32 %v2702_v46, 0.0 }
 0x315   : > { %v2717_v40 = vmax.f32 %v2705_v19, 0.0 }
 0x317   : > { %v2723_v32 = vpack.c.bf16 %v2717_v40, %v2714_v4 }
 0x319   : > { %2964 = vmatprep.mubr.bf16.mxu1 %v2723_v32 }
 0x31a   : > { %2965 = vmatmul.mubr.bf16.gmra.mrb[196].mxu1 %v2722_v26 }
 0x37b   : > { %v3809_v5 = vpop.f32.mrb[72].mxu0 }
 0x37c   : > { %v3007_v54 = vpop.f32.mrb[73].mxu0 }
 0x37d   : > { %v3810_v27 = vpop.f32.mrb[74].mxu0 }
 0x37e   : > { %v3010_v3 = vpop.f32.mrb[75].mxu0 }
 0x3e5   : > { %v3697_v6 = vpop.f32.mrb[192].mxu1 }
 0x3e6   : > { %v3698_v1 = vpop.f32.mrb[193].mxu1 }
 0x3e7   : > { %v3699_v17 = vadd.f32 %v3698_v1, %v3697_v6  ;;  %v3700_v49 = vpop.f32.mrb[194].mxu1 }
 0x3e8   : > { %v3701_v57 = vpop.f32.mrb[195].mxu1 }
 0x3e9   : > { %v2959_v20 = vadd.f32 %v3699_v17, %v3293_v62  ;;  %v3702_v47 = vadd.f32 %v3701_v57, %v3700_v49 }
 0x3eb   : > { %v3008_v53 = vadd.f32 %v3007_v54, %v2959_v20  ;;  %v2962_v7 = vadd.f32 %v3702_v47, %v3293_v62 }
 0x3ed   : > { %v3022_v9 = vmax.f32 %v3008_v53, 0.0  ;;  %v3011_v8 = vadd.f32 %v3010_v3, %v2962_v7  ;;  %v3703_v14 = vpop.f32.mrb[196].mxu1 }
 0x3ee   : > { %v3704_v33 = vpop.f32.mrb[197].mxu1 }
 0x3ef   : > { %3026 = vst [vmem:[%s296_s25] sm:$0xff] %v3022_v9  ;;  %v3023_v24 = vmax.f32 %v3011_v8, 0.0  ;;  %v3705_v63 = vadd.f32 %v3704_v33, %v3703_v14  ;;  %v3706_v28 = vpop.f32.mrb[198].mxu1 }
 0x3f0   : > { %v3707_v36 = vpop.f32.mrb[199].mxu1 }
 0x3f1   : > { %3027 = vst [vmem:[%s296_s25 + $0x8] sm:$0xff] %v3023_v24  ;;  %v2967_v59 = vadd.f32 %v3705_v63, %v3293_v62  ;;  %v3708_v2 = vadd.f32 %v3707_v36, %v3706_v28 }
 0x3f3   : > { %v3016_v25 = vadd.f32 %v3809_v5, %v2967_v59  ;;  %v2970_v48 = vadd.f32 %v3708_v2, %v3293_v62 }
 0x3f5   : > { %v3024_v52 = vmax.f32 %v3016_v25, 0.0  ;;  %v3019_v12 = vadd.f32 %v3810_v27, %v2970_v48 }
 0x3f7   : > { %3028 = vst [vmem:[%s296_s25 + $0x10] sm:$0xff] %v3024_v52  ;;  %v3025_v13 = vmax.f32 %v3019_v12, 0.0 }
 0x3f9   : > { %3029 = vst [vmem:[%s296_s25 + $0x18] sm:$0xff] %v3025_v13 }
 0x3fa   : > { %4337 = shalt.err (!%p4334_p1)
}
 0x3fb   : > { %s4338_s8 = scalar_lea.hbm %s5231_s16, 512  ;;  %s4342_s7 = scalar_lea.hbm %s5280_s5, 1024 }
 0x3fc   : > { %p4339_p3 = scmp.ne.s32.totalorder %s5231_s16, %s4338_s8  ;;  %p4343_p6 = scmp.lt.u32.totalorder %s5231_s16, %s5280_s5 }
 0x3fd   : > { %p4344_p11 = scmp.lt.u32.totalorder %s4342_s7, %s4338_s8  ;;  %p4346_p0 = scmp.lt.u32.totalorder %s4338_s8, %s5231_s16 }
 0x3fe   : > { %p4340_p2 = pnand %p4339_p3, %p5298_p13 }
 0x3ff   : > { %p4345_p12 = por %p4344_p11, %p4343_p6 }
 0x400   : > { %p4341_p5 = pneg %p4340_p2 }
 0x401   : > { %p4347_p7 = por %p4346_p0, %p4345_p12 }
 0x403   : > { %p4348_p8 = pnand %p4347_p7, %p4341_p5 }
 0x405   : > { %4351 = shalt.err (!%p4348_p8)
}
 0x406   : > { %s4409_s25 = smov 128   ;;  %s4410_s11 = smov 8  }
 0x407   : > { %3958 = dma.vmem_to_hbm [thread:$0]  (%p5298_p13), %s5226_s9, 512, %s5231_s16, %s3031_s12, %s4409_s25, %s4409_s25, %s4410_s11  }
 0x408 PF: > { %s3059_s13 = sand.u32 1, %s4382_s18   ;;  %p5299_p9 = scmp.ne.s32.totalorder %s5290_s6, 0 }
 0x409   : > { %s3060_s15 = scalar_lea.sflag [#allocation4], %s3059_s13 }
 0x40a   : > { %p3968_p10 = pnand %p3140_p4, %p5299_p9 }
 0x40c   : > { %4377 = dma.done.wait (!%p3968_p10), %s3060_s15, 512  }
 0x40d   : > { %4379 = vsyncadd (!%p3968_p10), %s3060_s15, 4294966784  ;;  %s5300_s23 = sld [smem:[#allocation15_spill]]  ;;  %p19_p1 = scmp.ge.s32.totalorder %s4466_s24, 4  }
 0x40e   : > { %s5301_s18 = smov %s4386_s19  ;;  %s5302_s19 = smov %s4390_s20 }
 0x40f   : > { %s5304_s21 = smov %s4466_s24  ;;  %21 = sbr.rel (!%p19_p1) target bundleno = 6 (0x6), region = 98 }
 0x413   : > { %s5303_s20 = smov %s5300_s23 }
 0x416   :  { %3065 = vsyncpa [#allocation3], 1 }
 0x417   :  { %3067 = vsyncpa [#allocation3 + $0x1], 1 }
 0x418   :  { %3068 = vsyncpa [#allocation6], 1 }
 0x419   :  { %3069 = vsyncpa [#allocation4], 1 }
 0x41a   :  { %3071 = vsyncpa [#allocation4 + $0x1], 1 }

</bundles_post_ra>
